<compile_context>
chip_gen: v5e
topology: v5e:2x2
jax: 0.10.0
libtpu: 0.0.40
codegen_flags: <defaults>
</compile_context>

<pallas_src>
import functools
import math

import jax
import jax.numpy as jnp
from jax.experimental import pallas as pl
from jax.experimental.pallas import tpu as pltpu


def _round_up(x, m):
    return ((x + m - 1) // m) * m


# ----------------------------------------------------------------------------- Pallas kernels

def _mm_epilogue_kernel(relu, lhs_ref, rhs_ref, s_ref, t_ref, o_ref, acc_ref):
    """(TM,TK)@(TK,N) accumulated over the K grid axis; fused scale/shift (+ optional ReLU)."""
    k = pl.program_id(1)

    @pl.when(k == 0)
    def _():
        acc_ref[...] = jnp.zeros_like(acc_ref)

    acc_ref[...] += jnp.dot(lhs_ref[...], rhs_ref[...],
                            preferred_element_type=jnp.float32)

    @pl.when(k == pl.num_programs(1) - 1)
    def _():
        y = acc_ref[...] * s_ref[...] + t_ref[...]          # f32 epilogue math (v5e-safe)
        if relu:
            y = jnp.maximum(y, 0.0)
        o_ref[...] = y.astype(o_ref.dtype)


def _mm_res_epilogue_kernel(relu, lhs_ref, rhs_ref, s_ref, t_ref, r_ref, o_ref, acc_ref):
    """Same as above, but adds a residual before the BN scale/shift (WideBasic conv2 path)."""
    k = pl.program_id(1)

    @pl.when(k == 0)
    def _():
        acc_ref[...] = jnp.zeros_like(acc_ref)

    acc_ref[...] += jnp.dot(lhs_ref[...], rhs_ref[...],
                            preferred_element_type=jnp.float32)

    @pl.when(k == pl.num_programs(1) - 1)
    def _():
        y = (acc_ref[...] + r_ref[...].astype(jnp.float32)) * s_ref[...] + t_ref[...]
        if relu:
            y = jnp.maximum(y, 0.0)
        o_ref[...] = y.astype(o_ref.dtype)


def fused_matmul(lhs, w, scale, shift, *, residual=None, relu=False, tm=512, tk=512):
    """lhs (Mp, Kp) bf16, w (Kp, N) bf16, scale/shift (1, N) f32 -> (Mp, N) bf16."""
    Mp, Kp = lhs.shape
    N = w.shape[1]
    TM = min(tm, Mp)
    assert Mp % TM == 0 and TM % 8 == 0, (Mp, TM)
    TK = Kp if Kp <= 2 * tk else tk
    assert Kp % TK == 0 and TK % 128 == 0, (Kp, TK)
    grid = (Mp // TM, Kp // TK)

    in_specs = [
        pl.BlockSpec((TM, TK), lambda mi, ki: (mi, ki)),
        pl.BlockSpec((TK, N), lambda mi, ki: (ki, 0)),
        pl.BlockSpec((1, N), lambda mi, ki: (0, 0)),
        pl.BlockSpec((1, N), lambda mi, ki: (0, 0)),
    ]
    args = [lhs, w, scale, shift]
    io_alias = {}
    if residual is not None:
        in_specs.append(pl.BlockSpec((TM, N), lambda mi, ki: (mi, 0)))
        args.append(residual)
        io_alias = {4: 0}                      # reuse the residual HBM buffer for the output
        kernel = functools.partial(_mm_res_epilogue_kernel, relu)
    else:
        kernel = functools.partial(_mm_epilogue_kernel, relu)

    n_out = Mp * N * (2 if residual is not None else 1)
    bytes_acc = 2 * (lhs.size + w.size + n_out)
    return pl.pallas_call(
        kernel,
        out_shape=jax.ShapeDtypeStruct((Mp, N), jnp.bfloat16),
        grid=grid,
        in_specs=in_specs,
        out_specs=pl.BlockSpec((TM, N), lambda mi, ki: (mi, 0)),
        scratch_shapes=[pltpu.VMEM((TM, N), jnp.float32)],
        input_output_aliases=io_alias,
        compiler_params=pltpu.CompilerParams(
            dimension_semantics=("parallel", "arbitrary"),   # M parallel, K reduction
            vmem_limit_bytes=32 * 1024 * 1024),               # safe on v5e/v6e/v7x
        cost_estimate=pl.CostEstimate(flops=2 * Mp * Kp * N, transcendentals=0,
                                      bytes_accessed=int(bytes_acc)),
    )(*args)


def _max3_kernel(a_ref, b_ref, c_ref, o_ref):
    o_ref[...] = jnp.maximum(jnp.maximum(a_ref[...], b_ref[...]), c_ref[...])


def _max3(a, b, c, tile_rows=2048):
    """Element-wise max of three equally-shaped arrays, tiled over rows (VPU maxima)."""
    shp = a.shape
    C = shp[-1]
    R = 1
    for s in shp[:-1]:
        R *= s
    a2, b2, c2 = (t.reshape(R, C) for t in (a, b, c))
    TR = min(tile_rows, _round_up(R, 8))
    Rp = _round_up(R, TR)
    if Rp != R:
        a2, b2, c2 = (jnp.pad(t, ((0, Rp - R), (0, 0))) for t in (a2, b2, c2))
    y = pl.pallas_call(
        _max3_kernel,
        out_shape=jax.ShapeDtypeStruct((Rp, C), a.dtype),
        grid=(Rp // TR,),
        in_specs=[pl.BlockSpec((TR, C), lambda i: (i, 0))] * 3,
        out_specs=pl.BlockSpec((TR, C), lambda i: (i, 0)),
        compiler_params=pltpu.CompilerParams(dimension_semantics=("parallel",)),
    )(a2, b2, c2)
    return y[:R].reshape(shp)


def _gap_kernel(x_ref, o_ref):
    o_ref[...] = jnp.mean(x_ref[...].astype(jnp.float32), axis=1)


def global_avg_pool(x):
    """x: (N, H, W, C) -> (N, C) float32 (tiny tensor at the tail; single block)."""
    n, h, w, c = x.shape
    x3 = x.reshape(n, h * w, c)
    return pl.pallas_call(
        _gap_kernel,
        out_shape=jax.ShapeDtypeStruct((n, c), jnp.float32),
        grid=(1,),
        in_specs=[pl.BlockSpec((n, h * w, c), lambda i: (0, 0, 0))],
        out_specs=pl.BlockSpec((n, c), lambda i: (0, 0)),
    )(x3)


# ----------------------------------------------------------------------------- glue (im2col etc.)

def extract_patches(x, kh, kw, stride, pad, pad_value=0.0):
    """x: (N, H, W, C) -> (N, Ho, Wo, kh*kw, C). Tap order = (kh, kw) row-major."""
    n, h, w, c = x.shape
    xp = jnp.pad(x, ((0, 0), (pad, pad), (pad, pad), (0, 0)),
                 mode="constant", constant_values=pad_value)
    ho = (h + 2 * pad - kh) // stride + 1
    wo = (w + 2 * pad - kw) // stride + 1
    taps = []
    for i in range(kh):
        for j in range(kw):
            taps.append(xp[:, i:i + ho * stride:stride, j:j + wo * stride:stride, :])
    return jnp.stack(taps, axis=3)


def conv_bn_act(x, cv, bn=None, relu=False, residual=None):
    """Packed grouped conv (block-diagonal lane-dense matmul) with bias / eval-BN / ReLU
    (and optional residual add) fused into the matmul epilogue.  x: (N,H,W,Cin) bf16."""
    # TODO(synk): fold the im2col into the matmul kernel (halo DMA of NHWC tiles + kh*kw
    # shifted matmuls) to remove the kh*kw x HBM expansion of the patches tensor.
    assert x.shape[-1] == cv["ext_in"], (x.shape, cv["ext_in"])
    patches = extract_patches(x, cv["kh"], cv["kw"], cv["stride"], cv["pad"], 0.0)
    n, ho, wo = patches.shape[:3]
    M = n * ho * wo
    lhs = patches.reshape(M, cv["K"])          # no HBM transpose: tap-major, channel-minor
    TM = min(512, _round_up(M, 8))
    Mp = _round_up(M, TM)
    lhs = jnp.pad(lhs, ((0, Mp - M), (0, cv["K_pad"] - cv["K"])))

    if bn is not None:                          # fold the conv bias into the BN shift
        scale = bn["scale"]
        shift = bn["shift"] + cv["b"][None, :] * bn["scale"]
    else:
        scale = jnp.ones((1, cv["ext_out"]), jnp.float32)
        shift = cv["b"][None, :]

    res = None
    if residual is not None:
        res = residual.reshape(M, cv["ext_out"]).astype(jnp.bfloat16)
        res = jnp.pad(res, ((0, Mp - M), (0, 0)))

    y = fused_matmul(lhs, cv["w"], scale, shift, residual=res, relu=relu, tm=TM)
    return y[:M].reshape(n, ho, wo, cv["ext_out"])


def max_pool_3x3_s2_p1(x):
    """Separable 3x3/stride-2/pad-1 max pool as two chained 3-way VPU maxima."""
    n, h, w, c = x.shape
    ho = (h + 2 - 3) // 2 + 1
    wo = (w + 2 - 3) // 2 + 1
    xp = jnp.pad(x, ((0, 0), (1, 1), (1, 1), (0, 0)),
                 mode="constant", constant_values=-jnp.inf)
    z = _max3(xp[:, :, 0:2 * wo:2, :],
              xp[:, :, 1:1 + 2 * wo:2, :],
              xp[:, :, 2:2 + 2 * wo:2, :])                     # W direction
    return _max3(z[:, 0:2 * ho:2, :, :],
                 z[:, 1:1 + 2 * ho:2, :, :],
                 z[:, 2:2 + 2 * ho:2, :, :])                   # H direction


# ----------------------------------------------------------------------------- parameter builders

def _pick_k_pad(K):
    K_pad = _round_up(K, 128)
    if K_pad > 1024:                    # tile the reduction axis in 512-chunks when large
        K_pad = _round_up(K, 512)
    return K_pad


def make_packed_conv(key, in_ch, out_ch, ksize, alpha, num_estimators, *, stride, padding,
                     gamma, groups, bias, first=False, last=False, min_cpg=64):
    # replicates torch_uncertainty PackedConv2d channel / group arithmetic
    ext_in = int(in_ch * (1 if first else alpha))
    ext_out = int(out_ch * (num_estimators if last else alpha))
    g = gamma
    actual_groups = 1 if first else g * groups * num_estimators
    while ((ext_in % actual_groups != 0 or ext_in // actual_groups < min_cpg)
           and actual_groups // (groups * num_estimators) > 1):
        g -= 1
        actual_groups = g * groups * num_estimators
    if ext_in % actual_groups:
        ext_in += num_estimators - ext_in % actual_groups
    if ext_out % actual_groups:
        ext_out += num_estimators - ext_out % actual_groups
    assert ext_in % actual_groups == 0 and ext_out % actual_groups == 0, \
        (ext_in, ext_out, actual_groups)
    cin_g = ext_in // actual_groups
    cout_g = ext_out // actual_groups
    kk = ksize * ksize
    fan_in = cin_g * kk
    kw_key, b_key = jax.random.split(key)
    wg = jax.random.normal(kw_key, (actual_groups, kk, cin_g, cout_g),
                           jnp.float32) / math.sqrt(fan_in)
    # block-diagonal weight: one dense lane-dense matmul covers all groups
    wd = jnp.zeros((kk, ext_in, ext_out), jnp.float32)
    for gi in range(actual_groups):
        wd = wd.at[:, gi * cin_g:(gi + 1) * cin_g,
                   gi * cout_g:(gi + 1) * cout_g].set(wg[gi])
    K = kk * ext_in
    K_pad = _pick_k_pad(K)
    wd = jnp.pad(wd.reshape(K, ext_out), ((0, K_pad - K), (0, 0))).astype(jnp.bfloat16)
    if bias:
        b = (jax.random.uniform(b_key, (ext_out,), jnp.float32) - 0.5) / math.sqrt(fan_in)
    else:
        b = jnp.zeros((ext_out,), jnp.float32)
    return {"w": wd, "b": b, "kh": ksize, "kw": ksize, "stride": stride, "pad": padding,
            "groups": actual_groups, "ext_in": ext_in, "ext_out": ext_out,
            "K": K, "K_pad": K_pad}


def make_bn(key, c, eps=1e-5):
    # eval-mode BatchNorm2d folded to per-channel scale/shift (kept in f32)
    k1, k2, k3, k4 = jax.random.split(key, 4)
    weight = 1.0 + 0.1 * jax.random.normal(k1, (c,), jnp.float32)
    bias = 0.1 * jax.random.normal(k2, (c,), jnp.float32)
    mean = 0.1 * jax.random.normal(k3, (c,), jnp.float32)
    var = 1.0 + 0.1 * jnp.abs(jax.random.normal(k4, (c,), jnp.float32))
    scale = weight / jnp.sqrt(var + eps)
    shift = bias - mean * scale
    return {"scale": scale.reshape(1, c), "shift": shift.reshape(1, c)}


def make_packed_linear(key, in_f, out_f, alpha, num_estimators, *, gamma=1, bias=True,
                       first=False, last=False):
    ext_in = int(in_f * (1 if first else alpha))
    ext_out = int(out_f * (num_estimators if last else alpha))
    g = 1 if first else gamma * num_estimators
    if ext_in % g:
        ext_in += num_estimators - ext_in % g
    if ext_out % g:
        ext_out += num_estimators - ext_out % g
    assert ext_in % g == 0 and ext_out % g == 0, (ext_in, ext_out, g)
    k_g, o_g = ext_in // g, ext_out // g
    kw_key, b_key = jax.random.split(key)
    wg = jax.random.normal(kw_key, (g, k_g, o_g), jnp.float32) / math.sqrt(k_g)
    wd = jnp.zeros((ext_in, ext_out), jnp.float32)
    for gi in range(g):
        wd = wd.at[gi * k_g:(gi + 1) * k_g, gi * o_g:(gi + 1) * o_g].set(wg[gi])
    K_pad = _round_up(ext_in, 128)
    wd = jnp.pad(wd, ((0, K_pad - ext_in), (0, 0))).astype(jnp.bfloat16)
    b = ((jax.random.uniform(b_key, (ext_out,), jnp.float32) - 0.5) / math.sqrt(k_g)
         if bias else jnp.zeros((ext_out,), jnp.float32))
    return {"w": wd, "b": b, "groups": g, "ext_in": ext_in, "ext_out": ext_out,
            "K_pad": K_pad}


def build_packed_wide(key, depth, widen_factor, in_channels, num_classes,
                      num_estimators=4, alpha=2, gamma=1, groups=1,
                      dropout_rate=0.0, style="imagenet"):
    assert (depth - 4) % 6 == 0, "Wide-resnet depth should be 6n+4."
    num_blocks = (depth - 4) // 6
    k = widen_factor
    nstages = [16, 16 * k, 32 * k, 64 * k]
    cnt = [0]

    def nk():
        cnt[0] += 1
        return jax.random.fold_in(key, cnt[0])

    params = {"cfg": {"num_estimators": num_estimators, "style": style}}
    if style == "imagenet":
        params["conv1"] = make_packed_conv(nk(), in_channels, nstages[0], 7, alpha,
                                           num_estimators, stride=2, padding=3, gamma=1,
                                           groups=groups, bias=True, first=True)
    else:
        params["conv1"] = make_packed_conv(nk(), in_channels, nstages[0], 3, alpha,
                                           num_estimators, stride=1, padding=1, gamma=gamma,
                                           groups=groups, bias=True, first=True)
    params["bn1"] = make_bn(nk(), nstages[0] * alpha)

    blocks = []
    in_planes = 16
    for planes, stage_stride in ((nstages[1], 1), (nstages[2], 2), (nstages[3], 2)):
        strides = [stage_stride] + [1] * (num_blocks - 1)
        for s in strides:
            blk = {}
            blk["conv1"] = make_packed_conv(nk(), in_planes, planes, 3, alpha, num_estimators,
                                            stride=1, padding=1, gamma=gamma, groups=groups,
                                            bias=False)
            blk["bn1"] = make_bn(nk(), alpha * planes)
            blk["conv2"] = make_packed_conv(nk(), planes, planes, 3, alpha, num_estimators,
                                            stride=s, padding=1, gamma=gamma, groups=groups,
                                            bias=False)
            if s != 1 or in_planes != planes:
                blk["shortcut"] = make_packed_conv(nk(), in_planes, planes, 1, alpha,
                                                   num_estimators, stride=s, padding=0,
                                                   gamma=gamma, groups=groups, bias=True)
            else:
                blk["shortcut"] = None
            blk["bn2"] = make_bn(nk(), alpha * planes)
            blocks.append(blk)
            in_planes = planes
    params["blocks"] = blocks
    params["linear"] = make_packed_linear(nk(), nstages[3], num_classes, alpha, num_estimators,
                                          gamma=gamma, bias=True, last=True)
    return params


# ----------------------------------------------------------------------------- forward pass

def wide_basic_forward(x, blk):
    # conv1 -> Dropout -> BN1 -> ReLU, all fused into one Pallas matmul call.
    # TODO(synk): nn.Dropout(p=dropout_rate) -> identity here (p=0 / inference mode).
    out = conv_bn_act(x, blk["conv1"], bn=blk["bn1"], relu=True)
    if blk["shortcut"] is None:
        sc = x                                        # identity shortcut
    else:
        sc = conv_bn_act(x, blk["shortcut"])          # 1x1 conv, bias-only epilogue
    # conv2 + residual add + BN2 + ReLU fused into one Pallas matmul call
    return conv_bn_act(out, blk["conv2"], bn=blk["bn2"], relu=True, residual=sc)


def packed_wide_forward(params, x_nchw):
    m = params["cfg"]["num_estimators"]
    x = jnp.transpose(x_nchw, (0, 2, 3, 1)).astype(jnp.bfloat16)     # NCHW -> NHWC, bf16 acts

    out = conv_bn_act(x, params["conv1"], bn=params["bn1"], relu=True)
    if params["cfg"]["style"] == "imagenet":
        out = max_pool_3x3_s2_p1(out)
    for blk in params["blocks"]:
        out = wide_basic_forward(out, blk)

    # Global average pool first (it commutes with 'e (m c) h w -> (m e) c h w'), so the
    # pooled (e, m*c) tensor is already in the layout the legacy PackedLinear consumes.
    n, h, w, c_all = out.shape
    pooled = global_avg_pool(out)                                    # (e, m*c) float32

    lin = params["linear"]
    assert c_all == lin["ext_in"], (c_all, lin["ext_in"])
    Mp = _round_up(n, 8)
    lhs = jnp.pad(pooled.astype(jnp.bfloat16),
                  ((0, Mp - n), (0, lin["K_pad"] - lin["ext_in"])))
    scale = jnp.ones((1, lin["ext_out"]), jnp.float32)
    shift = lin["b"][None, :]
    y = fused_matmul(lhs, lin["w"], scale, shift, relu=False, tm=Mp)[:n]   # (e, m*classes)
    # 'e (m c) -> (m e) c'
    per = lin["ext_out"] // m
    y = jnp.transpose(y.reshape(n, m, per), (1, 0, 2)).reshape(m * n, per)
    return y.astype(jnp.float32)


# ----------------------------------------------------------------------------- main

if __name__ == "__main__":
    key = jax.random.PRNGKey(0)
    batch, in_channels, spatial = 2, 4, 16
    num_classes, num_estimators, alpha = 6, 4, 2

    params = build_packed_wide(jax.random.fold_in(key, 1),
                               depth=10, widen_factor=1,
                               in_channels=in_channels, num_classes=num_classes,
                               num_estimators=num_estimators, alpha=alpha,
                               gamma=1, groups=1, dropout_rate=0.0,
                               style="imagenet")

    x = jax.random.normal(jax.random.fold_in(key, 2),
                          (batch, in_channels, spatial, spatial), jnp.float32)  # NCHW input

    fwd = jax.jit(lambda inp: packed_wide_forward(params, inp))
    out = jax.block_until_ready(fwd(x))
    assert out.shape == (num_estimators * batch, num_classes), out.shape
    assert jnp.all(jnp.isfinite(out))
    print("KERNEL_OK")
</pallas_src>

<mosaic_0001>
module attributes {stable_mosaic.version = 11 : i64} {
  func.func @_mm_epilogue_kernel(%arg0: i32, %arg1: i32, %arg2: memref<128x256xbf16, #tpu.memory_space<vmem>>, %arg3: memref<256x32xbf16, #tpu.memory_space<vmem>>, %arg4: memref<1x32xf32, #tpu.memory_space<vmem>>, %arg5: memref<1x32xf32, #tpu.memory_space<vmem>>, %arg6: memref<128x32xbf16, #tpu.memory_space<vmem>>, %arg7: memref<128x32xf32, #tpu.memory_space<vmem>>) attributes {dimension_semantics = [#tpu.dimension_semantics<parallel>, #tpu.dimension_semantics<arbitrary>], iteration_bounds = array<i64: 1, 1>, scalar_prefetch = 0 : i64, scratch_operands = 1 : i64, tpu.core_type = #tpu.core_type<tc>, window_params = [{transform_indices = @transform_0, window_bounds = array<i64: 128, 256>}, {transform_indices = @transform_1, window_bounds = array<i64: 256, 32>}, {pipeline_mode = #tpu.pipeline_mode<synchronous>, transform_indices = @transform_2, window_bounds = array<i64: 1, 32>}, {pipeline_mode = #tpu.pipeline_mode<synchronous>, transform_indices = @transform_3, window_bounds = array<i64: 1, 32>}, {transform_indices = @transform_4, window_bounds = array<i64: 128, 32>}]} {
    %c0_i32 = arith.constant 0 : i32
    %0 = arith.cmpi eq, %arg1, %c0_i32 : i32
    %1 = arith.extui %0 : i1 to i32
    %c0_i32_0 = arith.constant 0 : i32
    %2 = arith.cmpi ne, %1, %c0_i32_0 : i32
    scf.if %2 {
      %cst_10 = arith.constant 0.000000e+00 : f32
      %12 = vector.broadcast %cst_10 : f32 to vector<128x32xf32>
      %c0_11 = arith.constant 0 : index
      %c0_12 = arith.constant 0 : index
      %13 = vector.load %arg7[%c0_11, %c0_12] : memref<128x32xf32, #tpu.memory_space<vmem>>, vector<128x32xf32>
      tpu.vector_store %arg7[%c0_11, %c0_12], %12 {strides = array<i32>} : memref<128x32xf32, #tpu.memory_space<vmem>>, vector<128x32xf32>,
    } else {
    }
    %c0 = arith.constant 0 : index
    %c0_1 = arith.constant 0 : index
    %3 = vector.load %arg7[%c0, %c0_1] : memref<128x32xf32, #tpu.memory_space<vmem>>, vector<128x32xf32>
    %c0_2 = arith.constant 0 : index
    %c0_3 = arith.constant 0 : index
    %4 = vector.load %arg2[%c0_2, %c0_3] : memref<128x256xbf16, #tpu.memory_space<vmem>>, vector<128x256xbf16>
    %c0_4 = arith.constant 0 : index
    %c0_5 = arith.constant 0 : index
    %5 = vector.load %arg3[%c0_4, %c0_5] : memref<256x32xbf16, #tpu.memory_space<vmem>>, vector<256x32xbf16>
    %cst = arith.constant dense<0.000000e+00> : vector<128x32xf32>
    %6 = tpu.matmul %4, %5, %cst {dimension_numbers = #tpu.dot_dimension_numbers<[1], [0], [0], [1], [0, 0, 1, 1], [], []>} : vector<128x256xbf16>, vector<256x32xbf16>, vector<128x32xf32> -> vector<128x32xf32>
    %7 = arith.addf %3, %6 : vector<128x32xf32>
    %c0_6 = arith.constant 0 : index
    %c0_7 = arith.constant 0 : index
    %8 = vector.load %arg7[%c0_6, %c0_7] : memref<128x32xf32, #tpu.memory_space<vmem>>, vector<128x32xf32>
    tpu.vector_store %arg7[%c0_6, %c0_7], %7 {strides = array<i32>} : memref<128x32xf32, #tpu.memory_space<vmem>>, vector<128x32xf32>,
    %c0_i32_8 = arith.constant 0 : i32
    %9 = arith.cmpi eq, %arg1, %c0_i32_8 : i32
    %10 = arith.extui %9 : i1 to i32
    %c0_i32_9 = arith.constant 0 : i32
    %11 = arith.cmpi ne, %10, %c0_i32_9 : i32
    scf.if %11 {
      %c0_10 = arith.constant 0 : index
      %c0_11 = arith.constant 0 : index
      %12 = vector.load %arg7[%c0_10, %c0_11] : memref<128x32xf32, #tpu.memory_space<vmem>>, vector<128x32xf32>
      %c0_12 = arith.constant 0 : index
      %c0_13 = arith.constant 0 : index
      %13 = vector.load %arg4[%c0_12, %c0_13] : memref<1x32xf32, #tpu.memory_space<vmem>>, vector<1x32xf32>
      %14 = vector.broadcast %13 : vector<1x32xf32> to vector<128x32xf32>
      %15 = arith.mulf %12, %14 : vector<128x32xf32>
      %c0_14 = arith.constant 0 : index
      %c0_15 = arith.constant 0 : index
      %16 = vector.load %arg5[%c0_14, %c0_15] : memref<1x32xf32, #tpu.memory_space<vmem>>, vector<1x32xf32>
      %17 = vector.broadcast %16 : vector<1x32xf32> to vector<128x32xf32>
      %18 = arith.addf %15, %17 : vector<128x32xf32>
      %cst_16 = arith.constant 0.000000e+00 : f32
      %19 = vector.broadcast %cst_16 : f32 to vector<128x32xf32>
      %20 = arith.maximumf %18, %19 : vector<128x32xf32>
      %21 = arith.truncf %20 : vector<128x32xf32> to vector<128x32xbf16>
      %c0_17 = arith.constant 0 : index
      %c0_18 = arith.constant 0 : index
      %22 = vector.load %arg6[%c0_17, %c0_18] : memref<128x32xbf16, #tpu.memory_space<vmem>>, vector<128x32xbf16>
      tpu.vector_store %arg6[%c0_17, %c0_18], %21 {strides = array<i32>} : memref<128x32xbf16, #tpu.memory_space<vmem>>, vector<128x32xbf16>,
    } else {
    }
    return
  }
  func.func @transform_0(%arg0: i32, %arg1: i32) -> (i32, i32) {
    %c0_i32 = arith.constant 0 : i32
    return %arg0, %arg1 : i32, i32
  }
  func.func @transform_1(%arg0: i32, %arg1: i32) -> (i32, i32) {
    %c0_i32 = arith.constant 0 : i32
    %c0_i32_0 = arith.constant 0 : i32
    return %arg1, %c0_i32 : i32, i32
  }
  func.func @transform_2(%arg0: i32, %arg1: i32) -> (i32, i32) {
    %c0_i32 = arith.constant 0 : i32
    %c0_i32_0 = arith.constant 0 : i32
    %c0_i32_1 = arith.constant 0 : i32
    return %c0_i32, %c0_i32_0 : i32, i32
  }
  func.func @transform_3(%arg0: i32, %arg1: i32) -> (i32, i32) {
    %c0_i32 = arith.constant 0 : i32
    %c0_i32_0 = arith.constant 0 : i32
    %c0_i32_1 = arith.constant 0 : i32
    return %c0_i32, %c0_i32_0 : i32, i32
  }
  func.func @transform_4(%arg0: i32, %arg1: i32) -> (i32, i32) {
    %c0_i32 = arith.constant 0 : i32
    %c0_i32_0 = arith.constant 0 : i32
    return %arg0, %c0_i32 : i32, i32
  }
}

module attributes {stable_mosaic.version = 11 : i64} {
  func.func @_max3_kernel(%arg0: i32, %arg1: memref<80x32xbf16, #tpu.memory_space<vmem>>, %arg2: memref<80x32xbf16, #tpu.memory_space<vmem>>, %arg3: memref<80x32xbf16, #tpu.memory_space<vmem>>, %arg4: memref<80x32xbf16, #tpu.memory_space<vmem>>) attributes {dimension_semantics = [#tpu.dimension_semantics<parallel>], iteration_bounds = array<i64: 1>, scalar_prefetch = 0 : i64, scratch_operands = 0 : i64, tpu.core_type = #tpu.core_type<tc>, window_params = [{transform_indices = @transform_0, window_bounds = array<i64: 80, 32>}, {transform_indices = @transform_1, window_bounds = array<i64: 80, 32>}, {transform_indices = @transform_2, window_bounds = array<i64: 80, 32>}, {transform_indices = @transform_3, window_bounds = array<i64: 80, 32>}]} {
    %c0 = arith.constant 0 : index
    %c0_0 = arith.constant 0 : index
    %0 = vector.load %arg1[%c0, %c0_0] : memref<80x32xbf16, #tpu.memory_space<vmem>>, vector<80x32xbf16>
    %c0_1 = arith.constant 0 : index
    %c0_2 = arith.constant 0 : index
    %1 = vector.load %arg2[%c0_1, %c0_2] : memref<80x32xbf16, #tpu.memory_space<vmem>>, vector<80x32xbf16>
    %2 = arith.maximumf %0, %1 : vector<80x32xbf16>
    %c0_3 = arith.constant 0 : index
    %c0_4 = arith.constant 0 : index
    %3 = vector.load %arg3[%c0_3, %c0_4] : memref<80x32xbf16, #tpu.memory_space<vmem>>, vector<80x32xbf16>
    %4 = arith.maximumf %2, %3 : vector<80x32xbf16>
    %c0_5 = arith.constant 0 : index
    %c0_6 = arith.constant 0 : index
    %5 = vector.load %arg4[%c0_5, %c0_6] : memref<80x32xbf16, #tpu.memory_space<vmem>>, vector<80x32xbf16>
    tpu.vector_store %arg4[%c0_5, %c0_6], %4 {strides = array<i32>} : memref<80x32xbf16, #tpu.memory_space<vmem>>, vector<80x32xbf16>,
    return
  }
  func.func @transform_0(%arg0: i32) -> (i32, i32) {
    %c0_i32 = arith.constant 0 : i32
    %c0_i32_0 = arith.constant 0 : i32
    return %arg0, %c0_i32 : i32, i32
  }
  func.func @transform_1(%arg0: i32) -> (i32, i32) {
    %c0_i32 = arith.constant 0 : i32
    %c0_i32_0 = arith.constant 0 : i32
    return %arg0, %c0_i32 : i32, i32
  }
  func.func @transform_2(%arg0: i32) -> (i32, i32) {
    %c0_i32 = arith.constant 0 : i32
    %c0_i32_0 = arith.constant 0 : i32
    return %arg0, %c0_i32 : i32, i32
  }
  func.func @transform_3(%arg0: i32) -> (i32, i32) {
    %c0_i32 = arith.constant 0 : i32
    %c0_i32_0 = arith.constant 0 : i32
    return %arg0, %c0_i32 : i32, i32
  }
}

module attributes {stable_mosaic.version = 11 : i64} {
  func.func @_max3_kernel(%arg0: i32, %arg1: memref<32x32xbf16, #tpu.memory_space<vmem>>, %arg2: memref<32x32xbf16, #tpu.memory_space<vmem>>, %arg3: memref<32x32xbf16, #tpu.memory_space<vmem>>, %arg4: memref<32x32xbf16, #tpu.memory_space<vmem>>) attributes {dimension_semantics = [#tpu.dimension_semantics<parallel>], iteration_bounds = array<i64: 1>, scalar_prefetch = 0 : i64, scratch_operands = 0 : i64, tpu.core_type = #tpu.core_type<tc>, window_params = [{transform_indices = @transform_0, window_bounds = array<i64: 32, 32>}, {transform_indices = @transform_1, window_bounds = array<i64: 32, 32>}, {transform_indices = @transform_2, window_bounds = array<i64: 32, 32>}, {transform_indices = @transform_3, window_bounds = array<i64: 32, 32>}]} {
    %c0 = arith.constant 0 : index
    %c0_0 = arith.constant 0 : index
    %0 = vector.load %arg1[%c0, %c0_0] : memref<32x32xbf16, #tpu.memory_space<vmem>>, vector<32x32xbf16>
    %c0_1 = arith.constant 0 : index
    %c0_2 = arith.constant 0 : index
    %1 = vector.load %arg2[%c0_1, %c0_2] : memref<32x32xbf16, #tpu.memory_space<vmem>>, vector<32x32xbf16>
    %2 = arith.maximumf %0, %1 : vector<32x32xbf16>
    %c0_3 = arith.constant 0 : index
    %c0_4 = arith.constant 0 : index
    %3 = vector.load %arg3[%c0_3, %c0_4] : memref<32x32xbf16, #tpu.memory_space<vmem>>, vector<32x32xbf16>
    %4 = arith.maximumf %2, %3 : vector<32x32xbf16>
    %c0_5 = arith.constant 0 : index
    %c0_6 = arith.constant 0 : index
    %5 = vector.load %arg4[%c0_5, %c0_6] : memref<32x32xbf16, #tpu.memory_space<vmem>>, vector<32x32xbf16>
    tpu.vector_store %arg4[%c0_5, %c0_6], %4 {strides = array<i32>} : memref<32x32xbf16, #tpu.memory_space<vmem>>, vector<32x32xbf16>,
    return
  }
  func.func @transform_0(%arg0: i32) -> (i32, i32) {
    %c0_i32 = arith.constant 0 : i32
    %c0_i32_0 = arith.constant 0 : i32
    return %arg0, %c0_i32 : i32, i32
  }
  func.func @transform_1(%arg0: i32) -> (i32, i32) {
    %c0_i32 = arith.constant 0 : i32
    %c0_i32_0 = arith.constant 0 : i32
    return %arg0, %c0_i32 : i32, i32
  }
  func.func @transform_2(%arg0: i32) -> (i32, i32) {
    %c0_i32 = arith.constant 0 : i32
    %c0_i32_0 = arith.constant 0 : i32
    return %arg0, %c0_i32 : i32, i32
  }
  func.func @transform_3(%arg0: i32) -> (i32, i32) {
    %c0_i32 = arith.constant 0 : i32
    %c0_i32_0 = arith.constant 0 : i32
    return %arg0, %c0_i32 : i32, i32
  }
}

module attributes {stable_mosaic.version = 11 : i64} {
  func.func @_mm_res_epilogue_kernel(%arg0: i32, %arg1: i32, %arg2: memref<32x384xbf16, #tpu.memory_space<vmem>>, %arg3: memref<384x32xbf16, #tpu.memory_space<vmem>>, %arg4: memref<1x32xf32, #tpu.memory_space<vmem>>, %arg5: memref<1x32xf32, #tpu.memory_space<vmem>>, %arg6: memref<32x32xbf16, #tpu.memory_space<vmem>>, %arg7: memref<32x32xbf16, #tpu.memory_space<vmem>>, %arg8: memref<32x32xf32, #tpu.memory_space<vmem>>) attributes {dimension_semantics = [#tpu.dimension_semantics<parallel>, #tpu.dimension_semantics<arbitrary>], iteration_bounds = array<i64: 1, 1>, scalar_prefetch = 0 : i64, scratch_operands = 1 : i64, tpu.core_type = #tpu.core_type<tc>, window_params = [{transform_indices = @transform_0, window_bounds = array<i64: 32, 384>}, {transform_indices = @transform_1, window_bounds = array<i64: 384, 32>}, {pipeline_mode = #tpu.pipeline_mode<synchronous>, transform_indices = @transform_2, window_bounds = array<i64: 1, 32>}, {pipeline_mode = #tpu.pipeline_mode<synchronous>, transform_indices = @transform_3, window_bounds = array<i64: 1, 32>}, {transform_indices = @transform_4, window_bounds = array<i64: 32, 32>}, {transform_indices = @transform_5, window_bounds = array<i64: 32, 32>}]} {
    %c0_i32 = arith.constant 0 : i32
    %0 = arith.cmpi eq, %arg1, %c0_i32 : i32
    %1 = arith.extui %0 : i1 to i32
    %c0_i32_0 = arith.constant 0 : i32
    %2 = arith.cmpi ne, %1, %c0_i32_0 : i32
    scf.if %2 {
      %cst_10 = arith.constant 0.000000e+00 : f32
      %12 = vector.broadcast %cst_10 : f32 to vector<32x32xf32>
      %c0_11 = arith.constant 0 : index
      %c0_12 = arith.constant 0 : index
      %13 = vector.load %arg8[%c0_11, %c0_12] : memref<32x32xf32, #tpu.memory_space<vmem>>, vector<32x32xf32>
      tpu.vector_store %arg8[%c0_11, %c0_12], %12 {strides = array<i32>} : memref<32x32xf32, #tpu.memory_space<vmem>>, vector<32x32xf32>,
    } else {
    }
    %c0 = arith.constant 0 : index
    %c0_1 = arith.constant 0 : index
    %3 = vector.load %arg8[%c0, %c0_1] : memref<32x32xf32, #tpu.memory_space<vmem>>, vector<32x32xf32>
    %c0_2 = arith.constant 0 : index
    %c0_3 = arith.constant 0 : index
    %4 = vector.load %arg2[%c0_2, %c0_3] : memref<32x384xbf16, #tpu.memory_space<vmem>>, vector<32x384xbf16>
    %c0_4 = arith.constant 0 : index
    %c0_5 = arith.constant 0 : index
    %5 = vector.load %arg3[%c0_4, %c0_5] : memref<384x32xbf16, #tpu.memory_space<vmem>>, vector<384x32xbf16>
    %cst = arith.constant dense<0.000000e+00> : vector<32x32xf32>
    %6 = tpu.matmul %4, %5, %cst {dimension_numbers = #tpu.dot_dimension_numbers<[1], [0], [0], [1], [0, 0, 1, 1], [], []>} : vector<32x384xbf16>, vector<384x32xbf16>, vector<32x32xf32> -> vector<32x32xf32>
    %7 = arith.addf %3, %6 : vector<32x32xf32>
    %c0_6 = arith.constant 0 : index
    %c0_7 = arith.constant 0 : index
    %8 = vector.load %arg8[%c0_6, %c0_7] : memref<32x32xf32, #tpu.memory_space<vmem>>, vector<32x32xf32>
    tpu.vector_store %arg8[%c0_6, %c0_7], %7 {strides = array<i32>} : memref<32x32xf32, #tpu.memory_space<vmem>>, vector<32x32xf32>,
    %c0_i32_8 = arith.constant 0 : i32
    %9 = arith.cmpi eq, %arg1, %c0_i32_8 : i32
    %10 = arith.extui %9 : i1 to i32
    %c0_i32_9 = arith.constant 0 : i32
    %11 = arith.cmpi ne, %10, %c0_i32_9 : i32
    scf.if %11 {
      %c0_10 = arith.constant 0 : index
      %c0_11 = arith.constant 0 : index
      %12 = vector.load %arg8[%c0_10, %c0_11] : memref<32x32xf32, #tpu.memory_space<vmem>>, vector<32x32xf32>
      %c0_12 = arith.constant 0 : index
      %c0_13 = arith.constant 0 : index
      %13 = vector.load %arg6[%c0_12, %c0_13] : memref<32x32xbf16, #tpu.memory_space<vmem>>, vector<32x32xbf16>
      %14 = arith.extf %13 : vector<32x32xbf16> to vector<32x32xf32>
      %15 = arith.addf %12, %14 : vector<32x32xf32>
      %c0_14 = arith.constant 0 : index
      %c0_15 = arith.constant 0 : index
      %16 = vector.load %arg4[%c0_14, %c0_15] : memref<1x32xf32, #tpu.memory_space<vmem>>, vector<1x32xf32>
      %17 = vector.broadcast %16 : vector<1x32xf32> to vector<32x32xf32>
      %18 = arith.mulf %15, %17 : vector<32x32xf32>
      %c0_16 = arith.constant 0 : index
      %c0_17 = arith.constant 0 : index
      %19 = vector.load %arg5[%c0_16, %c0_17] : memref<1x32xf32, #tpu.memory_space<vmem>>, vector<1x32xf32>
      %20 = vector.broadcast %19 : vector<1x32xf32> to vector<32x32xf32>
      %21 = arith.addf %18, %20 : vector<32x32xf32>
      %cst_18 = arith.constant 0.000000e+00 : f32
      %22 = vector.broadcast %cst_18 : f32 to vector<32x32xf32>
      %23 = arith.maximumf %21, %22 : vector<32x32xf32>
      %24 = arith.truncf %23 : vector<32x32xf32> to vector<32x32xbf16>
      %c0_19 = arith.constant 0 : index
      %c0_20 = arith.constant 0 : index
      %25 = vector.load %arg7[%c0_19, %c0_20] : memref<32x32xbf16, #tpu.memory_space<vmem>>, vector<32x32xbf16>
      tpu.vector_store %arg7[%c0_19, %c0_20], %24 {strides = array<i32>} : memref<32x32xbf16, #tpu.memory_space<vmem>>, vector<32x32xbf16>,
    } else {
    }
    return
  }
  func.func @transform_0(%arg0: i32, %arg1: i32) -> (i32, i32) {
    %c0_i32 = arith.constant 0 : i32
    return %arg0, %arg1 : i32, i32
  }
  func.func @transform_1(%arg0: i32, %arg1: i32) -> (i32, i32) {
    %c0_i32 = arith.constant 0 : i32
    %c0_i32_0 = arith.constant 0 : i32
    return %arg1, %c0_i32 : i32, i32
  }
  func.func @transform_2(%arg0: i32, %arg1: i32) -> (i32, i32) {
    %c0_i32 = arith.constant 0 : i32
    %c0_i32_0 = arith.constant 0 : i32
    %c0_i32_1 = arith.constant 0 : i32
    return %c0_i32, %c0_i32_0 : i32, i32
  }
  func.func @transform_3(%arg0: i32, %arg1: i32) -> (i32, i32) {
    %c0_i32 = arith.constant 0 : i32
    %c0_i32_0 = arith.constant 0 : i32
    %c0_i32_1 = arith.constant 0 : i32
    return %c0_i32, %c0_i32_0 : i32, i32
  }
  func.func @transform_4(%arg0: i32, %arg1: i32) -> (i32, i32) {
    %c0_i32 = arith.constant 0 : i32
    %c0_i32_0 = arith.constant 0 : i32
    return %arg0, %c0_i32 : i32, i32
  }
  func.func @transform_5(%arg0: i32, %arg1: i32) -> (i32, i32) {
    %c0_i32 = arith.constant 0 : i32
    %c0_i32_0 = arith.constant 0 : i32
    return %arg0, %c0_i32 : i32, i32
  }
}

module attributes {stable_mosaic.version = 11 : i64} {
  func.func @_mm_epilogue_kernel(%arg0: i32, %arg1: i32, %arg2: memref<32x384xbf16, #tpu.memory_space<vmem>>, %arg3: memref<384x32xbf16, #tpu.memory_space<vmem>>, %arg4: memref<1x32xf32, #tpu.memory_space<vmem>>, %arg5: memref<1x32xf32, #tpu.memory_space<vmem>>, %arg6: memref<32x32xbf16, #tpu.memory_space<vmem>>, %arg7: memref<32x32xf32, #tpu.memory_space<vmem>>) attributes {dimension_semantics = [#tpu.dimension_semantics<parallel>, #tpu.dimension_semantics<arbitrary>], iteration_bounds = array<i64: 1, 1>, scalar_prefetch = 0 : i64, scratch_operands = 1 : i64, tpu.core_type = #tpu.core_type<tc>, window_params = [{transform_indices = @transform_0, window_bounds = array<i64: 32, 384>}, {transform_indices = @transform_1, window_bounds = array<i64: 384, 32>}, {pipeline_mode = #tpu.pipeline_mode<synchronous>, transform_indices = @transform_2, window_bounds = array<i64: 1, 32>}, {pipeline_mode = #tpu.pipeline_mode<synchronous>, transform_indices = @transform_3, window_bounds = array<i64: 1, 32>}, {transform_indices = @transform_4, window_bounds = array<i64: 32, 32>}]} {
    %c0_i32 = arith.constant 0 : i32
    %0 = arith.cmpi eq, %arg1, %c0_i32 : i32
    %1 = arith.extui %0 : i1 to i32
    %c0_i32_0 = arith.constant 0 : i32
    %2 = arith.cmpi ne, %1, %c0_i32_0 : i32
    scf.if %2 {
      %cst_10 = arith.constant 0.000000e+00 : f32
      %12 = vector.broadcast %cst_10 : f32 to vector<32x32xf32>
      %c0_11 = arith.constant 0 : index
      %c0_12 = arith.constant 0 : index
      %13 = vector.load %arg7[%c0_11, %c0_12] : memref<32x32xf32, #tpu.memory_space<vmem>>, vector<32x32xf32>
      tpu.vector_store %arg7[%c0_11, %c0_12], %12 {strides = array<i32>} : memref<32x32xf32, #tpu.memory_space<vmem>>, vector<32x32xf32>,
    } else {
    }
    %c0 = arith.constant 0 : index
    %c0_1 = arith.constant 0 : index
    %3 = vector.load %arg7[%c0, %c0_1] : memref<32x32xf32, #tpu.memory_space<vmem>>, vector<32x32xf32>
    %c0_2 = arith.constant 0 : index
    %c0_3 = arith.constant 0 : index
    %4 = vector.load %arg2[%c0_2, %c0_3] : memref<32x384xbf16, #tpu.memory_space<vmem>>, vector<32x384xbf16>
    %c0_4 = arith.constant 0 : index
    %c0_5 = arith.constant 0 : index
    %5 = vector.load %arg3[%c0_4, %c0_5] : memref<384x32xbf16, #tpu.memory_space<vmem>>, vector<384x32xbf16>
    %cst = arith.constant dense<0.000000e+00> : vector<32x32xf32>
    %6 = tpu.matmul %4, %5, %cst {dimension_numbers = #tpu.dot_dimension_numbers<[1], [0], [0], [1], [0, 0, 1, 1], [], []>} : vector<32x384xbf16>, vector<384x32xbf16>, vector<32x32xf32> -> vector<32x32xf32>
    %7 = arith.addf %3, %6 : vector<32x32xf32>
    %c0_6 = arith.constant 0 : index
    %c0_7 = arith.constant 0 : index
    %8 = vector.load %arg7[%c0_6, %c0_7] : memref<32x32xf32, #tpu.memory_space<vmem>>, vector<32x32xf32>
    tpu.vector_store %arg7[%c0_6, %c0_7], %7 {strides = array<i32>} : memref<32x32xf32, #tpu.memory_space<vmem>>, vector<32x32xf32>,
    %c0_i32_8 = arith.constant 0 : i32
    %9 = arith.cmpi eq, %arg1, %c0_i32_8 : i32
    %10 = arith.extui %9 : i1 to i32
    %c0_i32_9 = arith.constant 0 : i32
    %11 = arith.cmpi ne, %10, %c0_i32_9 : i32
    scf.if %11 {
      %c0_10 = arith.constant 0 : index
      %c0_11 = arith.constant 0 : index
      %12 = vector.load %arg7[%c0_10, %c0_11] : memref<32x32xf32, #tpu.memory_space<vmem>>, vector<32x32xf32>
      %c0_12 = arith.constant 0 : index
      %c0_13 = arith.constant 0 : index
      %13 = vector.load %arg4[%c0_12, %c0_13] : memref<1x32xf32, #tpu.memory_space<vmem>>, vector<1x32xf32>
      %14 = vector.broadcast %13 : vector<1x32xf32> to vector<32x32xf32>
      %15 = arith.mulf %12, %14 : vector<32x32xf32>
      %c0_14 = arith.constant 0 : index
      %c0_15 = arith.constant 0 : index
      %16 = vector.load %arg5[%c0_14, %c0_15] : memref<1x32xf32, #tpu.memory_space<vmem>>, vector<1x32xf32>
      %17 = vector.broadcast %16 : vector<1x32xf32> to vector<32x32xf32>
      %18 = arith.addf %15, %17 : vector<32x32xf32>
      %cst_16 = arith.constant 0.000000e+00 : f32
      %19 = vector.broadcast %cst_16 : f32 to vector<32x32xf32>
      %20 = arith.maximumf %18, %19 : vector<32x32xf32>
      %21 = arith.truncf %20 : vector<32x32xf32> to vector<32x32xbf16>
      %c0_17 = arith.constant 0 : index
      %c0_18 = arith.constant 0 : index
      %22 = vector.load %arg6[%c0_17, %c0_18] : memref<32x32xbf16, #tpu.memory_space<vmem>>, vector<32x32xbf16>
      tpu.vector_store %arg6[%c0_17, %c0_18], %21 {strides = array<i32>} : memref<32x32xbf16, #tpu.memory_space<vmem>>, vector<32x32xbf16>,
    } else {
    }
    return
  }
  func.func @transform_0(%arg0: i32, %arg1: i32) -> (i32, i32) {
    %c0_i32 = arith.constant 0 : i32
    return %arg0, %arg1 : i32, i32
  }
  func.func @transform_1(%arg0: i32, %arg1: i32) -> (i32, i32) {
    %c0_i32 = arith.constant 0 : i32
    %c0_i32_0 = arith.constant 0 : i32
    return %arg1, %c0_i32 : i32, i32
  }
  func.func @transform_2(%arg0: i32, %arg1: i32) -> (i32, i32) {
    %c0_i32 = arith.constant 0 : i32
    %c0_i32_0 = arith.constant 0 : i32
    %c0_i32_1 = arith.constant 0 : i32
    return %c0_i32, %c0_i32_0 : i32, i32
  }
  func.func @transform_3(%arg0: i32, %arg1: i32) -> (i32, i32) {
    %c0_i32 = arith.constant 0 : i32
    %c0_i32_0 = arith.constant 0 : i32
    %c0_i32_1 = arith.constant 0 : i32
    return %c0_i32, %c0_i32_0 : i32, i32
  }
  func.func @transform_4(%arg0: i32, %arg1: i32) -> (i32, i32) {
    %c0_i32 = arith.constant 0 : i32
    %c0_i32_0 = arith.constant 0 : i32
    return %arg0, %c0_i32 : i32, i32
  }
}

module attributes {stable_mosaic.version = 11 : i64} {
  func.func @_mm_epilogue_kernel(%arg0: i32, %arg1: i32, %arg2: memref<32x384xbf16, #tpu.memory_space<vmem>>, %arg3: memref<384x64xbf16, #tpu.memory_space<vmem>>, %arg4: memref<1x64xf32, #tpu.memory_space<vmem>>, %arg5: memref<1x64xf32, #tpu.memory_space<vmem>>, %arg6: memref<32x64xbf16, #tpu.memory_space<vmem>>, %arg7: memref<32x64xf32, #tpu.memory_space<vmem>>) attributes {dimension_semantics = [#tpu.dimension_semantics<parallel>, #tpu.dimension_semantics<arbitrary>], iteration_bounds = array<i64: 1, 1>, scalar_prefetch = 0 : i64, scratch_operands = 1 : i64, tpu.core_type = #tpu.core_type<tc>, window_params = [{transform_indices = @transform_0, window_bounds = array<i64: 32, 384>}, {transform_indices = @transform_1, window_bounds = array<i64: 384, 64>}, {pipeline_mode = #tpu.pipeline_mode<synchronous>, transform_indices = @transform_2, window_bounds = array<i64: 1, 64>}, {pipeline_mode = #tpu.pipeline_mode<synchronous>, transform_indices = @transform_3, window_bounds = array<i64: 1, 64>}, {transform_indices = @transform_4, window_bounds = array<i64: 32, 64>}]} {
    %c0_i32 = arith.constant 0 : i32
    %0 = arith.cmpi eq, %arg1, %c0_i32 : i32
    %1 = arith.extui %0 : i1 to i32
    %c0_i32_0 = arith.constant 0 : i32
    %2 = arith.cmpi ne, %1, %c0_i32_0 : i32
    scf.if %2 {
      %cst_10 = arith.constant 0.000000e+00 : f32
      %12 = vector.broadcast %cst_10 : f32 to vector<32x64xf32>
      %c0_11 = arith.constant 0 : index
      %c0_12 = arith.constant 0 : index
      %13 = vector.load %arg7[%c0_11, %c0_12] : memref<32x64xf32, #tpu.memory_space<vmem>>, vector<32x64xf32>
      tpu.vector_store %arg7[%c0_11, %c0_12], %12 {strides = array<i32>} : memref<32x64xf32, #tpu.memory_space<vmem>>, vector<32x64xf32>,
    } else {
    }
    %c0 = arith.constant 0 : index
    %c0_1 = arith.constant 0 : index
    %3 = vector.load %arg7[%c0, %c0_1] : memref<32x64xf32, #tpu.memory_space<vmem>>, vector<32x64xf32>
    %c0_2 = arith.constant 0 : index
    %c0_3 = arith.constant 0 : index
    %4 = vector.load %arg2[%c0_2, %c0_3] : memref<32x384xbf16, #tpu.memory_space<vmem>>, vector<32x384xbf16>
    %c0_4 = arith.constant 0 : index
    %c0_5 = arith.constant 0 : index
    %5 = vector.load %arg3[%c0_4, %c0_5] : memref<384x64xbf16, #tpu.memory_space<vmem>>, vector<384x64xbf16>
    %cst = arith.constant dense<0.000000e+00> : vector<32x64xf32>
    %6 = tpu.matmul %4, %5, %cst {dimension_numbers = #tpu.dot_dimension_numbers<[1], [0], [0], [1], [0, 0, 1, 1], [], []>} : vector<32x384xbf16>, vector<384x64xbf16>, vector<32x64xf32> -> vector<32x64xf32>
    %7 = arith.addf %3, %6 : vector<32x64xf32>
    %c0_6 = arith.constant 0 : index
    %c0_7 = arith.constant 0 : index
    %8 = vector.load %arg7[%c0_6, %c0_7] : memref<32x64xf32, #tpu.memory_space<vmem>>, vector<32x64xf32>
    tpu.vector_store %arg7[%c0_6, %c0_7], %7 {strides = array<i32>} : memref<32x64xf32, #tpu.memory_space<vmem>>, vector<32x64xf32>,
    %c0_i32_8 = arith.constant 0 : i32
    %9 = arith.cmpi eq, %arg1, %c0_i32_8 : i32
    %10 = arith.extui %9 : i1 to i32
    %c0_i32_9 = arith.constant 0 : i32
    %11 = arith.cmpi ne, %10, %c0_i32_9 : i32
    scf.if %11 {
      %c0_10 = arith.constant 0 : index
      %c0_11 = arith.constant 0 : index
      %12 = vector.load %arg7[%c0_10, %c0_11] : memref<32x64xf32, #tpu.memory_space<vmem>>, vector<32x64xf32>
      %c0_12 = arith.constant 0 : index
      %c0_13 = arith.constant 0 : index
      %13 = vector.load %arg4[%c0_12, %c0_13] : memref<1x64xf32, #tpu.memory_space<vmem>>, vector<1x64xf32>
      %14 = vector.broadcast %13 : vector<1x64xf32> to vector<32x64xf32>
      %15 = arith.mulf %12, %14 : vector<32x64xf32>
      %c0_14 = arith.constant 0 : index
      %c0_15 = arith.constant 0 : index
      %16 = vector.load %arg5[%c0_14, %c0_15] : memref<1x64xf32, #tpu.memory_space<vmem>>, vector<1x64xf32>
      %17 = vector.broadcast %16 : vector<1x64xf32> to vector<32x64xf32>
      %18 = arith.addf %15, %17 : vector<32x64xf32>
      %cst_16 = arith.constant 0.000000e+00 : f32
      %19 = vector.broadcast %cst_16 : f32 to vector<32x64xf32>
      %20 = arith.maximumf %18, %19 : vector<32x64xf32>
      %21 = arith.truncf %20 : vector<32x64xf32> to vector<32x64xbf16>
      %c0_17 = arith.constant 0 : index
      %c0_18 = arith.constant 0 : index
      %22 = vector.load %arg6[%c0_17, %c0_18] : memref<32x64xbf16, #tpu.memory_space<vmem>>, vector<32x64xbf16>
      tpu.vector_store %arg6[%c0_17, %c0_18], %21 {strides = array<i32>} : memref<32x64xbf16, #tpu.memory_space<vmem>>, vector<32x64xbf16>,
    } else {
    }
    return
  }
  func.func @transform_0(%arg0: i32, %arg1: i32) -> (i32, i32) {
    %c0_i32 = arith.constant 0 : i32
    return %arg0, %arg1 : i32, i32
  }
  func.func @transform_1(%arg0: i32, %arg1: i32) -> (i32, i32) {
    %c0_i32 = arith.constant 0 : i32
    %c0_i32_0 = arith.constant 0 : i32
    return %arg1, %c0_i32 : i32, i32
  }
  func.func @transform_2(%arg0: i32, %arg1: i32) -> (i32, i32) {
    %c0_i32 = arith.constant 0 : i32
    %c0_i32_0 = arith.constant 0 : i32
    %c0_i32_1 = arith.constant 0 : i32
    return %c0_i32, %c0_i32_0 : i32, i32
  }
  func.func @transform_3(%arg0: i32, %arg1: i32) -> (i32, i32) {
    %c0_i32 = arith.constant 0 : i32
    %c0_i32_0 = arith.constant 0 : i32
    %c0_i32_1 = arith.constant 0 : i32
    return %c0_i32, %c0_i32_0 : i32, i32
  }
  func.func @transform_4(%arg0: i32, %arg1: i32) -> (i32, i32) {
    %c0_i32 = arith.constant 0 : i32
    %c0_i32_0 = arith.constant 0 : i32
    return %arg0, %c0_i32 : i32, i32
  }
}

module attributes {stable_mosaic.version = 11 : i64} {
  func.func @_mm_res_epilogue_kernel(%arg0: i32, %arg1: i32, %arg2: memref<8x640xbf16, #tpu.memory_space<vmem>>, %arg3: memref<640x64xbf16, #tpu.memory_space<vmem>>, %arg4: memref<1x64xf32, #tpu.memory_space<vmem>>, %arg5: memref<1x64xf32, #tpu.memory_space<vmem>>, %arg6: memref<8x64xbf16, #tpu.memory_space<vmem>>, %arg7: memref<8x64xbf16, #tpu.memory_space<vmem>>, %arg8: memref<8x64xf32, #tpu.memory_space<vmem>>) attributes {dimension_semantics = [#tpu.dimension_semantics<parallel>, #tpu.dimension_semantics<arbitrary>], iteration_bounds = array<i64: 1, 1>, scalar_prefetch = 0 : i64, scratch_operands = 1 : i64, tpu.core_type = #tpu.core_type<tc>, window_params = [{transform_indices = @transform_0, window_bounds = array<i64: 8, 640>}, {transform_indices = @transform_1, window_bounds = array<i64: 640, 64>}, {pipeline_mode = #tpu.pipeline_mode<synchronous>, transform_indices = @transform_2, window_bounds = array<i64: 1, 64>}, {pipeline_mode = #tpu.pipeline_mode<synchronous>, transform_indices = @transform_3, window_bounds = array<i64: 1, 64>}, {transform_indices = @transform_4, window_bounds = array<i64: 8, 64>}, {transform_indices = @transform_5, window_bounds = array<i64: 8, 64>}]} {
    %c0_i32 = arith.constant 0 : i32
    %0 = arith.cmpi eq, %arg1, %c0_i32 : i32
    %1 = arith.extui %0 : i1 to i32
    %c0_i32_0 = arith.constant 0 : i32
    %2 = arith.cmpi ne, %1, %c0_i32_0 : i32
    scf.if %2 {
      %cst_10 = arith.constant 0.000000e+00 : f32
      %12 = vector.broadcast %cst_10 : f32 to vector<8x64xf32>
      %c0_11 = arith.constant 0 : index
      %c0_12 = arith.constant 0 : index
      %13 = vector.load %arg8[%c0_11, %c0_12] : memref<8x64xf32, #tpu.memory_space<vmem>>, vector<8x64xf32>
      tpu.vector_store %arg8[%c0_11, %c0_12], %12 {strides = array<i32>} : memref<8x64xf32, #tpu.memory_space<vmem>>, vector<8x64xf32>,
    } else {
    }
    %c0 = arith.constant 0 : index
    %c0_1 = arith.constant 0 : index
    %3 = vector.load %arg8[%c0, %c0_1] : memref<8x64xf32, #tpu.memory_space<vmem>>, vector<8x64xf32>
    %c0_2 = arith.constant 0 : index
    %c0_3 = arith.constant 0 : index
    %4 = vector.load %arg2[%c0_2, %c0_3] : memref<8x640xbf16, #tpu.memory_space<vmem>>, vector<8x640xbf16>
    %c0_4 = arith.constant 0 : index
    %c0_5 = arith.constant 0 : index
    %5 = vector.load %arg3[%c0_4, %c0_5] : memref<640x64xbf16, #tpu.memory_space<vmem>>, vector<640x64xbf16>
    %cst = arith.constant dense<0.000000e+00> : vector<8x64xf32>
    %6 = tpu.matmul %4, %5, %cst {dimension_numbers = #tpu.dot_dimension_numbers<[1], [0], [0], [1], [0, 0, 1, 1], [], []>} : vector<8x640xbf16>, vector<640x64xbf16>, vector<8x64xf32> -> vector<8x64xf32>
    %7 = arith.addf %3, %6 : vector<8x64xf32>
    %c0_6 = arith.constant 0 : index
    %c0_7 = arith.constant 0 : index
    %8 = vector.load %arg8[%c0_6, %c0_7] : memref<8x64xf32, #tpu.memory_space<vmem>>, vector<8x64xf32>
    tpu.vector_store %arg8[%c0_6, %c0_7], %7 {strides = array<i32>} : memref<8x64xf32, #tpu.memory_space<vmem>>, vector<8x64xf32>,
    %c0_i32_8 = arith.constant 0 : i32
    %9 = arith.cmpi eq, %arg1, %c0_i32_8 : i32
    %10 = arith.extui %9 : i1 to i32
    %c0_i32_9 = arith.constant 0 : i32
    %11 = arith.cmpi ne, %10, %c0_i32_9 : i32
    scf.if %11 {
      %c0_10 = arith.constant 0 : index
      %c0_11 = arith.constant 0 : index
      %12 = vector.load %arg8[%c0_10, %c0_11] : memref<8x64xf32, #tpu.memory_space<vmem>>, vector<8x64xf32>
      %c0_12 = arith.constant 0 : index
      %c0_13 = arith.constant 0 : index
      %13 = vector.load %arg6[%c0_12, %c0_13] : memref<8x64xbf16, #tpu.memory_space<vmem>>, vector<8x64xbf16>
      %14 = arith.extf %13 : vector<8x64xbf16> to vector<8x64xf32>
      %15 = arith.addf %12, %14 : vector<8x64xf32>
      %c0_14 = arith.constant 0 : index
      %c0_15 = arith.constant 0 : index
      %16 = vector.load %arg4[%c0_14, %c0_15] : memref<1x64xf32, #tpu.memory_space<vmem>>, vector<1x64xf32>
      %17 = vector.broadcast %16 : vector<1x64xf32> to vector<8x64xf32>
      %18 = arith.mulf %15, %17 : vector<8x64xf32>
      %c0_16 = arith.constant 0 : index
      %c0_17 = arith.constant 0 : index
      %19 = vector.load %arg5[%c0_16, %c0_17] : memref<1x64xf32, #tpu.memory_space<vmem>>, vector<1x64xf32>
      %20 = vector.broadcast %19 : vector<1x64xf32> to vector<8x64xf32>
      %21 = arith.addf %18, %20 : vector<8x64xf32>
      %cst_18 = arith.constant 0.000000e+00 : f32
      %22 = vector.broadcast %cst_18 : f32 to vector<8x64xf32>
      %23 = arith.maximumf %21, %22 : vector<8x64xf32>
      %24 = arith.truncf %23 : vector<8x64xf32> to vector<8x64xbf16>
      %c0_19 = arith.constant 0 : index
      %c0_20 = arith.constant 0 : index
      %25 = vector.load %arg7[%c0_19, %c0_20] : memref<8x64xbf16, #tpu.memory_space<vmem>>, vector<8x64xbf16>
      tpu.vector_store %arg7[%c0_19, %c0_20], %24 {strides = array<i32>} : memref<8x64xbf16, #tpu.memory_space<vmem>>, vector<8x64xbf16>,
    } else {
    }
    return
  }
  func.func @transform_0(%arg0: i32, %arg1: i32) -> (i32, i32) {
    %c0_i32 = arith.constant 0 : i32
    return %arg0, %arg1 : i32, i32
  }
  func.func @transform_1(%arg0: i32, %arg1: i32) -> (i32, i32) {
    %c0_i32 = arith.constant 0 : i32
    %c0_i32_0 = arith.constant 0 : i32
    return %arg1, %c0_i32 : i32, i32
  }
  func.func @transform_2(%arg0: i32, %arg1: i32) -> (i32, i32) {
    %c0_i32 = arith.constant 0 : i32
    %c0_i32_0 = arith.constant 0 : i32
    %c0_i32_1 = arith.constant 0 : i32
    return %c0_i32, %c0_i32_0 : i32, i32
  }
  func.func @transform_3(%arg0: i32, %arg1: i32) -> (i32, i32) {
    %c0_i32 = arith.constant 0 : i32
    %c0_i32_0 = arith.constant 0 : i32
    %c0_i32_1 = arith.constant 0 : i32
    return %c0_i32, %c0_i32_0 : i32, i32
  }
  func.func @transform_4(%arg0: i32, %arg1: i32) -> (i32, i32) {
    %c0_i32 = arith.constant 0 : i32
    %c0_i32_0 = arith.constant 0 : i32
    return %arg0, %c0_i32 : i32, i32
  }
  func.func @transform_5(%arg0: i32, %arg1: i32) -> (i32, i32) {
    %c0_i32 = arith.constant 0 : i32
    %c0_i32_0 = arith.constant 0 : i32
    return %arg0, %c0_i32 : i32, i32
  }
}

module attributes {stable_mosaic.version = 11 : i64} {
  func.func @_mm_epilogue_kernel(%arg0: i32, %arg1: i32, %arg2: memref<8x128xbf16, #tpu.memory_space<vmem>>, %arg3: memref<128x64xbf16, #tpu.memory_space<vmem>>, %arg4: memref<1x64xf32, #tpu.memory_space<vmem>>, %arg5: memref<1x64xf32, #tpu.memory_space<vmem>>, %arg6: memref<8x64xbf16, #tpu.memory_space<vmem>>, %arg7: memref<8x64xf32, #tpu.memory_space<vmem>>) attributes {dimension_semantics = [#tpu.dimension_semantics<parallel>, #tpu.dimension_semantics<arbitrary>], iteration_bounds = array<i64: 1, 1>, scalar_prefetch = 0 : i64, scratch_operands = 1 : i64, tpu.core_type = #tpu.core_type<tc>, window_params = [{transform_indices = @transform_0, window_bounds = array<i64: 8, 128>}, {transform_indices = @transform_1, window_bounds = array<i64: 128, 64>}, {pipeline_mode = #tpu.pipeline_mode<synchronous>, transform_indices = @transform_2, window_bounds = array<i64: 1, 64>}, {pipeline_mode = #tpu.pipeline_mode<synchronous>, transform_indices = @transform_3, window_bounds = array<i64: 1, 64>}, {transform_indices = @transform_4, window_bounds = array<i64: 8, 64>}]} {
    %c0_i32 = arith.constant 0 : i32
    %0 = arith.cmpi eq, %arg1, %c0_i32 : i32
    %1 = arith.extui %0 : i1 to i32
    %c0_i32_0 = arith.constant 0 : i32
    %2 = arith.cmpi ne, %1, %c0_i32_0 : i32
    scf.if %2 {
      %cst_10 = arith.constant 0.000000e+00 : f32
      %12 = vector.broadcast %cst_10 : f32 to vector<8x64xf32>
      %c0_11 = arith.constant 0 : index
      %c0_12 = arith.constant 0 : index
      %13 = vector.load %arg7[%c0_11, %c0_12] : memref<8x64xf32, #tpu.memory_space<vmem>>, vector<8x64xf32>
      tpu.vector_store %arg7[%c0_11, %c0_12], %12 {strides = array<i32>} : memref<8x64xf32, #tpu.memory_space<vmem>>, vector<8x64xf32>,
    } else {
    }
    %c0 = arith.constant 0 : index
    %c0_1 = arith.constant 0 : index
    %3 = vector.load %arg7[%c0, %c0_1] : memref<8x64xf32, #tpu.memory_space<vmem>>, vector<8x64xf32>
    %c0_2 = arith.constant 0 : index
    %c0_3 = arith.constant 0 : index
    %4 = vector.load %arg2[%c0_2, %c0_3] : memref<8x128xbf16, #tpu.memory_space<vmem>>, vector<8x128xbf16>
    %c0_4 = arith.constant 0 : index
    %c0_5 = arith.constant 0 : index
    %5 = vector.load %arg3[%c0_4, %c0_5] : memref<128x64xbf16, #tpu.memory_space<vmem>>, vector<128x64xbf16>
    %cst = arith.constant dense<0.000000e+00> : vector<8x64xf32>
    %6 = tpu.matmul %4, %5, %cst {dimension_numbers = #tpu.dot_dimension_numbers<[1], [0], [0], [1], [0, 0, 1, 1], [], []>} : vector<8x128xbf16>, vector<128x64xbf16>, vector<8x64xf32> -> vector<8x64xf32>
    %7 = arith.addf %3, %6 : vector<8x64xf32>
    %c0_6 = arith.constant 0 : index
    %c0_7 = arith.constant 0 : index
    %8 = vector.load %arg7[%c0_6, %c0_7] : memref<8x64xf32, #tpu.memory_space<vmem>>, vector<8x64xf32>
    tpu.vector_store %arg7[%c0_6, %c0_7], %7 {strides = array<i32>} : memref<8x64xf32, #tpu.memory_space<vmem>>, vector<8x64xf32>,
    %c0_i32_8 = arith.constant 0 : i32
    %9 = arith.cmpi eq, %arg1, %c0_i32_8 : i32
    %10 = arith.extui %9 : i1 to i32
    %c0_i32_9 = arith.constant 0 : i32
    %11 = arith.cmpi ne, %10, %c0_i32_9 : i32
    scf.if %11 {
      %c0_10 = arith.constant 0 : index
      %c0_11 = arith.constant 0 : index
      %12 = vector.load %arg7[%c0_10, %c0_11] : memref<8x64xf32, #tpu.memory_space<vmem>>, vector<8x64xf32>
      %c0_12 = arith.constant 0 : index
      %c0_13 = arith.constant 0 : index
      %13 = vector.load %arg4[%c0_12, %c0_13] : memref<1x64xf32, #tpu.memory_space<vmem>>, vector<1x64xf32>
      %14 = vector.broadcast %13 : vector<1x64xf32> to vector<8x64xf32>
      %15 = arith.mulf %12, %14 : vector<8x64xf32>
      %c0_14 = arith.constant 0 : index
      %c0_15 = arith.constant 0 : index
      %16 = vector.load %arg5[%c0_14, %c0_15] : memref<1x64xf32, #tpu.memory_space<vmem>>, vector<1x64xf32>
      %17 = vector.broadcast %16 : vector<1x64xf32> to vector<8x64xf32>
      %18 = arith.addf %15, %17 : vector<8x64xf32>
      %19 = arith.truncf %18 : vector<8x64xf32> to vector<8x64xbf16>
      %c0_16 = arith.constant 0 : index
      %c0_17 = arith.constant 0 : index
      %20 = vector.load %arg6[%c0_16, %c0_17] : memref<8x64xbf16, #tpu.memory_space<vmem>>, vector<8x64xbf16>
      tpu.vector_store %arg6[%c0_16, %c0_17], %19 {strides = array<i32>} : memref<8x64xbf16, #tpu.memory_space<vmem>>, vector<8x64xbf16>,
    } else {
    }
    return
  }
  func.func @transform_0(%arg0: i32, %arg1: i32) -> (i32, i32) {
    %c0_i32 = arith.constant 0 : i32
    return %arg0, %arg1 : i32, i32
  }
  func.func @transform_1(%arg0: i32, %arg1: i32) -> (i32, i32) {
    %c0_i32 = arith.constant 0 : i32
    %c0_i32_0 = arith.constant 0 : i32
    return %arg1, %c0_i32 : i32, i32
  }
  func.func @transform_2(%arg0: i32, %arg1: i32) -> (i32, i32) {
    %c0_i32 = arith.constant 0 : i32
    %c0_i32_0 = arith.constant 0 : i32
    %c0_i32_1 = arith.constant 0 : i32
    return %c0_i32, %c0_i32_0 : i32, i32
  }
  func.func @transform_3(%arg0: i32, %arg1: i32) -> (i32, i32) {
    %c0_i32 = arith.constant 0 : i32
    %c0_i32_0 = arith.constant 0 : i32
    %c0_i32_1 = arith.constant 0 : i32
    return %c0_i32, %c0_i32_0 : i32, i32
  }
  func.func @transform_4(%arg0: i32, %arg1: i32) -> (i32, i32) {
    %c0_i32 = arith.constant 0 : i32
    %c0_i32_0 = arith.constant 0 : i32
    return %arg0, %c0_i32 : i32, i32
  }
}

module attributes {stable_mosaic.version = 11 : i64} {
  func.func @_mm_epilogue_kernel(%arg0: i32, %arg1: i32, %arg2: memref<8x640xbf16, #tpu.memory_space<vmem>>, %arg3: memref<640x128xbf16, #tpu.memory_space<vmem>>, %arg4: memref<1x128xf32, #tpu.memory_space<vmem>>, %arg5: memref<1x128xf32, #tpu.memory_space<vmem>>, %arg6: memref<8x128xbf16, #tpu.memory_space<vmem>>, %arg7: memref<8x128xf32, #tpu.memory_space<vmem>>) attributes {dimension_semantics = [#tpu.dimension_semantics<parallel>, #tpu.dimension_semantics<arbitrary>], iteration_bounds = array<i64: 1, 1>, scalar_prefetch = 0 : i64, scratch_operands = 1 : i64, tpu.core_type = #tpu.core_type<tc>, window_params = [{transform_indices = @transform_0, window_bounds = array<i64: 8, 640>}, {transform_indices = @transform_1, window_bounds = array<i64: 640, 128>}, {pipeline_mode = #tpu.pipeline_mode<synchronous>, transform_indices = @transform_2, window_bounds = array<i64: 1, 128>}, {pipeline_mode = #tpu.pipeline_mode<synchronous>, transform_indices = @transform_3, window_bounds = array<i64: 1, 128>}, {transform_indices = @transform_4, window_bounds = array<i64: 8, 128>}]} {
    %c0_i32 = arith.constant 0 : i32
    %0 = arith.cmpi eq, %arg1, %c0_i32 : i32
    %1 = arith.extui %0 : i1 to i32
    %c0_i32_0 = arith.constant 0 : i32
    %2 = arith.cmpi ne, %1, %c0_i32_0 : i32
    scf.if %2 {
      %cst_10 = arith.constant 0.000000e+00 : f32
      %12 = vector.broadcast %cst_10 : f32 to vector<8x128xf32>
      %c0_11 = arith.constant 0 : index
      %c0_12 = arith.constant 0 : index
      %13 = vector.load %arg7[%c0_11, %c0_12] : memref<8x128xf32, #tpu.memory_space<vmem>>, vector<8x128xf32>
      tpu.vector_store %arg7[%c0_11, %c0_12], %12 {strides = array<i32>} : memref<8x128xf32, #tpu.memory_space<vmem>>, vector<8x128xf32>,
    } else {
    }
    %c0 = arith.constant 0 : index
    %c0_1 = arith.constant 0 : index
    %3 = vector.load %arg7[%c0, %c0_1] : memref<8x128xf32, #tpu.memory_space<vmem>>, vector<8x128xf32>
    %c0_2 = arith.constant 0 : index
    %c0_3 = arith.constant 0 : index
    %4 = vector.load %arg2[%c0_2, %c0_3] : memref<8x640xbf16, #tpu.memory_space<vmem>>, vector<8x640xbf16>
    %c0_4 = arith.constant 0 : index
    %c0_5 = arith.constant 0 : index
    %5 = vector.load %arg3[%c0_4, %c0_5] : memref<640x128xbf16, #tpu.memory_space<vmem>>, vector<640x128xbf16>
    %cst = arith.constant dense<0.000000e+00> : vector<8x128xf32>
    %6 = tpu.matmul %4, %5, %cst {dimension_numbers = #tpu.dot_dimension_numbers<[1], [0], [0], [1], [0, 0, 1, 1], [], []>} : vector<8x640xbf16>, vector<640x128xbf16>, vector<8x128xf32> -> vector<8x128xf32>
    %7 = arith.addf %3, %6 : vector<8x128xf32>
    %c0_6 = arith.constant 0 : index
    %c0_7 = arith.constant 0 : index
    %8 = vector.load %arg7[%c0_6, %c0_7] : memref<8x128xf32, #tpu.memory_space<vmem>>, vector<8x128xf32>
    tpu.vector_store %arg7[%c0_6, %c0_7], %7 {strides = array<i32>} : memref<8x128xf32, #tpu.memory_space<vmem>>, vector<8x128xf32>,
    %c0_i32_8 = arith.constant 0 : i32
    %9 = arith.cmpi eq, %arg1, %c0_i32_8 : i32
    %10 = arith.extui %9 : i1 to i32
    %c0_i32_9 = arith.constant 0 : i32
    %11 = arith.cmpi ne, %10, %c0_i32_9 : i32
    scf.if %11 {
      %c0_10 = arith.constant 0 : index
      %c0_11 = arith.constant 0 : index
      %12 = vector.load %arg7[%c0_10, %c0_11] : memref<8x128xf32, #tpu.memory_space<vmem>>, vector<8x128xf32>
      %c0_12 = arith.constant 0 : index
      %c0_13 = arith.constant 0 : index
      %13 = vector.load %arg4[%c0_12, %c0_13] : memref<1x128xf32, #tpu.memory_space<vmem>>, vector<1x128xf32>
      %14 = vector.broadcast %13 : vector<1x128xf32> to vector<8x128xf32>
      %15 = arith.mulf %12, %14 : vector<8x128xf32>
      %c0_14 = arith.constant 0 : index
      %c0_15 = arith.constant 0 : index
      %16 = vector.load %arg5[%c0_14, %c0_15] : memref<1x128xf32, #tpu.memory_space<vmem>>, vector<1x128xf32>
      %17 = vector.broadcast %16 : vector<1x128xf32> to vector<8x128xf32>
      %18 = arith.addf %15, %17 : vector<8x128xf32>
      %cst_16 = arith.constant 0.000000e+00 : f32
      %19 = vector.broadcast %cst_16 : f32 to vector<8x128xf32>
      %20 = arith.maximumf %18, %19 : vector<8x128xf32>
      %21 = arith.truncf %20 : vector<8x128xf32> to vector<8x128xbf16>
      %c0_17 = arith.constant 0 : index
      %c0_18 = arith.constant 0 : index
      %22 = vector.load %arg6[%c0_17, %c0_18] : memref<8x128xbf16, #tpu.memory_space<vmem>>, vector<8x128xbf16>
      tpu.vector_store %arg6[%c0_17, %c0_18], %21 {strides = array<i32>} : memref<8x128xbf16, #tpu.memory_space<vmem>>, vector<8x128xbf16>,
    } else {
    }
    return
  }
  func.func @transform_0(%arg0: i32, %arg1: i32) -> (i32, i32) {
    %c0_i32 = arith.constant 0 : i32
    return %arg0, %arg1 : i32, i32
  }
  func.func @transform_1(%arg0: i32, %arg1: i32) -> (i32, i32) {
    %c0_i32 = arith.constant 0 : i32
    %c0_i32_0 = arith.constant 0 : i32
    return %arg1, %c0_i32 : i32, i32
  }
  func.func @transform_2(%arg0: i32, %arg1: i32) -> (i32, i32) {
    %c0_i32 = arith.constant 0 : i32
    %c0_i32_0 = arith.constant 0 : i32
    %c0_i32_1 = arith.constant 0 : i32
    return %c0_i32, %c0_i32_0 : i32, i32
  }
  func.func @transform_3(%arg0: i32, %arg1: i32) -> (i32, i32) {
    %c0_i32 = arith.constant 0 : i32
    %c0_i32_0 = arith.constant 0 : i32
    %c0_i32_1 = arith.constant 0 : i32
    return %c0_i32, %c0_i32_0 : i32, i32
  }
  func.func @transform_4(%arg0: i32, %arg1: i32) -> (i32, i32) {
    %c0_i32 = arith.constant 0 : i32
    %c0_i32_0 = arith.constant 0 : i32
    return %arg0, %c0_i32 : i32, i32
  }
}

module attributes {stable_mosaic.version = 11 : i64} {
  func.func @_mm_epilogue_kernel(%arg0: i32, %arg1: i32, %arg2: memref<8x128xbf16, #tpu.memory_space<vmem>>, %arg3: memref<128x128xbf16, #tpu.memory_space<vmem>>, %arg4: memref<1x128xf32, #tpu.memory_space<vmem>>, %arg5: memref<1x128xf32, #tpu.memory_space<vmem>>, %arg6: memref<8x128xbf16, #tpu.memory_space<vmem>>, %arg7: memref<8x128xf32, #tpu.memory_space<vmem>>) attributes {dimension_semantics = [#tpu.dimension_semantics<parallel>, #tpu.dimension_semantics<arbitrary>], iteration_bounds = array<i64: 1, 1>, scalar_prefetch = 0 : i64, scratch_operands = 1 : i64, tpu.core_type = #tpu.core_type<tc>, window_params = [{transform_indices = @transform_0, window_bounds = array<i64: 8, 128>}, {transform_indices = @transform_1, window_bounds = array<i64: 128, 128>}, {pipeline_mode = #tpu.pipeline_mode<synchronous>, transform_indices = @transform_2, window_bounds = array<i64: 1, 128>}, {pipeline_mode = #tpu.pipeline_mode<synchronous>, transform_indices = @transform_3, window_bounds = array<i64: 1, 128>}, {transform_indices = @transform_4, window_bounds = array<i64: 8, 128>}]} {
    %c0_i32 = arith.constant 0 : i32
    %0 = arith.cmpi eq, %arg1, %c0_i32 : i32
    %1 = arith.extui %0 : i1 to i32
    %c0_i32_0 = arith.constant 0 : i32
    %2 = arith.cmpi ne, %1, %c0_i32_0 : i32
    scf.if %2 {
      %cst_10 = arith.constant 0.000000e+00 : f32
      %12 = vector.broadcast %cst_10 : f32 to vector<8x128xf32>
      %c0_11 = arith.constant 0 : index
      %c0_12 = arith.constant 0 : index
      %13 = vector.load %arg7[%c0_11, %c0_12] : memref<8x128xf32, #tpu.memory_space<vmem>>, vector<8x128xf32>
      tpu.vector_store %arg7[%c0_11, %c0_12], %12 {strides = array<i32>} : memref<8x128xf32, #tpu.memory_space<vmem>>, vector<8x128xf32>,
    } else {
    }
    %c0 = arith.constant 0 : index
    %c0_1 = arith.constant 0 : index
    %3 = vector.load %arg7[%c0, %c0_1] : memref<8x128xf32, #tpu.memory_space<vmem>>, vector<8x128xf32>
    %c0_2 = arith.constant 0 : index
    %c0_3 = arith.constant 0 : index
    %4 = vector.load %arg2[%c0_2, %c0_3] : memref<8x128xbf16, #tpu.memory_space<vmem>>, vector<8x128xbf16>
    %c0_4 = arith.constant 0 : index
    %c0_5 = arith.constant 0 : index
    %5 = vector.load %arg3[%c0_4, %c0_5] : memref<128x128xbf16, #tpu.memory_space<vmem>>, vector<128x128xbf16>
    %cst = arith.constant dense<0.000000e+00> : vector<8x128xf32>
    %6 = tpu.matmul %4, %5, %cst {dimension_numbers = #tpu.dot_dimension_numbers<[1], [0], [0], [1], [0, 0, 1, 1], [], []>} : vector<8x128xbf16>, vector<128x128xbf16>, vector<8x128xf32> -> vector<8x128xf32>
    %7 = arith.addf %3, %6 : vector<8x128xf32>
    %c0_6 = arith.constant 0 : index
    %c0_7 = arith.constant 0 : index
    %8 = vector.load %arg7[%c0_6, %c0_7] : memref<8x128xf32, #tpu.memory_space<vmem>>, vector<8x128xf32>
    tpu.vector_store %arg7[%c0_6, %c0_7], %7 {strides = array<i32>} : memref<8x128xf32, #tpu.memory_space<vmem>>, vector<8x128xf32>,
    %c0_i32_8 = arith.constant 0 : i32
    %9 = arith.cmpi eq, %arg1, %c0_i32_8 : i32
    %10 = arith.extui %9 : i1 to i32
    %c0_i32_9 = arith.constant 0 : i32
    %11 = arith.cmpi ne, %10, %c0_i32_9 : i32
    scf.if %11 {
      %c0_10 = arith.constant 0 : index
      %c0_11 = arith.constant 0 : index
      %12 = vector.load %arg7[%c0_10, %c0_11] : memref<8x128xf32, #tpu.memory_space<vmem>>, vector<8x128xf32>
      %c0_12 = arith.constant 0 : index
      %c0_13 = arith.constant 0 : index
      %13 = vector.load %arg4[%c0_12, %c0_13] : memref<1x128xf32, #tpu.memory_space<vmem>>, vector<1x128xf32>
      %14 = vector.broadcast %13 : vector<1x128xf32> to vector<8x128xf32>
      %15 = arith.mulf %12, %14 : vector<8x128xf32>
      %c0_14 = arith.constant 0 : index
      %c0_15 = arith.constant 0 : index
      %16 = vector.load %arg5[%c0_14, %c0_15] : memref<1x128xf32, #tpu.memory_space<vmem>>, vector<1x128xf32>
      %17 = vector.broadcast %16 : vector<1x128xf32> to vector<8x128xf32>
      %18 = arith.addf %15, %17 : vector<8x128xf32>
      %19 = arith.truncf %18 : vector<8x128xf32> to vector<8x128xbf16>
      %c0_16 = arith.constant 0 : index
      %c0_17 = arith.constant 0 : index
      %20 = vector.load %arg6[%c0_16, %c0_17] : memref<8x128xbf16, #tpu.memory_space<vmem>>, vector<8x128xbf16>
      tpu.vector_store %arg6[%c0_16, %c0_17], %19 {strides = array<i32>} : memref<8x128xbf16, #tpu.memory_space<vmem>>, vector<8x128xbf16>,
    } else {
    }
    return
  }
  func.func @transform_0(%arg0: i32, %arg1: i32) -> (i32, i32) {
    %c0_i32 = arith.constant 0 : i32
    return %arg0, %arg1 : i32, i32
  }
  func.func @transform_1(%arg0: i32, %arg1: i32) -> (i32, i32) {
    %c0_i32 = arith.constant 0 : i32
    %c0_i32_0 = arith.constant 0 : i32
    return %arg1, %c0_i32 : i32, i32
  }
  func.func @transform_2(%arg0: i32, %arg1: i32) -> (i32, i32) {
    %c0_i32 = arith.constant 0 : i32
    %c0_i32_0 = arith.constant 0 : i32
    %c0_i32_1 = arith.constant 0 : i32
    return %c0_i32, %c0_i32_0 : i32, i32
  }
  func.func @transform_3(%arg0: i32, %arg1: i32) -> (i32, i32) {
    %c0_i32 = arith.constant 0 : i32
    %c0_i32_0 = arith.constant 0 : i32
    %c0_i32_1 = arith.constant 0 : i32
    return %c0_i32, %c0_i32_0 : i32, i32
  }
  func.func @transform_4(%arg0: i32, %arg1: i32) -> (i32, i32) {
    %c0_i32 = arith.constant 0 : i32
    %c0_i32_0 = arith.constant 0 : i32
    return %arg0, %c0_i32 : i32, i32
  }
}

module attributes {stable_mosaic.version = 11 : i64} {
  func.func @_gap_kernel(%arg0: i32, %arg1: memref<2x1x128xbf16, #tpu.memory_space<vmem>>, %arg2: memref<2x128xf32, #tpu.memory_space<vmem>>) attributes {dimension_semantics = [#tpu.dimension_semantics<arbitrary>], iteration_bounds = array<i64: 1>, scalar_prefetch = 0 : i64, scratch_operands = 0 : i64, tpu.core_type = #tpu.core_type<tc>, window_params = [{pipeline_mode = #tpu.pipeline_mode<synchronous>, transform_indices = @transform_0, window_bounds = array<i64: 2, 1, 128>}, {pipeline_mode = #tpu.pipeline_mode<synchronous>, transform_indices = @transform_1, window_bounds = array<i64: 2, 128>}]} {
    %c0 = arith.constant 0 : index
    %c0_0 = arith.constant 0 : index
    %c0_1 = arith.constant 0 : index
    %0 = vector.load %arg1[%c0, %c0_0, %c0_1] : memref<2x1x128xbf16, #tpu.memory_space<vmem>>, vector<2x1x128xbf16>
    %1 = arith.extf %0 : vector<2x1x128xbf16> to vector<2x1x128xf32>
    %cst = arith.constant dense<0.000000e+00> : vector<2x128xf32>
    %2 = vector.multi_reduction <add>, %1, %cst [1] : vector<2x1x128xf32> to vector<2x128xf32>
    %cst_2 = arith.constant 1.000000e+00 : f32
    %3 = vector.broadcast %cst_2 : f32 to vector<2x128xf32>
    %4 = arith.divf %2, %3 : vector<2x128xf32>
    %c0_3 = arith.constant 0 : index
    %c0_4 = arith.constant 0 : index
    %5 = vector.load %arg2[%c0_3, %c0_4] : memref<2x128xf32, #tpu.memory_space<vmem>>, vector<2x128xf32>
    tpu.vector_store %arg2[%c0_3, %c0_4], %4 {strides = array<i32>} : memref<2x128xf32, #tpu.memory_space<vmem>>, vector<2x128xf32>,
    return
  }
  func.func @transform_0(%arg0: i32) -> (i32, i32, i32) {
    %c0_i32 = arith.constant 0 : i32
    %c0_i32_0 = arith.constant 0 : i32
    %c0_i32_1 = arith.constant 0 : i32
    %c0_i32_2 = arith.constant 0 : i32
    return %c0_i32, %c0_i32_0, %c0_i32_1 : i32, i32, i32
  }
  func.func @transform_1(%arg0: i32) -> (i32, i32) {
    %c0_i32 = arith.constant 0 : i32
    %c0_i32_0 = arith.constant 0 : i32
    %c0_i32_1 = arith.constant 0 : i32
    return %c0_i32, %c0_i32_0 : i32, i32
  }
}

module attributes {stable_mosaic.version = 11 : i64} {
  func.func @_mm_res_epilogue_kernel(%arg0: i32, %arg1: i32, %arg2: memref<8x512xbf16, #tpu.memory_space<vmem>>, %arg3: memref<512x128xbf16, #tpu.memory_space<vmem>>, %arg4: memref<1x128xf32, #tpu.memory_space<vmem>>, %arg5: memref<1x128xf32, #tpu.memory_space<vmem>>, %arg6: memref<8x128xbf16, #tpu.memory_space<vmem>>, %arg7: memref<8x128xbf16, #tpu.memory_space<vmem>>, %arg8: memref<8x128xf32, #tpu.memory_space<vmem>>) attributes {dimension_semantics = [#tpu.dimension_semantics<parallel>, #tpu.dimension_semantics<arbitrary>], iteration_bounds = array<i64: 1, 3>, scalar_prefetch = 0 : i64, scratch_operands = 1 : i64, tpu.core_type = #tpu.core_type<tc>, window_params = [{transform_indices = @transform_0, window_bounds = array<i64: 8, 512>}, {transform_indices = @transform_1, window_bounds = array<i64: 512, 128>}, {pipeline_mode = #tpu.pipeline_mode<synchronous>, transform_indices = @transform_2, window_bounds = array<i64: 1, 128>}, {pipeline_mode = #tpu.pipeline_mode<synchronous>, transform_indices = @transform_3, window_bounds = array<i64: 1, 128>}, {transform_indices = @transform_4, window_bounds = array<i64: 8, 128>}, {transform_indices = @transform_5, window_bounds = array<i64: 8, 128>}]} {
    %c0_i32 = arith.constant 0 : i32
    %0 = arith.cmpi eq, %arg1, %c0_i32 : i32
    %1 = arith.extui %0 : i1 to i32
    %c0_i32_0 = arith.constant 0 : i32
    %2 = arith.cmpi ne, %1, %c0_i32_0 : i32
    scf.if %2 {
      %cst_9 = arith.constant 0.000000e+00 : f32
      %12 = vector.broadcast %cst_9 : f32 to vector<8x128xf32>
      %c0_10 = arith.constant 0 : index
      %c0_11 = arith.constant 0 : index
      %13 = vector.load %arg8[%c0_10, %c0_11] : memref<8x128xf32, #tpu.memory_space<vmem>>, vector<8x128xf32>
      tpu.vector_store %arg8[%c0_10, %c0_11], %12 {strides = array<i32>} : memref<8x128xf32, #tpu.memory_space<vmem>>, vector<8x128xf32>,
    } else {
    }
    %c0 = arith.constant 0 : index
    %c0_1 = arith.constant 0 : index
    %3 = vector.load %arg8[%c0, %c0_1] : memref<8x128xf32, #tpu.memory_space<vmem>>, vector<8x128xf32>
    %c0_2 = arith.constant 0 : index
    %c0_3 = arith.constant 0 : index
    %4 = vector.load %arg2[%c0_2, %c0_3] : memref<8x512xbf16, #tpu.memory_space<vmem>>, vector<8x512xbf16>
    %c0_4 = arith.constant 0 : index
    %c0_5 = arith.constant 0 : index
    %5 = vector.load %arg3[%c0_4, %c0_5] : memref<512x128xbf16, #tpu.memory_space<vmem>>, vector<512x128xbf16>
    %cst = arith.constant dense<0.000000e+00> : vector<8x128xf32>
    %6 = tpu.matmul %4, %5, %cst {dimension_numbers = #tpu.dot_dimension_numbers<[1], [0], [0], [1], [0, 0, 1, 1], [], []>} : vector<8x512xbf16>, vector<512x128xbf16>, vector<8x128xf32> -> vector<8x128xf32>
    %7 = arith.addf %3, %6 : vector<8x128xf32>
    %c0_6 = arith.constant 0 : index
    %c0_7 = arith.constant 0 : index
    %8 = vector.load %arg8[%c0_6, %c0_7] : memref<8x128xf32, #tpu.memory_space<vmem>>, vector<8x128xf32>
    tpu.vector_store %arg8[%c0_6, %c0_7], %7 {strides = array<i32>} : memref<8x128xf32, #tpu.memory_space<vmem>>, vector<8x128xf32>,
    %c2_i32 = arith.constant 2 : i32
    %9 = arith.cmpi eq, %arg1, %c2_i32 : i32
    %10 = arith.extui %9 : i1 to i32
    %c0_i32_8 = arith.constant 0 : i32
    %11 = arith.cmpi ne, %10, %c0_i32_8 : i32
    scf.if %11 {
      %c0_9 = arith.constant 0 : index
      %c0_10 = arith.constant 0 : index
      %12 = vector.load %arg8[%c0_9, %c0_10] : memref<8x128xf32, #tpu.memory_space<vmem>>, vector<8x128xf32>
      %c0_11 = arith.constant 0 : index
      %c0_12 = arith.constant 0 : index
      %13 = vector.load %arg6[%c0_11, %c0_12] : memref<8x128xbf16, #tpu.memory_space<vmem>>, vector<8x128xbf16>
      %14 = arith.extf %13 : vector<8x128xbf16> to vector<8x128xf32>
      %15 = arith.addf %12, %14 : vector<8x128xf32>
      %c0_13 = arith.constant 0 : index
      %c0_14 = arith.constant 0 : index
      %16 = vector.load %arg4[%c0_13, %c0_14] : memref<1x128xf32, #tpu.memory_space<vmem>>, vector<1x128xf32>
      %17 = vector.broadcast %16 : vector<1x128xf32> to vector<8x128xf32>
      %18 = arith.mulf %15, %17 : vector<8x128xf32>
      %c0_15 = arith.constant 0 : index
      %c0_16 = arith.constant 0 : index
      %19 = vector.load %arg5[%c0_15, %c0_16] : memref<1x128xf32, #tpu.memory_space<vmem>>, vector<1x128xf32>
      %20 = vector.broadcast %19 : vector<1x128xf32> to vector<8x128xf32>
      %21 = arith.addf %18, %20 : vector<8x128xf32>
      %cst_17 = arith.constant 0.000000e+00 : f32
      %22 = vector.broadcast %cst_17 : f32 to vector<8x128xf32>
      %23 = arith.maximumf %21, %22 : vector<8x128xf32>
      %24 = arith.truncf %23 : vector<8x128xf32> to vector<8x128xbf16>
      %c0_18 = arith.constant 0 : index
      %c0_19 = arith.constant 0 : index
      %25 = vector.load %arg7[%c0_18, %c0_19] : memref<8x128xbf16, #tpu.memory_space<vmem>>, vector<8x128xbf16>
      tpu.vector_store %arg7[%c0_18, %c0_19], %24 {strides = array<i32>} : memref<8x128xbf16, #tpu.memory_space<vmem>>, vector<8x128xbf16>,
    } else {
    }
    return
  }
  func.func @transform_0(%arg0: i32, %arg1: i32) -> (i32, i32) {
    %c0_i32 = arith.constant 0 : i32
    return %arg0, %arg1 : i32, i32
  }
  func.func @transform_1(%arg0: i32, %arg1: i32) -> (i32, i32) {
    %c0_i32 = arith.constant 0 : i32
    %c0_i32_0 = arith.constant 0 : i32
    return %arg1, %c0_i32 : i32, i32
  }
  func.func @transform_2(%arg0: i32, %arg1: i32) -> (i32, i32) {
    %c0_i32 = arith.constant 0 : i32
    %c0_i32_0 = arith.constant 0 : i32
    %c0_i32_1 = arith.constant 0 : i32
    return %c0_i32, %c0_i32_0 : i32, i32
  }
  func.func @transform_3(%arg0: i32, %arg1: i32) -> (i32, i32) {
    %c0_i32 = arith.constant 0 : i32
    %c0_i32_0 = arith.constant 0 : i32
    %c0_i32_1 = arith.constant 0 : i32
    return %c0_i32, %c0_i32_0 : i32, i32
  }
  func.func @transform_4(%arg0: i32, %arg1: i32) -> (i32, i32) {
    %c0_i32 = arith.constant 0 : i32
    %c0_i32_0 = arith.constant 0 : i32
    return %arg0, %c0_i32 : i32, i32
  }
  func.func @transform_5(%arg0: i32, %arg1: i32) -> (i32, i32) {
    %c0_i32 = arith.constant 0 : i32
    %c0_i32_0 = arith.constant 0 : i32
    return %arg0, %c0_i32 : i32, i32
  }
}

module attributes {stable_mosaic.version = 11 : i64} {
  func.func @_mm_epilogue_kernel(%arg0: i32, %arg1: i32, %arg2: memref<8x128xbf16, #tpu.memory_space<vmem>>, %arg3: memref<128x24xbf16, #tpu.memory_space<vmem>>, %arg4: memref<1x24xf32, #tpu.memory_space<vmem>>, %arg5: memref<1x24xf32, #tpu.memory_space<vmem>>, %arg6: memref<8x24xbf16, #tpu.memory_space<vmem>>, %arg7: memref<8x24xf32, #tpu.memory_space<vmem>>) attributes {dimension_semantics = [#tpu.dimension_semantics<parallel>, #tpu.dimension_semantics<arbitrary>], iteration_bounds = array<i64: 1, 1>, scalar_prefetch = 0 : i64, scratch_operands = 1 : i64, tpu.core_type = #tpu.core_type<tc>, window_params = [{transform_indices = @transform_0, window_bounds = array<i64: 8, 128>}, {transform_indices = @transform_1, window_bounds = array<i64: 128, 24>}, {pipeline_mode = #tpu.pipeline_mode<synchronous>, transform_indices = @transform_2, window_bounds = array<i64: 1, 24>}, {pipeline_mode = #tpu.pipeline_mode<synchronous>, transform_indices = @transform_3, window_bounds = array<i64: 1, 24>}, {transform_indices = @transform_4, window_bounds = array<i64: 8, 24>}]} {
    %c0_i32 = arith.constant 0 : i32
    %0 = arith.cmpi eq, %arg1, %c0_i32 : i32
    %1 = arith.extui %0 : i1 to i32
    %c0_i32_0 = arith.constant 0 : i32
    %2 = arith.cmpi ne, %1, %c0_i32_0 : i32
    scf.if %2 {
      %cst_10 = arith.constant 0.000000e+00 : f32
      %12 = vector.broadcast %cst_10 : f32 to vector<8x24xf32>
      %c0_11 = arith.constant 0 : index
      %c0_12 = arith.constant 0 : index
      %13 = vector.load %arg7[%c0_11, %c0_12] : memref<8x24xf32, #tpu.memory_space<vmem>>, vector<8x24xf32>
      tpu.vector_store %arg7[%c0_11, %c0_12], %12 {strides = array<i32>} : memref<8x24xf32, #tpu.memory_space<vmem>>, vector<8x24xf32>,
    } else {
    }
    %c0 = arith.constant 0 : index
    %c0_1 = arith.constant 0 : index
    %3 = vector.load %arg7[%c0, %c0_1] : memref<8x24xf32, #tpu.memory_space<vmem>>, vector<8x24xf32>
    %c0_2 = arith.constant 0 : index
    %c0_3 = arith.constant 0 : index
    %4 = vector.load %arg2[%c0_2, %c0_3] : memref<8x128xbf16, #tpu.memory_space<vmem>>, vector<8x128xbf16>
    %c0_4 = arith.constant 0 : index
    %c0_5 = arith.constant 0 : index
    %5 = vector.load %arg3[%c0_4, %c0_5] : memref<128x24xbf16, #tpu.memory_space<vmem>>, vector<128x24xbf16>
    %cst = arith.constant dense<0.000000e+00> : vector<8x24xf32>
    %6 = tpu.matmul %4, %5, %cst {dimension_numbers = #tpu.dot_dimension_numbers<[1], [0], [0], [1], [0, 0, 1, 1], [], []>} : vector<8x128xbf16>, vector<128x24xbf16>, vector<8x24xf32> -> vector<8x24xf32>
    %7 = arith.addf %3, %6 : vector<8x24xf32>
    %c0_6 = arith.constant 0 : index
    %c0_7 = arith.constant 0 : index
    %8 = vector.load %arg7[%c0_6, %c0_7] : memref<8x24xf32, #tpu.memory_space<vmem>>, vector<8x24xf32>
    tpu.vector_store %arg7[%c0_6, %c0_7], %7 {strides = array<i32>} : memref<8x24xf32, #tpu.memory_space<vmem>>, vector<8x24xf32>,
    %c0_i32_8 = arith.constant 0 : i32
    %9 = arith.cmpi eq, %arg1, %c0_i32_8 : i32
    %10 = arith.extui %9 : i1 to i32
    %c0_i32_9 = arith.constant 0 : i32
    %11 = arith.cmpi ne, %10, %c0_i32_9 : i32
    scf.if %11 {
      %c0_10 = arith.constant 0 : index
      %c0_11 = arith.constant 0 : index
      %12 = vector.load %arg7[%c0_10, %c0_11] : memref<8x24xf32, #tpu.memory_space<vmem>>, vector<8x24xf32>
      %c0_12 = arith.constant 0 : index
      %c0_13 = arith.constant 0 : index
      %13 = vector.load %arg4[%c0_12, %c0_13] : memref<1x24xf32, #tpu.memory_space<vmem>>, vector<1x24xf32>
      %14 = vector.broadcast %13 : vector<1x24xf32> to vector<8x24xf32>
      %15 = arith.mulf %12, %14 : vector<8x24xf32>
      %c0_14 = arith.constant 0 : index
      %c0_15 = arith.constant 0 : index
      %16 = vector.load %arg5[%c0_14, %c0_15] : memref<1x24xf32, #tpu.memory_space<vmem>>, vector<1x24xf32>
      %17 = vector.broadcast %16 : vector<1x24xf32> to vector<8x24xf32>
      %18 = arith.addf %15, %17 : vector<8x24xf32>
      %19 = arith.truncf %18 : vector<8x24xf32> to vector<8x24xbf16>
      %c0_16 = arith.constant 0 : index
      %c0_17 = arith.constant 0 : index
      %20 = vector.load %arg6[%c0_16, %c0_17] : memref<8x24xbf16, #tpu.memory_space<vmem>>, vector<8x24xbf16>
      tpu.vector_store %arg6[%c0_16, %c0_17], %19 {strides = array<i32>} : memref<8x24xbf16, #tpu.memory_space<vmem>>, vector<8x24xbf16>,
    } else {
    }
    return
  }
  func.func @transform_0(%arg0: i32, %arg1: i32) -> (i32, i32) {
    %c0_i32 = arith.constant 0 : i32
    return %arg0, %arg1 : i32, i32
  }
  func.func @transform_1(%arg0: i32, %arg1: i32) -> (i32, i32) {
    %c0_i32 = arith.constant 0 : i32
    %c0_i32_0 = arith.constant 0 : i32
    return %arg1, %c0_i32 : i32, i32
  }
  func.func @transform_2(%arg0: i32, %arg1: i32) -> (i32, i32) {
    %c0_i32 = arith.constant 0 : i32
    %c0_i32_0 = arith.constant 0 : i32
    %c0_i32_1 = arith.constant 0 : i32
    return %c0_i32, %c0_i32_0 : i32, i32
  }
  func.func @transform_3(%arg0: i32, %arg1: i32) -> (i32, i32) {
    %c0_i32 = arith.constant 0 : i32
    %c0_i32_0 = arith.constant 0 : i32
    %c0_i32_1 = arith.constant 0 : i32
    return %c0_i32, %c0_i32_0 : i32, i32
  }
  func.func @transform_4(%arg0: i32, %arg1: i32) -> (i32, i32) {
    %c0_i32 = arith.constant 0 : i32
    %c0_i32_0 = arith.constant 0 : i32
    return %arg0, %c0_i32 : i32, i32
  }
}

</mosaic_0001>

<bundles_post_ra>
// kernel: _lambda_.15
= control target key start
LH: loop header
LB: loop body
LE: loop exit
PB: predicated region body
PF: predicated region fallthrough
CT: control target
= control target key end

     0   :  { %vm58_vm0 = vcmask 257024   ;;  %s144_s0 = inlined_call_operand.vmem [shape: bf16[32,32], index: 0, kind: input, shape index: {}]   ;;  %s145_s1 = inlined_call_operand.vmem [shape: bf16[32,32], index: 1, kind: input, shape index: {}]   ;;  %s146_s2 = inlined_call_operand.vmem [shape: bf16[32,32], index: 2, kind: input, shape index: {}]   ;;  %s147_s3 = inlined_call_operand.vmem [shape: bf16[32,32], index: 3, kind: output, shape index: {}]  }
   0x1   :  { %v68_v0 = vld [vmem:[%s144_s0] sm:$0xff]   ;;  %v91_v7 = vld [vmem:[%s144_s0 + $0x8] sm:$0xff]  }
   0x2   :  { %v76_v1 = vld [vmem:[%s145_s1] sm:$0xff]   ;;  %v69_v3 = vunpack.c.l.bf16 %v68_v0  ;;  %v70_v6 = vunpack.c.h.bf16 %v68_v0  ;;  %v92_v8 = vld [vmem:[%s145_s1 + $0x8] sm:$0xff]   ;;  %v73_v12 = vunpack.c.l.bf16 %v91_v7  ;;  %v74_v16 = vunpack.c.h.bf16 %v91_v7 }
   0x3   :  { %v84_v2 = vld [vmem:[%s146_s2] sm:$0xff]   ;;  %v77_v4 = vunpack.c.l.bf16 %v76_v1  ;;  %v93_v9 = vld [vmem:[%s146_s2 + $0x8] sm:$0xff]   ;;  %v78_v10 = vunpack.c.h.bf16 %v76_v1  ;;  %v81_v13 = vunpack.c.l.bf16 %v92_v8  ;;  %v82_v17 = vunpack.c.h.bf16 %v92_v8 }
   0x4   :  { %v85_v5 = vunpack.c.l.bf16 %v84_v2  ;;  %v86_v11 = vunpack.c.h.bf16 %v84_v2  ;;  %v89_v15 = vunpack.c.l.bf16 %v93_v9  ;;  %v90_v20 = vunpack.c.h.bf16 %v93_v9 }
   0x5   :  { %v30_v14 = vmax.f32 %v69_v3, %v77_v4  ;;  %v31_v18 = vmax.f32 %v70_v6, %v78_v10  ;;  %v32_v19 = vmax.f32 %v73_v12, %v81_v13  ;;  %v33_v22 = vmax.f32 %v74_v16, %v82_v17 }
   0x7   :  { %v50_v21 = vmax.f32 %v30_v14, %v85_v5  ;;  %v51_v23 = vmax.f32 %v31_v18, %v86_v11  ;;  %v52_v24 = vmax.f32 %v32_v19, %v89_v15  ;;  %v53_v26 = vmax.f32 %v33_v22, %v90_v20 }
   0x9   :  { %v54_v25 = vpack.c.bf16 %v50_v21, %v50_v21  ;;  %v55_v27 = vpack.c.bf16 %v51_v23, %v51_v23  ;;  %v56_v28 = vpack.c.bf16 %v52_v24, %v52_v24  ;;  %v57_v29 = vpack.c.bf16 %v53_v26, %v53_v26 }
   0xb   :  { %59 = vst.msk [vmem:[%s147_s3] sm:$0xf] %vm58_vm0, %v54_v25 }
   0xc   :  { %60 = vst.msk [vmem:[%s147_s3 + $0x4] sm:$0xf] %vm58_vm0, %v55_v27 }
   0xd   :  { %61 = vst.msk [vmem:[%s147_s3 + $0x8] sm:$0xf] %vm58_vm0, %v56_v28 }
   0xe   :  { %62 = vst.msk [vmem:[%s147_s3 + $0xc] sm:$0xf] %vm58_vm0, %v57_v29 }

// kernel: _lambda_.14
= control target key start
LH: loop header
LB: loop body
LE: loop exit
PB: predicated region body
PF: predicated region fallthrough
CT: control target
= control target key end

     0   :  { %vm124_vm0 = vcmask 257024   ;;  %s316_s0 = inlined_call_operand.vmem [shape: bf16[80,32], index: 0, kind: input, shape index: {}]   ;;  %s317_s1 = inlined_call_operand.vmem [shape: bf16[80,32], index: 1, kind: input, shape index: {}]   ;;  %s318_s2 = inlined_call_operand.vmem [shape: bf16[80,32], index: 2, kind: input, shape index: {}]   ;;  %s319_s3 = inlined_call_operand.vmem [shape: bf16[80,32], index: 3, kind: output, shape index: {}]  }
   0x1   :  { %v140_v0 = vld [vmem:[%s316_s0] sm:$0xff]   ;;  %v199_v7 = vld [vmem:[%s316_s0 + $0x8] sm:$0xff]   ;;  %v200_v14 = vld [vmem:[%s316_s0 + $0x10] sm:$0xff]  }
   0x2   :  { %v160_v1 = vld [vmem:[%s317_s1] sm:$0xff]   ;;  %v141_v3 = vunpack.c.l.bf16 %v140_v0  ;;  %v142_v6 = vunpack.c.h.bf16 %v140_v0  ;;  %v203_v8 = vld [vmem:[%s317_s1 + $0x8] sm:$0xff]   ;;  %v145_v12 = vunpack.c.l.bf16 %v199_v7  ;;  %v204_v15 = vld [vmem:[%s317_s1 + $0x10] sm:$0xff]   ;;  %v146_v19 = vunpack.c.h.bf16 %v199_v7 }
   0x3   :  { %v180_v2 = vld [vmem:[%s318_s2] sm:$0xff]   ;;  %v161_v4 = vunpack.c.l.bf16 %v160_v1  ;;  %v207_v9 = vld [vmem:[%s318_s2 + $0x8] sm:$0xff]   ;;  %v162_v10 = vunpack.c.h.bf16 %v160_v1  ;;  %v165_v13 = vunpack.c.l.bf16 %v203_v8  ;;  %v208_v16 = vld [vmem:[%s318_s2 + $0x10] sm:$0xff]   ;;  %v166_v20 = vunpack.c.h.bf16 %v203_v8 }
   0x4   :  { %v181_v5 = vunpack.c.l.bf16 %v180_v2  ;;  %v182_v11 = vunpack.c.h.bf16 %v180_v2  ;;  %v185_v18 = vunpack.c.l.bf16 %v207_v9  ;;  %v186_v23 = vunpack.c.h.bf16 %v207_v9  ;;  %v201_v29 = vld [vmem:[%s316_s0 + $0x18] sm:$0xff]   ;;  %v202_v44 = vld [vmem:[%s316_s0 + $0x20] sm:$0xff]  }
   0x5   :  { %v54_v17 = vmax.f32 %v141_v3, %v161_v4  ;;  %v55_v21 = vmax.f32 %v142_v6, %v162_v10  ;;  %v56_v22 = vmax.f32 %v145_v12, %v165_v13  ;;  %v149_v24 = vunpack.c.l.bf16 %v200_v14  ;;  %v205_v34 = vld [vmem:[%s317_s1 + $0x18] sm:$0xff]   ;;  %v206_v45 = vld [vmem:[%s317_s1 + $0x20] sm:$0xff]  }
   0x6   :  { %v57_v26 = vmax.f32 %v146_v19, %v166_v20  ;;  %v169_v27 = vunpack.c.l.bf16 %v204_v15  ;;  %v189_v28 = vunpack.c.l.bf16 %v208_v16  ;;  %v150_v32 = vunpack.c.h.bf16 %v200_v14  ;;  %v209_v35 = vld [vmem:[%s318_s2 + $0x18] sm:$0xff]   ;;  %v210_v50 = vld [vmem:[%s318_s2 + $0x20] sm:$0xff]  }
   0x7   :  { %v104_v25 = vmax.f32 %v54_v17, %v181_v5  ;;  %v105_v30 = vmax.f32 %v55_v21, %v182_v11  ;;  %v106_v31 = vmax.f32 %v56_v22, %v185_v18  ;;  %v170_v33 = vunpack.c.h.bf16 %v204_v15 }
   0x8   :  { %v107_v37 = vmax.f32 %v57_v26, %v186_v23  ;;  %v58_v38 = vmax.f32 %v149_v24, %v169_v27  ;;  %v190_v39 = vunpack.c.h.bf16 %v208_v16  ;;  %v153_v43 = vunpack.c.l.bf16 %v201_v29 }
   0x9   :  { %v114_v36 = vpack.c.bf16 %v104_v25, %v104_v25  ;;  %v115_v40 = vpack.c.bf16 %v105_v30, %v105_v30  ;;  %v116_v41 = vpack.c.bf16 %v106_v31, %v106_v31  ;;  %v59_v42 = vmax.f32 %v150_v32, %v170_v33 }
   0xa   :  { %v117_v46 = vpack.c.bf16 %v107_v37, %v107_v37  ;;  %v108_v47 = vmax.f32 %v58_v38, %v189_v28  ;;  %v173_v48 = vunpack.c.l.bf16 %v205_v34  ;;  %v193_v49 = vunpack.c.l.bf16 %v209_v35 }
   0xb   :  { %125 = vst.msk [vmem:[%s319_s3] sm:$0xf] %vm124_vm0, %v114_v36  ;;  %v109_v51 = vmax.f32 %v59_v42, %v190_v39  ;;  %v154_v52 = vunpack.c.h.bf16 %v201_v29  ;;  %v174_v53 = vunpack.c.h.bf16 %v205_v34  ;;  %v194_v54 = vunpack.c.h.bf16 %v209_v35 }
   0xc   :  { %126 = vst.msk [vmem:[%s319_s3 + $0x4] sm:$0xf] %vm124_vm0, %v115_v40  ;;  %v118_v55 = vpack.c.bf16 %v108_v47, %v108_v47  ;;  %v60_v56 = vmax.f32 %v153_v43, %v173_v48  ;;  %v157_v57 = vunpack.c.l.bf16 %v202_v44  ;;  %v177_v58 = vunpack.c.l.bf16 %v206_v45 }
   0xd   :  { %127 = vst.msk [vmem:[%s319_s3 + $0x8] sm:$0xf] %vm124_vm0, %v116_v41  ;;  %v119_v59 = vpack.c.bf16 %v109_v51, %v109_v51  ;;  %v61_v60 = vmax.f32 %v154_v52, %v174_v53  ;;  %v197_v61 = vunpack.c.l.bf16 %v210_v50  ;;  %v158_v62 = vunpack.c.h.bf16 %v202_v44 }
   0xe   :  { %128 = vst.msk [vmem:[%s319_s3 + $0xc] sm:$0xf] %vm124_vm0, %v117_v46  ;;  %v110_v63 = vmax.f32 %v60_v56, %v193_v49  ;;  %v62_v0 = vmax.f32 %v157_v57, %v177_v58  ;;  %v178_v1 = vunpack.c.h.bf16 %v206_v45  ;;  %v198_v2 = vunpack.c.h.bf16 %v210_v50 }
   0xf   :  { %129 = vst.msk [vmem:[%s319_s3 + $0x10] sm:$0xf] %vm124_vm0, %v118_v55  ;;  %v111_v3 = vmax.f32 %v61_v60, %v194_v54 }
  0x10   :  { %130 = vst.msk [vmem:[%s319_s3 + $0x14] sm:$0xf] %vm124_vm0, %v119_v59  ;;  %v120_v4 = vpack.c.bf16 %v110_v63, %v110_v63  ;;  %v112_v5 = vmax.f32 %v62_v0, %v197_v61  ;;  %v63_v6 = vmax.f32 %v158_v62, %v178_v1 }
  0x11   :  { %v121_v7 = vpack.c.bf16 %v111_v3, %v111_v3 }
  0x12   :  { %131 = vst.msk [vmem:[%s319_s3 + $0x18] sm:$0xf] %vm124_vm0, %v120_v4  ;;  %v122_v8 = vpack.c.bf16 %v112_v5, %v112_v5  ;;  %v113_v9 = vmax.f32 %v63_v6, %v198_v2 }
  0x13   :  { %132 = vst.msk [vmem:[%s319_s3 + $0x1c] sm:$0xf] %vm124_vm0, %v121_v7 }
  0x14   :  { %133 = vst.msk [vmem:[%s319_s3 + $0x20] sm:$0xf] %vm124_vm0, %v122_v8  ;;  %v123_v10 = vpack.c.bf16 %v113_v9, %v113_v9 }
  0x16   :  { %134 = vst.msk [vmem:[%s319_s3 + $0x24] sm:$0xf] %vm124_vm0, %v123_v10 }

// kernel: _lambda_.13
= control target key start
LH: loop header
LB: loop body
LE: loop exit
PB: predicated region body
PF: predicated region fallthrough
CT: control target
= control target key end

     0   :  { %vm21_vm0 = vcmask 261120   ;;  %vm500_vm1 = vcmask 257024   ;;  %s1008_s1 = inlined_call_operand.vmem [shape: bf16[256,32], index: 1, kind: input, shape index: {}]   ;;  %s1009_s0 = inlined_call_operand.vmem [shape: bf16[128,256], index: 0, kind: input, shape index: {}]   ;;  %s1010_s2 = inlined_call_operand.vmem [shape: f32[1,32], index: 2, kind: input, shape index: {}]   ;;  %s1011_s3 = inlined_call_operand.vmem [shape: f32[1,32], index: 3, kind: input, shape index: {}]   ;;  %s1012_s4 = inlined_call_operand.vmem [shape: bf16[128,32], index: 4, kind: output, shape index: {}]  }
   0x1   :  { %v672_v0 = vld [vmem:[%s1008_s1 + $0x38] sm:$0xff]  ;;  %v671_v2 = vld [vmem:[%s1008_s1 + $0x30] sm:$0xff]  ;;  %v670_v4 = vld [vmem:[%s1008_s1 + $0x28] sm:$0xff] }
   0x2   :  { %v680_v1 = vld [vmem:[%s1008_s1 + $0x78] sm:$0xff]  ;;  %278 = vmatpush.bf16.msra.mxu0 %v672_v0  ;;  %681 = vmatpush.bf16.msra.mxu2 %v672_v0  ;;  %v679_v3 = vld [vmem:[%s1008_s1 + $0x70] sm:$0xff]  ;;  %v678_v5 = vld [vmem:[%s1008_s1 + $0x68] sm:$0xff]  ;;  %v700_v0 = vmov 0.0  }
   0x3   :  { %327 = vmatpush.bf16.msra.mxu1 %v680_v1  ;;  %689 = vmatpush.bf16.msra.mxu3 %v680_v1  ;;  %v669_v6 = vld [vmem:[%s1008_s1 + $0x20] sm:$0xff]  ;;  %v668_v8 = vld [vmem:[%s1008_s1 + $0x18] sm:$0xff]  ;;  %v667_v10 = vld [vmem:[%s1008_s1 + $0x10] sm:$0xff]  ;;  %22 = vst.msk [vmem:[#allocation2] sm:$0xff] %vm21_vm0, %v700_v0 }
   0x4   :  { %v677_v7 = vld [vmem:[%s1008_s1 + $0x60] sm:$0xff]  ;;  %v676_v9 = vld [vmem:[%s1008_s1 + $0x58] sm:$0xff]  ;;  %v675_v11 = vld [vmem:[%s1008_s1 + $0x50] sm:$0xff]  ;;  %23 = vst.msk [vmem:[#allocation2 + $0x8] sm:$0xff] %vm21_vm0, %v700_v0 }
   0x5   :  { %v666_v12 = vld [vmem:[%s1008_s1 + $0x8] sm:$0xff]  ;;  %v665_v14 = vld [vmem:[%s1008_s1] sm:$0xff]  ;;  %v531_v28 = vld [vmem:[%s1009_s0 + $0x10] sm:$0xf]  ;;  %24 = vst.msk [vmem:[#allocation2 + $0x10] sm:$0xff] %vm21_vm0, %v700_v0 }
   0x6   :  { %279 = vmatpush.bf16.msra.mxu0 %v671_v2  ;;  %682 = vmatpush.bf16.msra.mxu2 %v671_v2  ;;  %v674_v13 = vld [vmem:[%s1008_s1 + $0x48] sm:$0xff]  ;;  %v673_v15 = vld [vmem:[%s1008_s1 + $0x40] sm:$0xff]  ;;  %v652_v29 = vld [vmem:[%s1009_s0 + $0x14] sm:$0xf0]  ;;  %25 = vst.msk [vmem:[#allocation2 + $0x18] sm:$0xff] %vm21_vm0, %v700_v0 }
   0x7   :  { %328 = vmatpush.bf16.msra.mxu1 %v679_v3  ;;  %690 = vmatpush.bf16.msra.mxu3 %v679_v3  ;;  %v523_v16 = vld [vmem:[%s1009_s0] sm:$0xf]  ;;  %v650_v17 = vld [vmem:[%s1009_s0 + $0x4] sm:$0xf0]  ;;  %v649_v20 = vld [vmem:[%s1009_s0 + $0x4] sm:$0xf]  ;;  %v532_v36 = vor.u32 %v652_v29, %v531_v28 }
   0x8   :  { %v555_v18 = vld [vmem:[%s1009_s0 + $0x40] sm:$0xf]  ;;  %v658_v19 = vld [vmem:[%s1009_s0 + $0x44] sm:$0xf0]  ;;  %v525_v21 = vld [vmem:[%s1009_s0 + $0x8] sm:$0xf0]  ;;  %v524_v24 = vor.u32 %v650_v17, %v523_v16 }
   0x9   :  { %v657_v22 = vld [vmem:[%s1009_s0 + $0x44] sm:$0xf]  ;;  %v557_v23 = vld [vmem:[%s1009_s0 + $0x48] sm:$0xf0]  ;;  %v556_v25 = vor.u32 %v658_v19, %v555_v18  ;;  %v528_v26 = vor.u32 %v649_v20, %v525_v21  ;;  %v563_v30 = vld [vmem:[%s1009_s0 + $0x50] sm:$0xf] }
   0xa   :  { %280 = vmatpush.bf16.msra.mxu0 %v670_v4  ;;  %683 = vmatpush.bf16.msra.mxu2 %v670_v4  ;;  %v560_v27 = vor.u32 %v657_v22, %v557_v23  ;;  %v660_v31 = vld [vmem:[%s1009_s0 + $0x54] sm:$0xf0]  ;;  %v651_v32 = vld [vmem:[%s1009_s0 + $0x14] sm:$0xf]  ;;  %v533_v33 = vld [vmem:[%s1009_s0 + $0x18] sm:$0xf0] }
   0xb   :  { %329 = vmatpush.bf16.msra.mxu1 %v678_v5  ;;  %691 = vmatpush.bf16.msra.mxu3 %v678_v5  ;;  %v659_v34 = vld [vmem:[%s1009_s0 + $0x54] sm:$0xf]  ;;  %v565_v35 = vld [vmem:[%s1009_s0 + $0x58] sm:$0xf0]  ;;  %v564_v37 = vor.u32 %v660_v31, %v563_v30  ;;  %v536_v38 = vor.u32 %v651_v32, %v533_v33  ;;  %v539_v40 = vld [vmem:[%s1009_s0 + $0x20] sm:$0xf] }
   0xc   :  { %v568_v39 = vor.u32 %v659_v34, %v565_v35  ;;  %v654_v41 = vld [vmem:[%s1009_s0 + $0x24] sm:$0xf0]  ;;  %v571_v42 = vld [vmem:[%s1009_s0 + $0x60] sm:$0xf]  ;;  %v653_v44 = vld [vmem:[%s1009_s0 + $0x24] sm:$0xf] }
   0xd   :  { %v662_v43 = vld [vmem:[%s1009_s0 + $0x64] sm:$0xf0]  ;;  %v541_v45 = vld [vmem:[%s1009_s0 + $0x28] sm:$0xf0]  ;;  %v661_v46 = vld [vmem:[%s1009_s0 + $0x64] sm:$0xf]  ;;  %v540_v48 = vor.u32 %v654_v41, %v539_v40 }
   0xe   :  { %281 = vmatpush.bf16.msra.mxu0 %v669_v6  ;;  %684 = vmatpush.bf16.msra.mxu2 %v669_v6  ;;  %v573_v47 = vld [vmem:[%s1009_s0 + $0x68] sm:$0xf0]  ;;  %v572_v49 = vor.u32 %v662_v43, %v571_v42  ;;  %v544_v50 = vor.u32 %v653_v44, %v541_v45  ;;  %v547_v52 = vld [vmem:[%s1009_s0 + $0x30] sm:$0xf]  ;;  %v656_v53 = vld [vmem:[%s1009_s0 + $0x34] sm:$0xf0] }
   0xf   :  { %330 = vmatpush.bf16.msra.mxu1 %v677_v7  ;;  %692 = vmatpush.bf16.msra.mxu3 %v677_v7  ;;  %v576_v51 = vor.u32 %v661_v46, %v573_v47  ;;  %v579_v54 = vld [vmem:[%s1009_s0 + $0x70] sm:$0xf]  ;;  %v664_v55 = vld [vmem:[%s1009_s0 + $0x74] sm:$0xf0]  ;;  %v655_v56 = vld [vmem:[%s1009_s0 + $0x34] sm:$0xf]  ;;  %v548_v60 = vor.u32 %v656_v53, %v547_v52 }
  0x10   :  { %v549_v57 = vld [vmem:[%s1009_s0 + $0x38] sm:$0xf0]  ;;  %v663_v58 = vld [vmem:[%s1009_s0 + $0x74] sm:$0xf]  ;;  %v580_v61 = vor.u32 %v664_v55, %v579_v54  ;;  %26 = vst.msk [vmem:[#allocation2 + $0x20] sm:$0xff] %vm21_vm0, %v700_v0  ;;  %v38_v2 = vld [vmem:[#allocation2] sm:$0xff] }
  0x11   :  { %v581_v59 = vld [vmem:[%s1009_s0 + $0x78] sm:$0xf0]  ;;  %v552_v62 = vor.u32 %v655_v56, %v549_v57  ;;  %27 = vst.msk [vmem:[#allocation2 + $0x28] sm:$0xff] %vm21_vm0, %v700_v0  ;;  %v895_v16 = vld [vmem:[%s1011_s3] ss:$0 sm:$0xff] }
  0x12   :  { %282 = vmatpush.bf16.msra.mxu0 %v668_v8  ;;  %685 = vmatpush.bf16.msra.mxu2 %v668_v8  ;;  %v584_v63 = vor.u32 %v663_v58, %v581_v59  ;;  %28 = vst.msk [vmem:[#allocation2 + $0x30] sm:$0xff] %vm21_vm0, %v700_v0  ;;  %v41_v45 = vld [vmem:[#allocation2 + $0x18] sm:$0xff] }
  0x13   :  { %331 = vmatpush.bf16.msra.mxu1 %v676_v9  ;;  %693 = vmatpush.bf16.msra.mxu3 %v676_v9  ;;  %29 = vst.msk [vmem:[#allocation2 + $0x38] sm:$0xff] %vm21_vm0, %v700_v0 }
  0x14   :  { %30 = vst.msk [vmem:[#allocation2 + $0x40] sm:$0xff] %vm21_vm0, %v700_v0 }
  0x15   :  { %31 = vst.msk [vmem:[#allocation2 + $0x48] sm:$0xff] %vm21_vm0, %v700_v0 }
  0x16   :  { %283 = vmatpush.bf16.msra.mxu0 %v667_v10  ;;  %686 = vmatpush.bf16.msra.mxu2 %v667_v10  ;;  %32 = vst.msk [vmem:[#allocation2 + $0x50] sm:$0xff] %vm21_vm0, %v700_v0 }
  0x17   :  { %332 = vmatpush.bf16.msra.mxu1 %v675_v11  ;;  %694 = vmatpush.bf16.msra.mxu3 %v675_v11  ;;  %33 = vst.msk [vmem:[#allocation2 + $0x58] sm:$0xff] %vm21_vm0, %v700_v0  ;;  %v39_v11 = vld [vmem:[#allocation2 + $0x8] sm:$0xff] }
  0x18   :  { %34 = vst.msk [vmem:[#allocation2 + $0x60] sm:$0xff] %vm21_vm0, %v700_v0 }
  0x19   :  { %35 = vst.msk [vmem:[#allocation2 + $0x68] sm:$0xff] %vm21_vm0, %v700_v0 }
  0x1a   :  { %284 = vmatpush.bf16.msra.mxu0 %v666_v12  ;;  %687 = vmatpush.bf16.msra.mxu2 %v666_v12  ;;  %36 = vst.msk [vmem:[#allocation2 + $0x70] sm:$0xff] %vm21_vm0, %v700_v0 }
  0x1b   :  { %333 = vmatpush.bf16.msra.mxu1 %v674_v13  ;;  %695 = vmatpush.bf16.msra.mxu3 %v674_v13  ;;  %37 = vst.msk [vmem:[#allocation2 + $0x78] sm:$0xff] %vm21_vm0, %v700_v0  ;;  %v46_v7 = vld [vmem:[#allocation2 + $0x40] sm:$0xff] }
  0x1c   :  { %v890_v13 = vld [vmem:[%s1010_s2] ss:$0 sm:$0xff]  ;;  %v47_v21 = vld [vmem:[#allocation2 + $0x48] sm:$0xff] }
  0x1e   :  { %285 = vmatpush.bf16.msra.mxu0 %v665_v14  ;;  %688 = vmatpush.bf16.msra.mxu2 %v665_v14  ;;  %v49_v59 = vld [vmem:[#allocation2 + $0x58] sm:$0xff] }
  0x1f   :  { %334 = vmatpush.bf16.msra.mxu1 %v673_v15  ;;  %696 = vmatpush.bf16.msra.mxu3 %v673_v15 }
  0x21   :  { %286 = vmatmul.bf16.vlgmr.msra.gmra.mxu0 %v524_v24  ;;  %306 = vmatmul.bf16.vlgmr.msra.gmra.mxu2 %v556_v25 }
  0x22   :  { %335 = vmatmul.bf16.vlgmr.msra.gmra.mxu1 %v528_v26  ;;  %355 = vmatmul.bf16.vlgmr.msra.gmra.mxu3 %v560_v27  ;;  %v40_v26 = vld [vmem:[#allocation2 + $0x10] sm:$0xff] }
  0x31   :  { %291 = vmatmul.bf16.gmra.mxu0 %v532_v36  ;;  %311 = vmatmul.bf16.gmra.mxu2 %v564_v37 }
  0x32   :  { %340 = vmatmul.bf16.gmra.mxu1 %v536_v38  ;;  %360 = vmatmul.bf16.gmra.mxu3 %v568_v39  ;;  %v48_v39 = vld [vmem:[#allocation2 + $0x50] sm:$0xff] }
  0x41   :  { %296 = vmatmul.bf16.gmra.mxu0 %v540_v48  ;;  %316 = vmatmul.bf16.gmra.mxu2 %v572_v49 }
  0x42   :  { %345 = vmatmul.bf16.gmra.mxu1 %v544_v50  ;;  %365 = vmatmul.bf16.gmra.mxu3 %v576_v51 }
  0x51   :  { %301 = vmatmul.bf16.gmra.mxu0 %v548_v60  ;;  %321 = vmatmul.bf16.gmra.mxu2 %v580_v61 }
  0x52   :  { %350 = vmatmul.bf16.gmra.mxu1 %v552_v62  ;;  %370 = vmatmul.bf16.gmra.mxu3 %v584_v63 }
  0x9e   :  { %v287_v1 = vpop.f32.mrf.mxu0 }
  0x9f   :  { %v336_v3 = vpop.f32.mrf.mxu1 }
  0xa0   :  { %v337_v4 = vadd.f32 %v336_v3, %v287_v1  ;;  %v42_v1 = vld [vmem:[#allocation2 + $0x20] sm:$0xff] }
  0xa2   :  { %v376_v5 = vadd.f32 %v337_v4, %v38_v2 }
  0xa4   :  { %393 = vst.msk [vmem:[#allocation2] sm:$0xff] %vm21_vm0, %v376_v5  ;;  %v307_v6 = vpop.f32.mrf.mxu2 }
  0xa5   :  { %v356_v8 = vpop.f32.mrf.mxu3 }
  0xa6   :  { %v357_v9 = vadd.f32 %v356_v8, %v307_v6  ;;  %v289_v10 = vpop.f32.mrf.mxu0 }
  0xa7   :  { %v338_v12 = vpop.f32.mrf.mxu1 }
  0xa8   :  { %v384_v14 = vadd.f32 %v357_v9, %v46_v7  ;;  %v339_v15 = vadd.f32 %v338_v12, %v289_v10 }
  0xaa   :  { %401 = vst.msk [vmem:[#allocation2 + $0x40] sm:$0xff] %vm21_vm0, %v384_v14  ;;  %v377_v17 = vadd.f32 %v339_v15, %v39_v11 }
  0xab   :  { %v412_v18 = vld [vmem:[#allocation2] sm:$0xff] }
  0xac   :  { %v432_v19 = vmul.f32 %v890_v13, %v412_v18  ;;  %394 = vst.msk [vmem:[#allocation2 + $0x8] sm:$0xff] %vm21_vm0, %v377_v17  ;;  %v309_v20 = vpop.f32.mrf.mxu2  ;;  %v50_v17 = vld [vmem:[#allocation2 + $0x60] sm:$0xff] }
  0xad   :  { %v358_v22 = vpop.f32.mrf.mxu3 }
  0xae   :  { %v452_v23 = vadd.f32 %v895_v16, %v432_v19  ;;  %v359_v24 = vadd.f32 %v358_v22, %v309_v20  ;;  %v292_v25 = vpop.f32.mrf.mxu0 }
  0xaf   :  { %v341_v27 = vpop.f32.mrf.mxu1 }
  0xb0   :  { %v468_v28 = vmax.f32 %v452_v23, 0.0  ;;  %v385_v29 = vadd.f32 %v359_v24, %v47_v21  ;;  %v342_v30 = vadd.f32 %v341_v27, %v292_v25  ;;  %v43_v23 = vld [vmem:[#allocation2 + $0x28] sm:$0xff] }
  0xb1   :  { %v420_v31 = vld [vmem:[#allocation2 + $0x40] sm:$0xff] }
  0xb2   :  { %v484_v32 = vpack.c.bf16 %v468_v28, %v468_v28  ;;  %v440_v33 = vmul.f32 %v890_v13, %v420_v31  ;;  %402 = vst.msk [vmem:[#allocation2 + $0x48] sm:$0xff] %vm21_vm0, %v385_v29  ;;  %v378_v34 = vadd.f32 %v342_v30, %v40_v26 }
  0xb3   :  { %v413_v35 = vld [vmem:[#allocation2 + $0x8] sm:$0xff] }
  0xb4   :  { %501 = vst.msk [vmem:[%s1012_s4] sm:$0xf] %vm500_vm1, %v484_v32  ;;  %v460_v36 = vadd.f32 %v895_v16, %v440_v33  ;;  %v433_v37 = vmul.f32 %v890_v13, %v413_v35  ;;  %v312_v38 = vpop.f32.mrf.mxu2 }
  0xb5   :  { %395 = vst.msk [vmem:[#allocation2 + $0x10] sm:$0xff] %vm21_vm0, %v378_v34  ;;  %v361_v40 = vpop.f32.mrf.mxu3 }
  0xb6   :  { %v476_v41 = vmax.f32 %v460_v36, 0.0  ;;  %v453_v42 = vadd.f32 %v895_v16, %v433_v37  ;;  %v362_v43 = vadd.f32 %v361_v40, %v312_v38  ;;  %v294_v44 = vpop.f32.mrf.mxu0  ;;  %v51_v37 = vld [vmem:[#allocation2 + $0x68] sm:$0xff] }
  0xb7   :  { %v343_v46 = vpop.f32.mrf.mxu1 }
  0xb8   :  { %v492_v47 = vpack.c.bf16 %v476_v41, %v476_v41  ;;  %v469_v48 = vmax.f32 %v453_v42, 0.0  ;;  %v386_v49 = vadd.f32 %v362_v43, %v48_v39  ;;  %v344_v50 = vadd.f32 %v343_v46, %v294_v44  ;;  %v44_v43 = vld [vmem:[#allocation2 + $0x30] sm:$0xff] }
  0xb9   :  { %v421_v51 = vld [vmem:[#allocation2 + $0x48] sm:$0xff] }
  0xba   :  { %509 = vst.msk [vmem:[%s1012_s4 + $0x20] sm:$0xf] %vm500_vm1, %v492_v47  ;;  %v485_v52 = vpack.c.bf16 %v469_v48, %v469_v48  ;;  %v441_v53 = vmul.f32 %v890_v13, %v421_v51  ;;  %v379_v54 = vadd.f32 %v344_v50, %v41_v45 }
  0xbb   :  { %403 = vst.msk [vmem:[#allocation2 + $0x50] sm:$0xff] %vm21_vm0, %v386_v49 }
  0xbc   :  { %502 = vst.msk [vmem:[%s1012_s4 + $0x4] sm:$0xf] %vm500_vm1, %v485_v52  ;;  %v461_v55 = vadd.f32 %v895_v16, %v441_v53  ;;  %v414_v56 = vld [vmem:[#allocation2 + $0x10] sm:$0xff]  ;;  %v314_v57 = vpop.f32.mrf.mxu2 }
  0xbd   :  { %v434_v58 = vmul.f32 %v890_v13, %v414_v56  ;;  %396 = vst.msk [vmem:[#allocation2 + $0x18] sm:$0xff] %vm21_vm0, %v379_v54  ;;  %v363_v60 = vpop.f32.mrf.mxu3 }
  0xbe   :  { %v477_v61 = vmax.f32 %v461_v55, 0.0  ;;  %v364_v62 = vadd.f32 %v363_v60, %v314_v57  ;;  %v297_v63 = vpop.f32.mrf.mxu0  ;;  %v52_v57 = vld [vmem:[#allocation2 + $0x70] sm:$0xff] }
  0xbf   :  { %v454_v0 = vadd.f32 %v895_v16, %v434_v58  ;;  %v346_v2 = vpop.f32.mrf.mxu1 }
  0xc0   :  { %v493_v3 = vpack.c.bf16 %v477_v61, %v477_v61  ;;  %v387_v4 = vadd.f32 %v364_v62, %v49_v59  ;;  %v347_v5 = vadd.f32 %v346_v2, %v297_v63  ;;  %v45_v63 = vld [vmem:[#allocation2 + $0x38] sm:$0xff] }
  0xc1   :  { %v470_v6 = vmax.f32 %v454_v0, 0.0 }
  0xc2   :  { %510 = vst.msk [vmem:[%s1012_s4 + $0x24] sm:$0xf] %vm500_vm1, %v493_v3  ;;  %v422_v7 = vld [vmem:[#allocation2 + $0x50] sm:$0xff]  ;;  %v380_v8 = vadd.f32 %v347_v5, %v42_v1 }
  0xc3   :  { %v486_v9 = vpack.c.bf16 %v470_v6, %v470_v6  ;;  %v442_v10 = vmul.f32 %v890_v13, %v422_v7  ;;  %404 = vst.msk [vmem:[#allocation2 + $0x58] sm:$0xff] %vm21_vm0, %v387_v4 }
  0xc4   :  { %v415_v11 = vld [vmem:[#allocation2 + $0x18] sm:$0xff]  ;;  %397 = vst.msk [vmem:[#allocation2 + $0x20] sm:$0xff] %vm21_vm0, %v380_v8  ;;  %v317_v12 = vpop.f32.mrf.mxu2 }
  0xc5   :  { %503 = vst.msk [vmem:[%s1012_s4 + $0x8] sm:$0xf] %vm500_vm1, %v486_v9  ;;  %v462_v14 = vadd.f32 %v895_v16, %v442_v10  ;;  %v435_v15 = vmul.f32 %v890_v13, %v415_v11  ;;  %v366_v18 = vpop.f32.mrf.mxu3 }
  0xc6   :  { %v367_v19 = vadd.f32 %v366_v18, %v317_v12  ;;  %v299_v20 = vpop.f32.mrf.mxu0 }
  0xc7   :  { %v478_v21 = vmax.f32 %v462_v14, 0.0  ;;  %v455_v22 = vadd.f32 %v895_v16, %v435_v15  ;;  %v348_v24 = vpop.f32.mrf.mxu1  ;;  %v53_v14 = vld [vmem:[#allocation2 + $0x78] sm:$0xff] }
  0xc8   :  { %v388_v25 = vadd.f32 %v367_v19, %v50_v17  ;;  %v349_v26 = vadd.f32 %v348_v24, %v299_v20 }
  0xc9   :  { %v494_v27 = vpack.c.bf16 %v478_v21, %v478_v21  ;;  %v471_v28 = vmax.f32 %v455_v22, 0.0 }
  0xca   :  { %v423_v29 = vld [vmem:[#allocation2 + $0x58] sm:$0xff]  ;;  %405 = vst.msk [vmem:[#allocation2 + $0x60] sm:$0xff] %vm21_vm0, %v388_v25  ;;  %v381_v30 = vadd.f32 %v349_v26, %v43_v23 }
  0xcb   :  { %511 = vst.msk [vmem:[%s1012_s4 + $0x28] sm:$0xf] %vm500_vm1, %v494_v27  ;;  %v487_v31 = vpack.c.bf16 %v471_v28, %v471_v28  ;;  %v443_v32 = vmul.f32 %v890_v13, %v423_v29  ;;  %v416_v33 = vld [vmem:[#allocation2 + $0x20] sm:$0xff] }
  0xcc   :  { %v436_v34 = vmul.f32 %v890_v13, %v416_v33  ;;  %398 = vst.msk [vmem:[#allocation2 + $0x28] sm:$0xff] %vm21_vm0, %v381_v30  ;;  %v319_v35 = vpop.f32.mrf.mxu2 }
  0xcd   :  { %504 = vst.msk [vmem:[%s1012_s4 + $0xc] sm:$0xf] %vm500_vm1, %v487_v31  ;;  %v463_v36 = vadd.f32 %v895_v16, %v443_v32  ;;  %v368_v38 = vpop.f32.mrf.mxu3 }
  0xce   :  { %v456_v39 = vadd.f32 %v895_v16, %v436_v34  ;;  %v369_v40 = vadd.f32 %v368_v38, %v319_v35  ;;  %v302_v41 = vpop.f32.mrf.mxu0 }
  0xcf   :  { %v479_v42 = vmax.f32 %v463_v36, 0.0  ;;  %v351_v44 = vpop.f32.mrf.mxu1 }
  0xd0   :  { %v472_v45 = vmax.f32 %v456_v39, 0.0  ;;  %v389_v46 = vadd.f32 %v369_v40, %v51_v37  ;;  %v352_v47 = vadd.f32 %v351_v44, %v302_v41 }
  0xd1   :  { %v495_v48 = vpack.c.bf16 %v479_v42, %v479_v42  ;;  %v424_v49 = vld [vmem:[#allocation2 + $0x60] sm:$0xff] }
  0xd2   :  { %v488_v50 = vpack.c.bf16 %v472_v45, %v472_v45  ;;  %v444_v51 = vmul.f32 %v890_v13, %v424_v49  ;;  %406 = vst.msk [vmem:[#allocation2 + $0x68] sm:$0xff] %vm21_vm0, %v389_v46  ;;  %v382_v52 = vadd.f32 %v352_v47, %v44_v43 }
  0xd3   :  { %512 = vst.msk [vmem:[%s1012_s4 + $0x2c] sm:$0xf] %vm500_vm1, %v495_v48  ;;  %v417_v53 = vld [vmem:[#allocation2 + $0x28] sm:$0xff] }
  0xd4   :  { %505 = vst.msk [vmem:[%s1012_s4 + $0x10] sm:$0xf] %vm500_vm1, %v488_v50  ;;  %v464_v54 = vadd.f32 %v895_v16, %v444_v51  ;;  %v437_v55 = vmul.f32 %v890_v13, %v417_v53  ;;  %v322_v56 = vpop.f32.mrf.mxu2 }
  0xd5   :  { %399 = vst.msk [vmem:[#allocation2 + $0x30] sm:$0xff] %vm21_vm0, %v382_v52  ;;  %v371_v58 = vpop.f32.mrf.mxu3 }
  0xd6   :  { %v480_v59 = vmax.f32 %v464_v54, 0.0  ;;  %v457_v60 = vadd.f32 %v895_v16, %v437_v55  ;;  %v372_v61 = vadd.f32 %v371_v58, %v322_v56  ;;  %v304_v62 = vpop.f32.mrf.mxu0 }
  0xd7   :  { %v353_v0 = vpop.f32.mrf.mxu1 }
  0xd8   :  { %v496_v1 = vpack.c.bf16 %v480_v59, %v480_v59  ;;  %v473_v2 = vmax.f32 %v457_v60, 0.0  ;;  %v390_v3 = vadd.f32 %v372_v61, %v52_v57  ;;  %v354_v4 = vadd.f32 %v353_v0, %v304_v62 }
  0xd9   :  { %v425_v5 = vld [vmem:[#allocation2 + $0x68] sm:$0xff] }
  0xda   :  { %513 = vst.msk [vmem:[%s1012_s4 + $0x30] sm:$0xf] %vm500_vm1, %v496_v1  ;;  %v489_v6 = vpack.c.bf16 %v473_v2, %v473_v2  ;;  %v445_v7 = vmul.f32 %v890_v13, %v425_v5  ;;  %v383_v8 = vadd.f32 %v354_v4, %v45_v63 }
  0xdb   :  { %407 = vst.msk [vmem:[#allocation2 + $0x70] sm:$0xff] %vm21_vm0, %v390_v3 }
  0xdc   :  { %506 = vst.msk [vmem:[%s1012_s4 + $0x14] sm:$0xf] %vm500_vm1, %v489_v6  ;;  %v465_v9 = vadd.f32 %v895_v16, %v445_v7  ;;  %v418_v10 = vld [vmem:[#allocation2 + $0x30] sm:$0xff]  ;;  %v324_v11 = vpop.f32.mrf.mxu2 }
  0xdd   :  { %v438_v12 = vmul.f32 %v890_v13, %v418_v10  ;;  %400 = vst.msk [vmem:[#allocation2 + $0x38] sm:$0xff] %vm21_vm0, %v383_v8  ;;  %v373_v15 = vpop.f32.mrf.mxu3 }
  0xde   :  { %v481_v17 = vmax.f32 %v465_v9, 0.0  ;;  %v374_v18 = vadd.f32 %v373_v15, %v324_v11 }
  0xdf   :  { %v458_v19 = vadd.f32 %v895_v16, %v438_v12 }
  0xe0   :  { %v497_v20 = vpack.c.bf16 %v481_v17, %v481_v17  ;;  %v391_v21 = vadd.f32 %v374_v18, %v53_v14 }
  0xe1   :  { %v474_v22 = vmax.f32 %v458_v19, 0.0 }
  0xe2   :  { %514 = vst.msk [vmem:[%s1012_s4 + $0x34] sm:$0xf] %vm500_vm1, %v497_v20  ;;  %v426_v23 = vld [vmem:[#allocation2 + $0x70] sm:$0xff] }
  0xe3   :  { %v490_v24 = vpack.c.bf16 %v474_v22, %v474_v22  ;;  %v446_v25 = vmul.f32 %v890_v13, %v426_v23  ;;  %408 = vst.msk [vmem:[#allocation2 + $0x78] sm:$0xff] %vm21_vm0, %v391_v21 }
  0xe4   :  { %v419_v26 = vld [vmem:[#allocation2 + $0x38] sm:$0xff] }
  0xe5   :  { %507 = vst.msk [vmem:[%s1012_s4 + $0x18] sm:$0xf] %vm500_vm1, %v490_v24  ;;  %v466_v27 = vadd.f32 %v895_v16, %v446_v25  ;;  %v439_v28 = vmul.f32 %v890_v13, %v419_v26 }
  0xe7   :  { %v482_v29 = vmax.f32 %v466_v27, 0.0  ;;  %v459_v30 = vadd.f32 %v895_v16, %v439_v28 }
  0xe9   :  { %v498_v31 = vpack.c.bf16 %v482_v29, %v482_v29  ;;  %v475_v32 = vmax.f32 %v459_v30, 0.0 }
  0xea   :  { %v427_v33 = vld [vmem:[#allocation2 + $0x78] sm:$0xff] }
  0xeb   :  { %515 = vst.msk [vmem:[%s1012_s4 + $0x38] sm:$0xf] %vm500_vm1, %v498_v31  ;;  %v491_v34 = vpack.c.bf16 %v475_v32, %v475_v32  ;;  %v447_v35 = vmul.f32 %v890_v13, %v427_v33 }
  0xed   :  { %508 = vst.msk [vmem:[%s1012_s4 + $0x1c] sm:$0xf] %vm500_vm1, %v491_v34  ;;  %v467_v36 = vadd.f32 %v895_v16, %v447_v35 }
  0xef   :  { %v483_v37 = vmax.f32 %v467_v36, 0.0 }
  0xf1   :  { %v499_v38 = vpack.c.bf16 %v483_v37, %v483_v37 }
  0xf3   :  { %516 = vst.msk [vmem:[%s1012_s4 + $0x3c] sm:$0xf] %vm500_vm1, %v499_v38 }

// kernel: _lambda_.17
= control target key start
LH: loop header
LB: loop body
LE: loop exit
PB: predicated region body
PF: predicated region fallthrough
CT: control target
= control target key end

     0   :  { %vm24_vm0 = vcmask 261120   ;;  %v553_v42 = vmov 0.0   ;;  %vm374_vm1 = vcmask 257024   ;;  %s728_s1 = inlined_call_operand.vmem [shape: bf16[384,32], index: 1, kind: input, shape index: {}]   ;;  %s729_s0 = inlined_call_operand.vmem [shape: bf16[32,384], index: 0, kind: input, shape index: {}]   ;;  %s730_s2 = inlined_call_operand.vmem [shape: f32[1,32], index: 2, kind: input, shape index: {}]   ;;  %s731_s3 = inlined_call_operand.vmem [shape: f32[1,32], index: 3, kind: input, shape index: {}]   ;;  %s732_s4 = inlined_call_operand.vmem [shape: bf16[32,32], index: 4, kind: input, shape index: {}, may-alias: {4,5}]   ;;  %s733_s5 = inlined_call_operand.vmem [shape: bf16[32,32], index: 5, kind: output, shape index: {}, may-alias: {4,5}]  }
   0x1   :  { %v516_v0 = vld [vmem:[%s728_s1 + $0x38] sm:$0xff]  ;;  %v515_v3 = vld [vmem:[%s728_s1 + $0x30] sm:$0xff]  ;;  %v514_v6 = vld [vmem:[%s728_s1 + $0x28] sm:$0xff]  ;;  %25 = vst.msk [vmem:[#allocation2] sm:$0xff] %vm24_vm0, %v553_v42 }
   0x2   :  { %v524_v1 = vld [vmem:[%s728_s1 + $0x78] sm:$0xff]  ;;  %265 = vmatpush.bf16.msra.mxu0 %v516_v0  ;;  %v523_v4 = vld [vmem:[%s728_s1 + $0x70] sm:$0xff]  ;;  %542 = vmatpush.bf16.msra.mxu3 %v516_v0  ;;  %v522_v7 = vld [vmem:[%s728_s1 + $0x68] sm:$0xff]  ;;  %26 = vst.msk [vmem:[#allocation2 + $0x8] sm:$0xff] %vm24_vm0, %v553_v42 }
   0x3   :  { %v532_v2 = vld [vmem:[%s728_s1 + $0xb8] sm:$0xff]  ;;  %284 = vmatpush.bf16.msra.mxu1 %v524_v1  ;;  %v531_v5 = vld [vmem:[%s728_s1 + $0xb0] sm:$0xff]  ;;  %v530_v8 = vld [vmem:[%s728_s1 + $0xa8] sm:$0xff]  ;;  %27 = vst.msk [vmem:[#allocation2 + $0x10] sm:$0xff] %vm24_vm0, %v553_v42 }
   0x4   :  { %303 = vmatpush.bf16.msra.mxu2 %v532_v2  ;;  %v513_v9 = vld [vmem:[%s728_s1 + $0x20] sm:$0xff]  ;;  %v512_v12 = vld [vmem:[%s728_s1 + $0x18] sm:$0xff]  ;;  %v511_v15 = vld [vmem:[%s728_s1 + $0x10] sm:$0xff]  ;;  %28 = vst.msk [vmem:[#allocation2 + $0x18] sm:$0xff] %vm24_vm0, %v553_v42 }
   0x5   :  { %v521_v10 = vld [vmem:[%s728_s1 + $0x60] sm:$0xff]  ;;  %v520_v13 = vld [vmem:[%s728_s1 + $0x58] sm:$0xff]  ;;  %v519_v16 = vld [vmem:[%s728_s1 + $0x50] sm:$0xff] }
   0x6   :  { %266 = vmatpush.bf16.msra.mxu0 %v515_v3  ;;  %543 = vmatpush.bf16.msra.mxu3 %v515_v3  ;;  %v529_v11 = vld [vmem:[%s728_s1 + $0xa0] sm:$0xff]  ;;  %v528_v14 = vld [vmem:[%s728_s1 + $0x98] sm:$0xff]  ;;  %v527_v17 = vld [vmem:[%s728_s1 + $0x90] sm:$0xff] }
   0x7   :  { %285 = vmatpush.bf16.msra.mxu1 %v523_v4  ;;  %v510_v18 = vld [vmem:[%s728_s1 + $0x8] sm:$0xff]  ;;  %v509_v21 = vld [vmem:[%s728_s1] sm:$0xff]  ;;  %v387_v27 = vld [vmem:[%s729_s0 + $0xc] sm:$0xf0] }
   0x8   :  { %304 = vmatpush.bf16.msra.mxu2 %v531_v5  ;;  %v518_v19 = vld [vmem:[%s728_s1 + $0x48] sm:$0xff]  ;;  %v517_v22 = vld [vmem:[%s728_s1 + $0x40] sm:$0xff]  ;;  %v505_v29 = vld [vmem:[%s729_s0 + $0x10] sm:$0xf0] }
   0x9   :  { %v526_v20 = vld [vmem:[%s728_s1 + $0x88] sm:$0xff]  ;;  %v525_v23 = vld [vmem:[%s728_s1 + $0x80] sm:$0xff]  ;;  %v397_v30 = vld [vmem:[%s729_s0 + $0x18] sm:$0xf] }
   0xa   :  { %267 = vmatpush.bf16.msra.mxu0 %v514_v6  ;;  %544 = vmatpush.bf16.msra.mxu3 %v514_v6  ;;  %v385_v24 = vld [vmem:[%s729_s0] sm:$0xf]  ;;  %v504_v25 = vld [vmem:[%s729_s0 + $0x8] sm:$0xf0]  ;;  %v503_v26 = vld [vmem:[%s729_s0 + $0x4] sm:$0xf] }
   0xb   :  { %286 = vmatpush.bf16.msra.mxu1 %v522_v7  ;;  %v393_v28 = vld [vmem:[%s729_s0 + $0x8] sm:$0xf]  ;;  %v507_v31 = vld [vmem:[%s729_s0 + $0x20] sm:$0xf0]  ;;  %v386_v32 = vor.u32 %v504_v25, %v385_v24  ;;  %v390_v33 = vor.u32 %v503_v26, %v387_v27  ;;  %v506_v36 = vld [vmem:[%s729_s0 + $0x1c] sm:$0xf] }
   0xc   :  { %305 = vmatpush.bf16.msra.mxu2 %v530_v8  ;;  %v394_v34 = vor.u32 %v505_v29, %v393_v28  ;;  %v398_v35 = vor.u32 %v507_v31, %v397_v30  ;;  %v399_v37 = vld [vmem:[%s729_s0 + $0x24] sm:$0xf0]  ;;  %v405_v38 = vld [vmem:[%s729_s0 + $0x20] sm:$0xf]  ;;  %v508_v39 = vld [vmem:[%s729_s0 + $0x28] sm:$0xf0] }
   0xd   :  { %v402_v40 = vor.u32 %v506_v36, %v399_v37  ;;  %v406_v41 = vor.u32 %v508_v39, %v405_v38  ;;  %v29_v46 = vld [vmem:[#allocation2] sm:$0xff]  ;;  %v30_v54 = vld [vmem:[#allocation2 + $0x8] sm:$0xff]  ;;  %v31_v3 = vld [vmem:[#allocation2 + $0x10] sm:$0xff] }
   0xe   :  { %268 = vmatpush.bf16.msra.mxu0 %v513_v9  ;;  %545 = vmatpush.bf16.msra.mxu3 %v513_v9  ;;  %v534_v52 = vld [vmem:[%s732_s4] sm:$0xff]  }
   0xf   :  { %287 = vmatpush.bf16.msra.mxu1 %v521_v10  ;;  %v535_v56 = vunpack.c.l.bf16 %v534_v52  ;;  %v551_v59 = vld [vmem:[%s730_s2] ss:$0 sm:$0xff]  ;;  %v536_v6 = vunpack.c.h.bf16 %v534_v52 }
  0x10   :  { %306 = vmatpush.bf16.msra.mxu2 %v529_v11  ;;  %v552_v0 = vld [vmem:[%s731_s3] ss:$0 sm:$0xff] }
  0x12   :  { %269 = vmatpush.bf16.msra.mxu0 %v512_v12  ;;  %546 = vmatpush.bf16.msra.mxu3 %v512_v12 }
  0x13   :  { %288 = vmatpush.bf16.msra.mxu1 %v520_v13 }
  0x14   :  { %307 = vmatpush.bf16.msra.mxu2 %v528_v14 }
  0x16   :  { %270 = vmatpush.bf16.msra.mxu0 %v511_v15  ;;  %547 = vmatpush.bf16.msra.mxu3 %v511_v15  ;;  %v541_v15 = vld [vmem:[%s732_s4 + $0x8] sm:$0xff]  }
  0x17   :  { %289 = vmatpush.bf16.msra.mxu1 %v519_v16  ;;  %v540_v30 = vunpack.c.h.bf16 %v541_v15 }
  0x18   :  { %308 = vmatpush.bf16.msra.mxu2 %v527_v17 }
  0x1a   :  { %271 = vmatpush.bf16.msra.mxu0 %v510_v18  ;;  %548 = vmatpush.bf16.msra.mxu3 %v510_v18  ;;  %v32_v18 = vld [vmem:[#allocation2 + $0x18] sm:$0xff] }
  0x1b   :  { %290 = vmatpush.bf16.msra.mxu1 %v518_v19 }
  0x1c   :  { %309 = vmatpush.bf16.msra.mxu2 %v526_v20 }
  0x1e   :  { %272 = vmatpush.bf16.msra.mxu0 %v509_v21  ;;  %549 = vmatpush.bf16.msra.mxu3 %v509_v21  ;;  %v539_v21 = vunpack.c.l.bf16 %v541_v15 }
  0x1f   :  { %291 = vmatpush.bf16.msra.mxu1 %v517_v22 }
  0x20   :  { %310 = vmatpush.bf16.msra.mxu2 %v525_v23 }
  0x21   :  { %273 = vmatmul.bf16.vlgmr.msra.gmra.mxu0 %v386_v32  ;;  %278 = vmatmul.bf16.vlgmr.msra.gmra.mxu3 %v398_v35 }
  0x22   :  { %292 = vmatmul.bf16.vlgmr.msra.gmra.mxu1 %v390_v33 }
  0x23   :  { %311 = vmatmul.bf16.vlgmr.msra.gmra.mxu2 %v394_v34 }
  0x32   :  { %297 = vmatmul.bf16.gmra.mxu1 %v402_v40 }
  0x33   :  { %316 = vmatmul.bf16.gmra.mxu2 %v406_v41 }
  0x9e   :  { %v274_v44 = vpop.f32.mrf.mxu0 }
  0x9f   :  { %v293_v43 = vpop.f32.mrf.mxu1 }
  0xa0   :  { %v294_v45 = vadd.f32 %v293_v43, %v274_v44 }
  0xa4   :  { %v279_v62 = vpop.f32.mrf.mxu3 }
  0xa6   :  { %v312_v47 = vpop.f32.mrf.mxu2  ;;  %v276_v51 = vpop.f32.mrf.mxu0 }
  0xa7   :  { %v313_v48 = vadd.f32 %v312_v47, %v294_v45  ;;  %v295_v49 = vpop.f32.mrf.mxu1 }
  0xa8   :  { %v296_v53 = vadd.f32 %v295_v49, %v276_v51 }
  0xa9   :  { %v322_v50 = vadd.f32 %v313_v48, %v29_v46 }
  0xab   :  { %327 = vst.msk [vmem:[#allocation2] sm:$0xff] %vm24_vm0, %v322_v50 }
  0xac   :  { %v281_v14 = vpop.f32.mrf.mxu3 }
  0xae   :  { %v314_v55 = vpop.f32.mrf.mxu2 }
  0xaf   :  { %v315_v57 = vadd.f32 %v314_v55, %v296_v53  ;;  %v298_v58 = vpop.f32.mrf.mxu1 }
  0xb0   :  { %v299_v1 = vadd.f32 %v298_v58, %v279_v62 }
  0xb1   :  { %v323_v60 = vadd.f32 %v315_v57, %v30_v54 }
  0xb2   :  { %v334_v61 = vld [vmem:[#allocation2] sm:$0xff] }
  0xb3   :  { %v346_v63 = vadd.f32 %v535_v56, %v334_v61  ;;  %328 = vst.msk [vmem:[#allocation2 + $0x8] sm:$0xff] %vm24_vm0, %v323_v60 }
  0xb5   :  { %v354_v2 = vmul.f32 %v551_v59, %v346_v63 }
  0xb6   :  { %v317_v4 = vpop.f32.mrf.mxu2 }
  0xb7   :  { %v362_v5 = vadd.f32 %v552_v0, %v354_v2  ;;  %v318_v7 = vadd.f32 %v317_v4, %v299_v1  ;;  %v300_v11 = vpop.f32.mrf.mxu1 }
  0xb8   :  { %v301_v17 = vadd.f32 %v300_v11, %v281_v14 }
  0xb9   :  { %v366_v8 = vmax.f32 %v362_v5, 0.0  ;;  %v324_v9 = vadd.f32 %v318_v7, %v31_v3 }
  0xba   :  { %v335_v10 = vld [vmem:[#allocation2 + $0x8] sm:$0xff] }
  0xbb   :  { %v370_v12 = vpack.c.bf16 %v366_v8, %v366_v8  ;;  %v347_v13 = vadd.f32 %v536_v6, %v335_v10  ;;  %329 = vst.msk [vmem:[#allocation2 + $0x10] sm:$0xff] %vm24_vm0, %v324_v9 }
  0xbd   :  { %375 = vst.msk [vmem:[%s733_s5] sm:$0xf] %vm374_vm1, %v370_v12  ;;  %v355_v16 = vmul.f32 %v551_v59, %v347_v13 }
  0xbe   :  { %v319_v19 = vpop.f32.mrf.mxu2 }
  0xbf   :  { %v363_v20 = vadd.f32 %v552_v0, %v355_v16  ;;  %v320_v22 = vadd.f32 %v319_v19, %v301_v17 }
  0xc1   :  { %v367_v23 = vmax.f32 %v363_v20, 0.0  ;;  %v325_v24 = vadd.f32 %v320_v22, %v32_v18 }
  0xc2   :  { %v336_v25 = vld [vmem:[#allocation2 + $0x10] sm:$0xff] }
  0xc3   :  { %v371_v26 = vpack.c.bf16 %v367_v23, %v367_v23  ;;  %v348_v27 = vadd.f32 %v539_v21, %v336_v25  ;;  %330 = vst.msk [vmem:[#allocation2 + $0x18] sm:$0xff] %vm24_vm0, %v325_v24 }
  0xc5   :  { %376 = vst.msk [vmem:[%s733_s5 + $0x4] sm:$0xf] %vm374_vm1, %v371_v26  ;;  %v356_v28 = vmul.f32 %v551_v59, %v348_v27 }
  0xc7   :  { %v364_v29 = vadd.f32 %v552_v0, %v356_v28 }
  0xc9   :  { %v368_v31 = vmax.f32 %v364_v29, 0.0 }
  0xca   :  { %v337_v32 = vld [vmem:[#allocation2 + $0x18] sm:$0xff] }
  0xcb   :  { %v372_v33 = vpack.c.bf16 %v368_v31, %v368_v31  ;;  %v349_v34 = vadd.f32 %v540_v30, %v337_v32 }
  0xcd   :  { %377 = vst.msk [vmem:[%s733_s5 + $0x8] sm:$0xf] %vm374_vm1, %v372_v33  ;;  %v357_v35 = vmul.f32 %v551_v59, %v349_v34 }
  0xcf   :  { %v365_v36 = vadd.f32 %v552_v0, %v357_v35 }
  0xd1   :  { %v369_v37 = vmax.f32 %v365_v36, 0.0 }
  0xd3   :  { %v373_v38 = vpack.c.bf16 %v369_v37, %v369_v37 }
  0xd5   :  { %378 = vst.msk [vmem:[%s733_s5 + $0xc] sm:$0xf] %vm374_vm1, %v373_v38 }

// kernel: _lambda_.16
= control target key start
LH: loop header
LB: loop body
LE: loop exit
PB: predicated region body
PF: predicated region fallthrough
CT: control target
= control target key end

     0   :  { %vm21_vm0 = vcmask 261120   ;;  %v529_v42 = vmov 0.0   ;;  %vm359_vm1 = vcmask 257024   ;;  %s693_s1 = inlined_call_operand.vmem [shape: bf16[384,32], index: 1, kind: input, shape index: {}]   ;;  %s694_s0 = inlined_call_operand.vmem [shape: bf16[32,384], index: 0, kind: input, shape index: {}]   ;;  %s695_s2 = inlined_call_operand.vmem [shape: f32[1,32], index: 2, kind: input, shape index: {}]   ;;  %s696_s3 = inlined_call_operand.vmem [shape: f32[1,32], index: 3, kind: input, shape index: {}]   ;;  %s697_s4 = inlined_call_operand.vmem [shape: bf16[32,32], index: 4, kind: output, shape index: {}]  }
   0x1   :  { %v501_v0 = vld [vmem:[%s693_s1 + $0x38] sm:$0xff]  ;;  %v500_v3 = vld [vmem:[%s693_s1 + $0x30] sm:$0xff]  ;;  %v499_v6 = vld [vmem:[%s693_s1 + $0x28] sm:$0xff]  ;;  %22 = vst.msk [vmem:[#allocation2] sm:$0xff] %vm21_vm0, %v529_v42 }
   0x2   :  { %v509_v1 = vld [vmem:[%s693_s1 + $0x78] sm:$0xff]  ;;  %262 = vmatpush.bf16.msra.mxu0 %v501_v0  ;;  %v508_v4 = vld [vmem:[%s693_s1 + $0x70] sm:$0xff]  ;;  %518 = vmatpush.bf16.msra.mxu3 %v501_v0  ;;  %v507_v7 = vld [vmem:[%s693_s1 + $0x68] sm:$0xff]  ;;  %23 = vst.msk [vmem:[#allocation2 + $0x8] sm:$0xff] %vm21_vm0, %v529_v42 }
   0x3   :  { %v517_v2 = vld [vmem:[%s693_s1 + $0xb8] sm:$0xff]  ;;  %281 = vmatpush.bf16.msra.mxu1 %v509_v1  ;;  %v516_v5 = vld [vmem:[%s693_s1 + $0xb0] sm:$0xff]  ;;  %v515_v8 = vld [vmem:[%s693_s1 + $0xa8] sm:$0xff]  ;;  %24 = vst.msk [vmem:[#allocation2 + $0x10] sm:$0xff] %vm21_vm0, %v529_v42 }
   0x4   :  { %300 = vmatpush.bf16.msra.mxu2 %v517_v2  ;;  %v498_v9 = vld [vmem:[%s693_s1 + $0x20] sm:$0xff]  ;;  %v497_v12 = vld [vmem:[%s693_s1 + $0x18] sm:$0xff]  ;;  %v496_v15 = vld [vmem:[%s693_s1 + $0x10] sm:$0xff]  ;;  %25 = vst.msk [vmem:[#allocation2 + $0x18] sm:$0xff] %vm21_vm0, %v529_v42 }
   0x5   :  { %v506_v10 = vld [vmem:[%s693_s1 + $0x60] sm:$0xff]  ;;  %v505_v13 = vld [vmem:[%s693_s1 + $0x58] sm:$0xff]  ;;  %v504_v16 = vld [vmem:[%s693_s1 + $0x50] sm:$0xff] }
   0x6   :  { %263 = vmatpush.bf16.msra.mxu0 %v500_v3  ;;  %519 = vmatpush.bf16.msra.mxu3 %v500_v3  ;;  %v514_v11 = vld [vmem:[%s693_s1 + $0xa0] sm:$0xff]  ;;  %v513_v14 = vld [vmem:[%s693_s1 + $0x98] sm:$0xff]  ;;  %v512_v17 = vld [vmem:[%s693_s1 + $0x90] sm:$0xff] }
   0x7   :  { %282 = vmatpush.bf16.msra.mxu1 %v508_v4  ;;  %v495_v18 = vld [vmem:[%s693_s1 + $0x8] sm:$0xff]  ;;  %v494_v21 = vld [vmem:[%s693_s1] sm:$0xff]  ;;  %v372_v27 = vld [vmem:[%s694_s0 + $0xc] sm:$0xf0] }
   0x8   :  { %301 = vmatpush.bf16.msra.mxu2 %v516_v5  ;;  %v503_v19 = vld [vmem:[%s693_s1 + $0x48] sm:$0xff]  ;;  %v502_v22 = vld [vmem:[%s693_s1 + $0x40] sm:$0xff]  ;;  %v490_v29 = vld [vmem:[%s694_s0 + $0x10] sm:$0xf0] }
   0x9   :  { %v511_v20 = vld [vmem:[%s693_s1 + $0x88] sm:$0xff]  ;;  %v510_v23 = vld [vmem:[%s693_s1 + $0x80] sm:$0xff]  ;;  %v382_v30 = vld [vmem:[%s694_s0 + $0x18] sm:$0xf] }
   0xa   :  { %264 = vmatpush.bf16.msra.mxu0 %v499_v6  ;;  %520 = vmatpush.bf16.msra.mxu3 %v499_v6  ;;  %v370_v24 = vld [vmem:[%s694_s0] sm:$0xf]  ;;  %v489_v25 = vld [vmem:[%s694_s0 + $0x8] sm:$0xf0]  ;;  %v488_v26 = vld [vmem:[%s694_s0 + $0x4] sm:$0xf] }
   0xb   :  { %283 = vmatpush.bf16.msra.mxu1 %v507_v7  ;;  %v378_v28 = vld [vmem:[%s694_s0 + $0x8] sm:$0xf]  ;;  %v492_v31 = vld [vmem:[%s694_s0 + $0x20] sm:$0xf0]  ;;  %v371_v32 = vor.u32 %v489_v25, %v370_v24  ;;  %v375_v33 = vor.u32 %v488_v26, %v372_v27  ;;  %v491_v36 = vld [vmem:[%s694_s0 + $0x1c] sm:$0xf] }
   0xc   :  { %302 = vmatpush.bf16.msra.mxu2 %v515_v8  ;;  %v379_v34 = vor.u32 %v490_v29, %v378_v28  ;;  %v383_v35 = vor.u32 %v492_v31, %v382_v30  ;;  %v384_v37 = vld [vmem:[%s694_s0 + $0x24] sm:$0xf0]  ;;  %v390_v38 = vld [vmem:[%s694_s0 + $0x20] sm:$0xf]  ;;  %v493_v39 = vld [vmem:[%s694_s0 + $0x28] sm:$0xf0] }
   0xd   :  { %v387_v40 = vor.u32 %v491_v36, %v384_v37  ;;  %v391_v41 = vor.u32 %v493_v39, %v390_v38  ;;  %v26_v46 = vld [vmem:[#allocation2] sm:$0xff]  ;;  %v27_v53 = vld [vmem:[#allocation2 + $0x8] sm:$0xff]  ;;  %v28_v1 = vld [vmem:[#allocation2 + $0x10] sm:$0xff] }
   0xe   :  { %265 = vmatpush.bf16.msra.mxu0 %v498_v9  ;;  %521 = vmatpush.bf16.msra.mxu3 %v498_v9  ;;  %v527_v55 = vld [vmem:[%s695_s2] ss:$0 sm:$0xff] }
   0xf   :  { %284 = vmatpush.bf16.msra.mxu1 %v506_v10  ;;  %v528_v58 = vld [vmem:[%s696_s3] ss:$0 sm:$0xff] }
  0x10   :  { %303 = vmatpush.bf16.msra.mxu2 %v514_v11 }
  0x12   :  { %266 = vmatpush.bf16.msra.mxu0 %v497_v12  ;;  %522 = vmatpush.bf16.msra.mxu3 %v497_v12 }
  0x13   :  { %285 = vmatpush.bf16.msra.mxu1 %v505_v13  ;;  %v29_v13 = vld [vmem:[#allocation2 + $0x18] sm:$0xff] }
  0x14   :  { %304 = vmatpush.bf16.msra.mxu2 %v513_v14 }
  0x16   :  { %267 = vmatpush.bf16.msra.mxu0 %v496_v15  ;;  %523 = vmatpush.bf16.msra.mxu3 %v496_v15 }
  0x17   :  { %286 = vmatpush.bf16.msra.mxu1 %v504_v16 }
  0x18   :  { %305 = vmatpush.bf16.msra.mxu2 %v512_v17 }
  0x1a   :  { %268 = vmatpush.bf16.msra.mxu0 %v495_v18  ;;  %524 = vmatpush.bf16.msra.mxu3 %v495_v18 }
  0x1b   :  { %287 = vmatpush.bf16.msra.mxu1 %v503_v19 }
  0x1c   :  { %306 = vmatpush.bf16.msra.mxu2 %v511_v20 }
  0x1e   :  { %269 = vmatpush.bf16.msra.mxu0 %v494_v21  ;;  %525 = vmatpush.bf16.msra.mxu3 %v494_v21 }
  0x1f   :  { %288 = vmatpush.bf16.msra.mxu1 %v502_v22 }
  0x20   :  { %307 = vmatpush.bf16.msra.mxu2 %v510_v23 }
  0x21   :  { %270 = vmatmul.bf16.vlgmr.msra.gmra.mxu0 %v371_v32  ;;  %275 = vmatmul.bf16.vlgmr.msra.gmra.mxu3 %v383_v35 }
  0x22   :  { %289 = vmatmul.bf16.vlgmr.msra.gmra.mxu1 %v375_v33 }
  0x23   :  { %308 = vmatmul.bf16.vlgmr.msra.gmra.mxu2 %v379_v34 }
  0x32   :  { %294 = vmatmul.bf16.gmra.mxu1 %v387_v40 }
  0x33   :  { %313 = vmatmul.bf16.gmra.mxu2 %v391_v41 }
  0x9e   :  { %v271_v44 = vpop.f32.mrf.mxu0 }
  0x9f   :  { %v290_v43 = vpop.f32.mrf.mxu1 }
  0xa0   :  { %v291_v45 = vadd.f32 %v290_v43, %v271_v44 }
  0xa4   :  { %v276_v61 = vpop.f32.mrf.mxu3 }
  0xa6   :  { %v309_v47 = vpop.f32.mrf.mxu2  ;;  %v273_v51 = vpop.f32.mrf.mxu0 }
  0xa7   :  { %v310_v48 = vadd.f32 %v309_v47, %v291_v45  ;;  %v292_v49 = vpop.f32.mrf.mxu1 }
  0xa8   :  { %v293_v52 = vadd.f32 %v292_v49, %v273_v51 }
  0xa9   :  { %v319_v50 = vadd.f32 %v310_v48, %v26_v46 }
  0xab   :  { %324 = vst.msk [vmem:[#allocation2] sm:$0xff] %vm21_vm0, %v319_v50 }
  0xac   :  { %v278_v10 = vpop.f32.mrf.mxu3 }
  0xae   :  { %v311_v54 = vpop.f32.mrf.mxu2 }
  0xaf   :  { %v312_v56 = vadd.f32 %v311_v54, %v293_v52  ;;  %v295_v57 = vpop.f32.mrf.mxu1 }
  0xb0   :  { %v296_v63 = vadd.f32 %v295_v57, %v276_v61 }
  0xb1   :  { %v320_v59 = vadd.f32 %v312_v56, %v27_v53 }
  0xb2   :  { %v331_v60 = vld [vmem:[#allocation2] sm:$0xff] }
  0xb3   :  { %v339_v62 = vmul.f32 %v527_v55, %v331_v60  ;;  %325 = vst.msk [vmem:[#allocation2 + $0x8] sm:$0xff] %vm21_vm0, %v320_v59 }
  0xb5   :  { %v347_v0 = vadd.f32 %v528_v58, %v339_v62 }
  0xb6   :  { %v314_v2 = vpop.f32.mrf.mxu2 }
  0xb7   :  { %v351_v3 = vmax.f32 %v347_v0, 0.0  ;;  %v315_v4 = vadd.f32 %v314_v2, %v296_v63  ;;  %v297_v8 = vpop.f32.mrf.mxu1 }
  0xb8   :  { %v298_v12 = vadd.f32 %v297_v8, %v278_v10 }
  0xb9   :  { %v355_v5 = vpack.c.bf16 %v351_v3, %v351_v3  ;;  %v321_v6 = vadd.f32 %v315_v4, %v28_v1 }
  0xba   :  { %v332_v7 = vld [vmem:[#allocation2 + $0x8] sm:$0xff] }
  0xbb   :  { %360 = vst.msk [vmem:[%s697_s4] sm:$0xf] %vm359_vm1, %v355_v5  ;;  %v340_v9 = vmul.f32 %v527_v55, %v332_v7 }
  0xbc   :  { %326 = vst.msk [vmem:[#allocation2 + $0x10] sm:$0xff] %vm21_vm0, %v321_v6 }
  0xbd   :  { %v348_v11 = vadd.f32 %v528_v58, %v340_v9 }
  0xbe   :  { %v316_v14 = vpop.f32.mrf.mxu2 }
  0xbf   :  { %v352_v15 = vmax.f32 %v348_v11, 0.0  ;;  %v317_v16 = vadd.f32 %v316_v14, %v298_v12 }
  0xc1   :  { %v356_v17 = vpack.c.bf16 %v352_v15, %v352_v15  ;;  %v322_v18 = vadd.f32 %v317_v16, %v29_v13 }
  0xc3   :  { %361 = vst.msk [vmem:[%s697_s4 + $0x4] sm:$0xf] %vm359_vm1, %v356_v17  ;;  %v333_v19 = vld [vmem:[#allocation2 + $0x10] sm:$0xff] }
  0xc4   :  { %v341_v20 = vmul.f32 %v527_v55, %v333_v19  ;;  %327 = vst.msk [vmem:[#allocation2 + $0x18] sm:$0xff] %vm21_vm0, %v322_v18 }
  0xc6   :  { %v349_v21 = vadd.f32 %v528_v58, %v341_v20 }
  0xc8   :  { %v353_v22 = vmax.f32 %v349_v21, 0.0 }
  0xca   :  { %v357_v23 = vpack.c.bf16 %v353_v22, %v353_v22 }
  0xcb   :  { %v334_v24 = vld [vmem:[#allocation2 + $0x18] sm:$0xff] }
  0xcc   :  { %362 = vst.msk [vmem:[%s697_s4 + $0x8] sm:$0xf] %vm359_vm1, %v357_v23  ;;  %v342_v25 = vmul.f32 %v527_v55, %v334_v24 }
  0xce   :  { %v350_v26 = vadd.f32 %v528_v58, %v342_v25 }
  0xd0   :  { %v354_v27 = vmax.f32 %v350_v26, 0.0 }
  0xd2   :  { %v358_v28 = vpack.c.bf16 %v354_v27, %v354_v27 }
  0xd4   :  { %363 = vst.msk [vmem:[%s697_s4 + $0xc] sm:$0xf] %vm359_vm1, %v358_v28 }

// kernel: _lambda_.18
= control target key start
LH: loop header
LB: loop body
LE: loop exit
PB: predicated region body
PF: predicated region fallthrough
CT: control target
= control target key end

     0   :  { %vm21_vm0 = vcmask 523264   ;;  %v529_v42 = vmov 0.0   ;;  %vm359_vm1 = vcmask 519168   ;;  %s693_s1 = inlined_call_operand.vmem [shape: bf16[384,64], index: 1, kind: input, shape index: {}]   ;;  %s694_s0 = inlined_call_operand.vmem [shape: bf16[32,384], index: 0, kind: input, shape index: {}]   ;;  %s695_s2 = inlined_call_operand.vmem [shape: f32[1,64], index: 2, kind: input, shape index: {}]   ;;  %s696_s3 = inlined_call_operand.vmem [shape: f32[1,64], index: 3, kind: input, shape index: {}]   ;;  %s697_s4 = inlined_call_operand.vmem [shape: bf16[32,64], index: 4, kind: output, shape index: {}]  }
   0x1   :  { %v501_v0 = vld [vmem:[%s693_s1 + $0x38] sm:$0xff]  ;;  %v500_v3 = vld [vmem:[%s693_s1 + $0x30] sm:$0xff]  ;;  %v499_v6 = vld [vmem:[%s693_s1 + $0x28] sm:$0xff]  ;;  %22 = vst.msk [vmem:[#allocation2] sm:$0xff] %vm21_vm0, %v529_v42 }
   0x2   :  { %v509_v1 = vld [vmem:[%s693_s1 + $0x78] sm:$0xff]  ;;  %262 = vmatpush.bf16.msra.mxu0 %v501_v0  ;;  %v508_v4 = vld [vmem:[%s693_s1 + $0x70] sm:$0xff]  ;;  %518 = vmatpush.bf16.msra.mxu3 %v501_v0  ;;  %v507_v7 = vld [vmem:[%s693_s1 + $0x68] sm:$0xff]  ;;  %23 = vst.msk [vmem:[#allocation2 + $0x8] sm:$0xff] %vm21_vm0, %v529_v42 }
   0x3   :  { %v517_v2 = vld [vmem:[%s693_s1 + $0xb8] sm:$0xff]  ;;  %281 = vmatpush.bf16.msra.mxu1 %v509_v1  ;;  %v516_v5 = vld [vmem:[%s693_s1 + $0xb0] sm:$0xff]  ;;  %v515_v8 = vld [vmem:[%s693_s1 + $0xa8] sm:$0xff]  ;;  %24 = vst.msk [vmem:[#allocation2 + $0x10] sm:$0xff] %vm21_vm0, %v529_v42 }
   0x4   :  { %300 = vmatpush.bf16.msra.mxu2 %v517_v2  ;;  %v498_v9 = vld [vmem:[%s693_s1 + $0x20] sm:$0xff]  ;;  %v497_v12 = vld [vmem:[%s693_s1 + $0x18] sm:$0xff]  ;;  %v496_v15 = vld [vmem:[%s693_s1 + $0x10] sm:$0xff]  ;;  %25 = vst.msk [vmem:[#allocation2 + $0x18] sm:$0xff] %vm21_vm0, %v529_v42 }
   0x5   :  { %v506_v10 = vld [vmem:[%s693_s1 + $0x60] sm:$0xff]  ;;  %v505_v13 = vld [vmem:[%s693_s1 + $0x58] sm:$0xff]  ;;  %v504_v16 = vld [vmem:[%s693_s1 + $0x50] sm:$0xff] }
   0x6   :  { %263 = vmatpush.bf16.msra.mxu0 %v500_v3  ;;  %519 = vmatpush.bf16.msra.mxu3 %v500_v3  ;;  %v514_v11 = vld [vmem:[%s693_s1 + $0xa0] sm:$0xff]  ;;  %v513_v14 = vld [vmem:[%s693_s1 + $0x98] sm:$0xff]  ;;  %v512_v17 = vld [vmem:[%s693_s1 + $0x90] sm:$0xff] }
   0x7   :  { %282 = vmatpush.bf16.msra.mxu1 %v508_v4  ;;  %v495_v18 = vld [vmem:[%s693_s1 + $0x8] sm:$0xff]  ;;  %v494_v21 = vld [vmem:[%s693_s1] sm:$0xff]  ;;  %v372_v27 = vld [vmem:[%s694_s0 + $0xc] sm:$0xf0] }
   0x8   :  { %301 = vmatpush.bf16.msra.mxu2 %v516_v5  ;;  %v503_v19 = vld [vmem:[%s693_s1 + $0x48] sm:$0xff]  ;;  %v502_v22 = vld [vmem:[%s693_s1 + $0x40] sm:$0xff]  ;;  %v490_v29 = vld [vmem:[%s694_s0 + $0x10] sm:$0xf0] }
   0x9   :  { %v511_v20 = vld [vmem:[%s693_s1 + $0x88] sm:$0xff]  ;;  %v510_v23 = vld [vmem:[%s693_s1 + $0x80] sm:$0xff]  ;;  %v382_v30 = vld [vmem:[%s694_s0 + $0x18] sm:$0xf] }
   0xa   :  { %264 = vmatpush.bf16.msra.mxu0 %v499_v6  ;;  %520 = vmatpush.bf16.msra.mxu3 %v499_v6  ;;  %v370_v24 = vld [vmem:[%s694_s0] sm:$0xf]  ;;  %v489_v25 = vld [vmem:[%s694_s0 + $0x8] sm:$0xf0]  ;;  %v488_v26 = vld [vmem:[%s694_s0 + $0x4] sm:$0xf] }
   0xb   :  { %283 = vmatpush.bf16.msra.mxu1 %v507_v7  ;;  %v378_v28 = vld [vmem:[%s694_s0 + $0x8] sm:$0xf]  ;;  %v492_v31 = vld [vmem:[%s694_s0 + $0x20] sm:$0xf0]  ;;  %v371_v32 = vor.u32 %v489_v25, %v370_v24  ;;  %v375_v33 = vor.u32 %v488_v26, %v372_v27  ;;  %v491_v36 = vld [vmem:[%s694_s0 + $0x1c] sm:$0xf] }
   0xc   :  { %302 = vmatpush.bf16.msra.mxu2 %v515_v8  ;;  %v379_v34 = vor.u32 %v490_v29, %v378_v28  ;;  %v383_v35 = vor.u32 %v492_v31, %v382_v30  ;;  %v384_v37 = vld [vmem:[%s694_s0 + $0x24] sm:$0xf0]  ;;  %v390_v38 = vld [vmem:[%s694_s0 + $0x20] sm:$0xf]  ;;  %v493_v39 = vld [vmem:[%s694_s0 + $0x28] sm:$0xf0] }
   0xd   :  { %v387_v40 = vor.u32 %v491_v36, %v384_v37  ;;  %v391_v41 = vor.u32 %v493_v39, %v390_v38  ;;  %v26_v46 = vld [vmem:[#allocation2] sm:$0xff]  ;;  %v27_v53 = vld [vmem:[#allocation2 + $0x8] sm:$0xff]  ;;  %v28_v1 = vld [vmem:[#allocation2 + $0x10] sm:$0xff] }
   0xe   :  { %265 = vmatpush.bf16.msra.mxu0 %v498_v9  ;;  %521 = vmatpush.bf16.msra.mxu3 %v498_v9  ;;  %v527_v55 = vld [vmem:[%s695_s2] ss:$0 sm:$0xff] }
   0xf   :  { %284 = vmatpush.bf16.msra.mxu1 %v506_v10  ;;  %v528_v58 = vld [vmem:[%s696_s3] ss:$0 sm:$0xff] }
  0x10   :  { %303 = vmatpush.bf16.msra.mxu2 %v514_v11 }
  0x12   :  { %266 = vmatpush.bf16.msra.mxu0 %v497_v12  ;;  %522 = vmatpush.bf16.msra.mxu3 %v497_v12 }
  0x13   :  { %285 = vmatpush.bf16.msra.mxu1 %v505_v13  ;;  %v29_v13 = vld [vmem:[#allocation2 + $0x18] sm:$0xff] }
  0x14   :  { %304 = vmatpush.bf16.msra.mxu2 %v513_v14 }
  0x16   :  { %267 = vmatpush.bf16.msra.mxu0 %v496_v15  ;;  %523 = vmatpush.bf16.msra.mxu3 %v496_v15 }
  0x17   :  { %286 = vmatpush.bf16.msra.mxu1 %v504_v16 }
  0x18   :  { %305 = vmatpush.bf16.msra.mxu2 %v512_v17 }
  0x1a   :  { %268 = vmatpush.bf16.msra.mxu0 %v495_v18  ;;  %524 = vmatpush.bf16.msra.mxu3 %v495_v18 }
  0x1b   :  { %287 = vmatpush.bf16.msra.mxu1 %v503_v19 }
  0x1c   :  { %306 = vmatpush.bf16.msra.mxu2 %v511_v20 }
  0x1e   :  { %269 = vmatpush.bf16.msra.mxu0 %v494_v21  ;;  %525 = vmatpush.bf16.msra.mxu3 %v494_v21 }
  0x1f   :  { %288 = vmatpush.bf16.msra.mxu1 %v502_v22 }
  0x20   :  { %307 = vmatpush.bf16.msra.mxu2 %v510_v23 }
  0x21   :  { %270 = vmatmul.bf16.vlgmr.msra.gmra.mxu0 %v371_v32  ;;  %275 = vmatmul.bf16.vlgmr.msra.gmra.mxu3 %v383_v35 }
  0x22   :  { %289 = vmatmul.bf16.vlgmr.msra.gmra.mxu1 %v375_v33 }
  0x23   :  { %308 = vmatmul.bf16.vlgmr.msra.gmra.mxu2 %v379_v34 }
  0x32   :  { %294 = vmatmul.bf16.gmra.mxu1 %v387_v40 }
  0x33   :  { %313 = vmatmul.bf16.gmra.mxu2 %v391_v41 }
  0x9e   :  { %v271_v44 = vpop.f32.mrf.mxu0 }
  0x9f   :  { %v290_v43 = vpop.f32.mrf.mxu1 }
  0xa0   :  { %v291_v45 = vadd.f32 %v290_v43, %v271_v44 }
  0xa4   :  { %v276_v61 = vpop.f32.mrf.mxu3 }
  0xa6   :  { %v309_v47 = vpop.f32.mrf.mxu2  ;;  %v273_v51 = vpop.f32.mrf.mxu0 }
  0xa7   :  { %v310_v48 = vadd.f32 %v309_v47, %v291_v45  ;;  %v292_v49 = vpop.f32.mrf.mxu1 }
  0xa8   :  { %v293_v52 = vadd.f32 %v292_v49, %v273_v51 }
  0xa9   :  { %v319_v50 = vadd.f32 %v310_v48, %v26_v46 }
  0xab   :  { %324 = vst.msk [vmem:[#allocation2] sm:$0xff] %vm21_vm0, %v319_v50 }
  0xac   :  { %v278_v10 = vpop.f32.mrf.mxu3 }
  0xae   :  { %v311_v54 = vpop.f32.mrf.mxu2 }
  0xaf   :  { %v312_v56 = vadd.f32 %v311_v54, %v293_v52  ;;  %v295_v57 = vpop.f32.mrf.mxu1 }
  0xb0   :  { %v296_v63 = vadd.f32 %v295_v57, %v276_v61 }
  0xb1   :  { %v320_v59 = vadd.f32 %v312_v56, %v27_v53 }
  0xb2   :  { %v331_v60 = vld [vmem:[#allocation2] sm:$0xff] }
  0xb3   :  { %v339_v62 = vmul.f32 %v527_v55, %v331_v60  ;;  %325 = vst.msk [vmem:[#allocation2 + $0x8] sm:$0xff] %vm21_vm0, %v320_v59 }
  0xb5   :  { %v347_v0 = vadd.f32 %v528_v58, %v339_v62 }
  0xb6   :  { %v314_v2 = vpop.f32.mrf.mxu2 }
  0xb7   :  { %v351_v3 = vmax.f32 %v347_v0, 0.0  ;;  %v315_v4 = vadd.f32 %v314_v2, %v296_v63  ;;  %v297_v8 = vpop.f32.mrf.mxu1 }
  0xb8   :  { %v298_v12 = vadd.f32 %v297_v8, %v278_v10 }
  0xb9   :  { %v355_v5 = vpack.c.bf16 %v351_v3, %v351_v3  ;;  %v321_v6 = vadd.f32 %v315_v4, %v28_v1 }
  0xba   :  { %v332_v7 = vld [vmem:[#allocation2 + $0x8] sm:$0xff] }
  0xbb   :  { %360 = vst.msk [vmem:[%s697_s4] sm:$0xf] %vm359_vm1, %v355_v5  ;;  %v340_v9 = vmul.f32 %v527_v55, %v332_v7 }
  0xbc   :  { %326 = vst.msk [vmem:[#allocation2 + $0x10] sm:$0xff] %vm21_vm0, %v321_v6 }
  0xbd   :  { %v348_v11 = vadd.f32 %v528_v58, %v340_v9 }
  0xbe   :  { %v316_v14 = vpop.f32.mrf.mxu2 }
  0xbf   :  { %v352_v15 = vmax.f32 %v348_v11, 0.0  ;;  %v317_v16 = vadd.f32 %v316_v14, %v298_v12 }
  0xc1   :  { %v356_v17 = vpack.c.bf16 %v352_v15, %v352_v15  ;;  %v322_v18 = vadd.f32 %v317_v16, %v29_v13 }
  0xc3   :  { %361 = vst.msk [vmem:[%s697_s4 + $0x4] sm:$0xf] %vm359_vm1, %v356_v17  ;;  %v333_v19 = vld [vmem:[#allocation2 + $0x10] sm:$0xff] }
  0xc4   :  { %v341_v20 = vmul.f32 %v527_v55, %v333_v19  ;;  %327 = vst.msk [vmem:[#allocation2 + $0x18] sm:$0xff] %vm21_vm0, %v322_v18 }
  0xc6   :  { %v349_v21 = vadd.f32 %v528_v58, %v341_v20 }
  0xc8   :  { %v353_v22 = vmax.f32 %v349_v21, 0.0 }
  0xca   :  { %v357_v23 = vpack.c.bf16 %v353_v22, %v353_v22 }
  0xcb   :  { %v334_v24 = vld [vmem:[#allocation2 + $0x18] sm:$0xff] }
  0xcc   :  { %362 = vst.msk [vmem:[%s697_s4 + $0x8] sm:$0xf] %vm359_vm1, %v357_v23  ;;  %v342_v25 = vmul.f32 %v527_v55, %v334_v24 }
  0xce   :  { %v350_v26 = vadd.f32 %v528_v58, %v342_v25 }
  0xd0   :  { %v354_v27 = vmax.f32 %v350_v26, 0.0 }
  0xd2   :  { %v358_v28 = vpack.c.bf16 %v354_v27, %v354_v27 }
  0xd4   :  { %363 = vst.msk [vmem:[%s697_s4 + $0xc] sm:$0xf] %vm359_vm1, %v358_v28 }

// kernel: _lambda_.19
= control target key start
LH: loop header
LB: loop body
LE: loop exit
PB: predicated region body
PF: predicated region fallthrough
CT: control target
= control target key end

     0   :  { %vm21_vm0 = vcmask 523264   ;;  %v169_v2 = vmov 0.0   ;;  %vm120_vm1 = vcmask 519168   ;;  %s233_s1 = inlined_call_operand.vmem [shape: bf16[128,64], index: 1, kind: input, shape index: {}]   ;;  %s234_s2 = inlined_call_operand.vmem [shape: f32[1,64], index: 2, kind: input, shape index: {}]   ;;  %s235_s3 = inlined_call_operand.vmem [shape: f32[1,64], index: 3, kind: input, shape index: {}]   ;;  %s236_s0 = inlined_call_operand.vmem [shape: bf16[8,128], index: 0, kind: input, shape index: {}]   ;;  %s237_s4 = inlined_call_operand.vmem [shape: bf16[8,64], index: 4, kind: output, shape index: {}]  }
   0x1   :  { %v165_v0 = vld [vmem:[%s233_s1 + $0x38] sm:$0xff]  ;;  %v164_v1 = vld [vmem:[%s233_s1 + $0x30] sm:$0xff]  ;;  %22 = vst.msk [vmem:[#allocation2] sm:$0xff] %vm21_vm0, %v169_v2  ;;  %v163_v3 = vld [vmem:[%s233_s1 + $0x28] sm:$0xff] }
   0x2   :  { %89 = vmatpush.bf16.msra.mxu0 %v165_v0  ;;  %v162_v4 = vld [vmem:[%s233_s1 + $0x20] sm:$0xff]  ;;  %v161_v5 = vld [vmem:[%s233_s1 + $0x18] sm:$0xff]  ;;  %v160_v6 = vld [vmem:[%s233_s1 + $0x10] sm:$0xff] }
   0x3   :  { %v159_v7 = vld [vmem:[%s233_s1 + $0x8] sm:$0xff]  ;;  %v158_v8 = vld [vmem:[%s233_s1] sm:$0xff] }
   0x4   :  { %v24_v9 = vld [vmem:[%s236_s0] sm:$0xf] }
   0x5   :  { %v167_v13 = vld [vmem:[%s234_s2] ss:$0 sm:$0xff] }
   0x6   :  { %90 = vmatpush.bf16.msra.mxu0 %v164_v1  ;;  %v168_v15 = vld [vmem:[%s235_s3] ss:$0 sm:$0xff] }
   0x8   :  { %v23_v10 = vld [vmem:[#allocation2] sm:$0xff] }
   0xa   :  { %91 = vmatpush.bf16.msra.mxu0 %v163_v3 }
   0xe   :  { %92 = vmatpush.bf16.msra.mxu0 %v162_v4 }
  0x12   :  { %93 = vmatpush.bf16.msra.mxu0 %v161_v5 }
  0x16   :  { %94 = vmatpush.bf16.msra.mxu0 %v160_v6 }
  0x1a   :  { %95 = vmatpush.bf16.msra.mxu0 %v159_v7 }
  0x1e   :  { %96 = vmatpush.bf16.msra.mxu0 %v158_v8 }
  0x21   :  { %97 = vmatmul.bf16.vlgmr.msra.gmra.mxu0 %v24_v9 }
  0x9e   :  { %v98_v11 = vpop.f32.mrf.mxu0 }
  0x9f   :  { %v102_v12 = vadd.f32 %v98_v11, %v23_v10 }
  0xa1   :  { %104 = vst.msk [vmem:[#allocation2] sm:$0xff] %vm21_vm0, %v102_v12 }
  0xa6   :  { %v100_v14 = vpop.f32.mrf.mxu0 }
  0xa8   :  { %v108_v16 = vld [vmem:[#allocation2] sm:$0xff] }
  0xa9   :  { %v113_v17 = vmul.f32 %v167_v13, %v108_v16 }
  0xab   :  { %v118_v18 = vadd.f32 %v168_v15, %v113_v17 }
  0xad   :  { %v119_v19 = vpack.c.bf16 %v118_v18, %v118_v18 }
  0xaf   :  { %121 = vst.msk [vmem:[%s237_s4] sm:$0xf] %vm120_vm1, %v119_v19 }

// kernel: _lambda_.20
= control target key start
LH: loop header
LB: loop body
LE: loop exit
PB: predicated region body
PF: predicated region fallthrough
CT: control target
= control target key end

     0   :  { %vm24_vm0 = vcmask 523264   ;;  %v664_v53 = vmov 0.0   ;;  %vm455_vm1 = vcmask 519168   ;;  %s838_s1 = inlined_call_operand.vmem [shape: bf16[640,64], index: 1, kind: input, shape index: {}]   ;;  %s839_s0 = inlined_call_operand.vmem [shape: bf16[8,640], index: 0, kind: input, shape index: {}]   ;;  %s840_s2 = inlined_call_operand.vmem [shape: f32[1,64], index: 2, kind: input, shape index: {}]   ;;  %s841_s3 = inlined_call_operand.vmem [shape: f32[1,64], index: 3, kind: input, shape index: {}]   ;;  %s842_s4 = inlined_call_operand.vmem [shape: bf16[8,64], index: 4, kind: input, shape index: {}, may-alias: {4,5}]   ;;  %s843_s5 = inlined_call_operand.vmem [shape: bf16[8,64], index: 5, kind: output, shape index: {}, may-alias: {4,5}]  }
   0x1   :  { %v628_v0 = vld [vmem:[%s838_s1 + $0x38] sm:$0xff]  ;;  %v627_v3 = vld [vmem:[%s838_s1 + $0x30] sm:$0xff]  ;;  %v626_v8 = vld [vmem:[%s838_s1 + $0x28] sm:$0xff]  ;;  %25 = vst.msk [vmem:[#allocation2] sm:$0xff] %vm24_vm0, %v664_v53 }
   0x2   :  { %v644_v1 = vld [vmem:[%s838_s1 + $0xb8] sm:$0xff]  ;;  %368 = vmatpush.bf16.msra.mxu0 %v628_v0  ;;  %v643_v5 = vld [vmem:[%s838_s1 + $0xb0] sm:$0xff]  ;;  %v642_v9 = vld [vmem:[%s838_s1 + $0xa8] sm:$0xff] }
   0x3   :  { %v652_v2 = vld [vmem:[%s838_s1 + $0xf8] sm:$0xff]  ;;  %394 = vmatpush.bf16.msra.mxu2 %v644_v1  ;;  %v651_v6 = vld [vmem:[%s838_s1 + $0xf0] sm:$0xff]  ;;  %v650_v10 = vld [vmem:[%s838_s1 + $0xe8] sm:$0xff] }
   0x4   :  { %v636_v4 = vld [vmem:[%s838_s1 + $0x78] sm:$0xff]  ;;  %407 = vmatpush.bf16.msra.mxu3 %v652_v2  ;;  %v635_v7 = vld [vmem:[%s838_s1 + $0x70] sm:$0xff]  ;;  %v634_v11 = vld [vmem:[%s838_s1 + $0x68] sm:$0xff] }
   0x5   :  { %381 = vmatpush.bf16.msra.mxu1 %v636_v4  ;;  %v625_v12 = vld [vmem:[%s838_s1 + $0x20] sm:$0xff]  ;;  %v624_v16 = vld [vmem:[%s838_s1 + $0x18] sm:$0xff]  ;;  %v623_v20 = vld [vmem:[%s838_s1 + $0x10] sm:$0xff] }
   0x6   :  { %369 = vmatpush.bf16.msra.mxu0 %v627_v3  ;;  %v641_v13 = vld [vmem:[%s838_s1 + $0xa0] sm:$0xff]  ;;  %v640_v17 = vld [vmem:[%s838_s1 + $0x98] sm:$0xff]  ;;  %v639_v21 = vld [vmem:[%s838_s1 + $0x90] sm:$0xff] }
   0x7   :  { %395 = vmatpush.bf16.msra.mxu2 %v643_v5  ;;  %v649_v14 = vld [vmem:[%s838_s1 + $0xe0] sm:$0xff]  ;;  %v648_v18 = vld [vmem:[%s838_s1 + $0xd8] sm:$0xff]  ;;  %v647_v22 = vld [vmem:[%s838_s1 + $0xd0] sm:$0xff] }
   0x8   :  { %408 = vmatpush.bf16.msra.mxu3 %v651_v6  ;;  %v633_v15 = vld [vmem:[%s838_s1 + $0x60] sm:$0xff]  ;;  %v632_v19 = vld [vmem:[%s838_s1 + $0x58] sm:$0xff]  ;;  %v631_v23 = vld [vmem:[%s838_s1 + $0x50] sm:$0xff] }
   0x9   :  { %382 = vmatpush.bf16.msra.mxu1 %v635_v7  ;;  %v622_v24 = vld [vmem:[%s838_s1 + $0x8] sm:$0xff]  ;;  %v27_v25 = vld [vmem:[%s839_s0] sm:$0xff]  ;;  %v660_v33 = vld [vmem:[%s838_s1 + $0x138] sm:$0xff] }
   0xa   :  { %370 = vmatpush.bf16.msra.mxu0 %v626_v8  ;;  %v638_v26 = vld [vmem:[%s838_s1 + $0x88] sm:$0xff]  ;;  %v113_v30 = vunpack.c.l.b16 %v27_v25  ;;  %v621_v31 = vld [vmem:[%s838_s1] sm:$0xff]  ;;  %v114_v38 = vunpack.c.h.b16 %v27_v25  ;;  %v659_v41 = vld [vmem:[%s838_s1 + $0x130] sm:$0xff] }
   0xb   :  { %396 = vmatpush.bf16.msra.mxu2 %v642_v9  ;;  %v646_v27 = vld [vmem:[%s838_s1 + $0xc8] sm:$0xff]  ;;  %v637_v34 = vld [vmem:[%s838_s1 + $0x80] sm:$0xff]  ;;  %v656_v46 = vld [vmem:[%s838_s1 + $0x118] sm:$0xff] }
   0xc   :  { %409 = vmatpush.bf16.msra.mxu3 %v650_v10  ;;  %v28_v28 = vld [vmem:[%s839_s0 + $0x8] sm:$0xff]  ;;  %v645_v36 = vld [vmem:[%s838_s1 + $0xc0] sm:$0xff]  ;;  %v118_v39 = vpack.c.b16 %v113_v30, %v113_v30  ;;  %v119_v43 = vpack.c.b16 %v114_v38, %v114_v38  ;;  %v655_v47 = vld [vmem:[%s838_s1 + $0x110] sm:$0xff] }
   0xd   :  { %383 = vmatpush.bf16.msra.mxu1 %v634_v11  ;;  %v630_v29 = vld [vmem:[%s838_s1 + $0x48] sm:$0xff]  ;;  %v115_v32 = vunpack.c.l.b16 %v28_v28  ;;  %v116_v35 = vunpack.c.h.b16 %v28_v28  ;;  %v629_v37 = vld [vmem:[%s838_s1 + $0x40] sm:$0xff]  ;;  %v29_v49 = vld [vmem:[%s839_s0 + $0x10] sm:$0xf] }
   0xe   :  { %371 = vmatpush.bf16.msra.mxu0 %v625_v12  ;;  %v658_v44 = vld [vmem:[%s838_s1 + $0x128] sm:$0xff]  ;;  %v657_v45 = vld [vmem:[%s838_s1 + $0x120] sm:$0xff]  ;;  %v117_v50 = vunpack.c.l.b16 %v29_v49 }
   0xf   :  { %397 = vmatpush.bf16.msra.mxu2 %v641_v13  ;;  %v120_v40 = vpack.c.b16 %v115_v32, %v115_v32  ;;  %v121_v42 = vpack.c.b16 %v116_v35, %v116_v35  ;;  %v654_v48 = vld [vmem:[%s838_s1 + $0x108] sm:$0xff]  ;;  %v653_v51 = vld [vmem:[%s838_s1 + $0x100] sm:$0xff] }
  0x10   :  { %410 = vmatpush.bf16.msra.mxu3 %v649_v14  ;;  %v122_v52 = vpack.c.b16 %v117_v50, %v117_v50  ;;  %v26_v1 = vld [vmem:[#allocation2] sm:$0xff] }
  0x11   :  { %384 = vmatpush.bf16.msra.mxu1 %v633_v15  ;;  %v440_v5 = vld [vmem:[%s842_s4] sm:$0xf] }
  0x12   :  { %372 = vmatpush.bf16.msra.mxu0 %v624_v16  ;;  %v441_v7 = vunpack.c.l.bf16 %v440_v5  ;;  %v662_v8 = vld [vmem:[%s840_s2] ss:$0 sm:$0xff] }
  0x13   :  { %398 = vmatpush.bf16.msra.mxu2 %v640_v17  ;;  %v663_v11 = vld [vmem:[%s841_s3] ss:$0 sm:$0xff] }
  0x14   :  { %411 = vmatpush.bf16.msra.mxu3 %v648_v18 }
  0x15   :  { %385 = vmatpush.bf16.msra.mxu1 %v632_v19 }
  0x16   :  { %373 = vmatpush.bf16.msra.mxu0 %v623_v20 }
  0x17   :  { %399 = vmatpush.bf16.msra.mxu2 %v639_v21 }
  0x18   :  { %412 = vmatpush.bf16.msra.mxu3 %v647_v22 }
  0x19   :  { %386 = vmatpush.bf16.msra.mxu1 %v631_v23 }
  0x1a   :  { %374 = vmatpush.bf16.msra.mxu0 %v622_v24 }
  0x1b   :  { %400 = vmatpush.bf16.msra.mxu2 %v638_v26 }
  0x1c   :  { %413 = vmatpush.bf16.msra.mxu3 %v646_v27 }
  0x1d   :  { %387 = vmatpush.bf16.msra.mxu1 %v630_v29 }
  0x1e   :  { %375 = vmatpush.bf16.msra.mxu0 %v621_v31 }
  0x1f   :  { %401 = vmatpush.bf16.msra.mxu2 %v637_v34 }
  0x20   :  { %414 = vmatpush.bf16.msra.mxu3 %v645_v36 }
  0x21   :  { %388 = vmatpush.bf16.msra.mxu1 %v629_v37  ;;  %376 = vmatmul.bf16.vlgmr.msra.gmra.mxu0 %v118_v39 }
  0x22   :  { %420 = vmatpush.bf16.msrb.mxu0 %v660_v33  ;;  %402 = vmatmul.bf16.vlgmr.msra.gmra.mxu2 %v120_v40 }
  0x23   :  { %415 = vmatmul.bf16.vlgmr.msra.gmra.mxu3 %v121_v42 }
  0x24   :  { %389 = vmatmul.bf16.vlgmr.msra.gmra.mxu1 %v119_v43 }
  0x26   :  { %421 = vmatpush.bf16.msrb.mxu0 %v659_v41 }
  0x2a   :  { %422 = vmatpush.bf16.msrb.mxu0 %v658_v44 }
  0x2e   :  { %423 = vmatpush.bf16.msrb.mxu0 %v657_v45 }
  0x32   :  { %424 = vmatpush.bf16.msrb.mxu0 %v656_v46 }
  0x36   :  { %425 = vmatpush.bf16.msrb.mxu0 %v655_v47 }
  0x3a   :  { %426 = vmatpush.bf16.msrb.mxu0 %v654_v48 }
  0x3e   :  { %427 = vmatpush.bf16.msrb.mxu0 %v653_v51 }
  0x41   :  { %428 = vmatmul.bf16.vlgmr.msrb.gmra.mxu0 %v122_v52 }
  0x9e   :  { %v377_v54 = vpop.f32.mrf.mxu0 }
  0xa1   :  { %v390_v55 = vpop.f32.mrf.mxu1 }
  0xa2   :  { %v391_v62 = vadd.f32 %v390_v55, %v377_v54 }
  0xa5   :  { %v403_v56 = vpop.f32.mrf.mxu2 }
  0xa6   :  { %v379_v57 = vpop.f32.mrf.mxu0  ;;  %v416_v58 = vpop.f32.mrf.mxu3  ;;  %v404_v63 = vadd.f32 %v403_v56, %v391_v62 }
  0xa8   :  { %v417_v0 = vadd.f32 %v416_v58, %v404_v63 }
  0xa9   :  { %v392_v59 = vpop.f32.mrf.mxu1 }
  0xad   :  { %v405_v60 = vpop.f32.mrf.mxu2 }
  0xae   :  { %v418_v61 = vpop.f32.mrf.mxu3 }
  0xbe   :  { %v429_v2 = vpop.f32.mrf.mxu0 }
  0xbf   :  { %v430_v3 = vadd.f32 %v429_v2, %v417_v0 }
  0xc1   :  { %v433_v4 = vadd.f32 %v430_v3, %v26_v1 }
  0xc3   :  { %435 = vst.msk [vmem:[#allocation2] sm:$0xff] %vm24_vm0, %v433_v4 }
  0xc6   :  { %v431_v6 = vpop.f32.mrf.mxu0 }
  0xca   :  { %v439_v9 = vld [vmem:[#allocation2] sm:$0xff] }
  0xcb   :  { %v442_v10 = vadd.f32 %v441_v7, %v439_v9 }
  0xcd   :  { %v447_v12 = vmul.f32 %v662_v8, %v442_v10 }
  0xcf   :  { %v452_v13 = vadd.f32 %v663_v11, %v447_v12 }
  0xd1   :  { %v453_v14 = vmax.f32 %v452_v13, 0.0 }
  0xd3   :  { %v454_v15 = vpack.c.bf16 %v453_v14, %v453_v14 }
  0xd5   :  { %456 = vst.msk [vmem:[%s843_s5] sm:$0xf] %vm455_vm1, %v454_v15 }

// kernel: _lambda_.21
= control target key start
LH: loop header
LB: loop body
LE: loop exit
PB: predicated region body
PF: predicated region fallthrough
CT: control target
= control target key end

     0   :  { %s817_s1 = inlined_call_operand.vmem [shape: bf16[640,128], index: 1, kind: input, shape index: {}]   ;;  %s818_s0 = inlined_call_operand.vmem [shape: bf16[8,640], index: 0, kind: input, shape index: {}]   ;;  %s819_s2 = inlined_call_operand.vmem [shape: f32[1,128], index: 2, kind: input, shape index: {}]   ;;  %s820_s3 = inlined_call_operand.vmem [shape: f32[1,128], index: 3, kind: input, shape index: {}]   ;;  %s821_s4 = inlined_call_operand.vmem [shape: bf16[8,128], index: 4, kind: output, shape index: {}]  }
   0x1   :  { %v619_v0 = vld [vmem:[%s817_s1 + $0x38] sm:$0xff]  ;;  %v618_v3 = vld [vmem:[%s817_s1 + $0x30] sm:$0xff]  ;;  %v617_v8 = vld [vmem:[%s817_s1 + $0x28] sm:$0xff] }
   0x2   :  { %v635_v1 = vld [vmem:[%s817_s1 + $0xb8] sm:$0xff]  ;;  %364 = vmatpush.bf16.msra.mxu0 %v619_v0  ;;  %v634_v5 = vld [vmem:[%s817_s1 + $0xb0] sm:$0xff]  ;;  %v633_v9 = vld [vmem:[%s817_s1 + $0xa8] sm:$0xff] }
   0x3   :  { %v643_v2 = vld [vmem:[%s817_s1 + $0xf8] sm:$0xff]  ;;  %390 = vmatpush.bf16.msra.mxu2 %v635_v1  ;;  %v642_v6 = vld [vmem:[%s817_s1 + $0xf0] sm:$0xff]  ;;  %v641_v10 = vld [vmem:[%s817_s1 + $0xe8] sm:$0xff] }
   0x4   :  { %v627_v4 = vld [vmem:[%s817_s1 + $0x78] sm:$0xff]  ;;  %403 = vmatpush.bf16.msra.mxu3 %v643_v2  ;;  %v626_v7 = vld [vmem:[%s817_s1 + $0x70] sm:$0xff]  ;;  %v625_v11 = vld [vmem:[%s817_s1 + $0x68] sm:$0xff] }
   0x5   :  { %377 = vmatpush.bf16.msra.mxu1 %v627_v4  ;;  %v616_v12 = vld [vmem:[%s817_s1 + $0x20] sm:$0xff]  ;;  %v615_v16 = vld [vmem:[%s817_s1 + $0x18] sm:$0xff]  ;;  %v614_v20 = vld [vmem:[%s817_s1 + $0x10] sm:$0xff] }
   0x6   :  { %365 = vmatpush.bf16.msra.mxu0 %v618_v3  ;;  %v632_v13 = vld [vmem:[%s817_s1 + $0xa0] sm:$0xff]  ;;  %v631_v17 = vld [vmem:[%s817_s1 + $0x98] sm:$0xff]  ;;  %v630_v21 = vld [vmem:[%s817_s1 + $0x90] sm:$0xff] }
   0x7   :  { %391 = vmatpush.bf16.msra.mxu2 %v634_v5  ;;  %v640_v14 = vld [vmem:[%s817_s1 + $0xe0] sm:$0xff]  ;;  %v639_v18 = vld [vmem:[%s817_s1 + $0xd8] sm:$0xff]  ;;  %v638_v22 = vld [vmem:[%s817_s1 + $0xd0] sm:$0xff] }
   0x8   :  { %404 = vmatpush.bf16.msra.mxu3 %v642_v6  ;;  %v624_v15 = vld [vmem:[%s817_s1 + $0x60] sm:$0xff]  ;;  %v623_v19 = vld [vmem:[%s817_s1 + $0x58] sm:$0xff]  ;;  %v622_v23 = vld [vmem:[%s817_s1 + $0x50] sm:$0xff] }
   0x9   :  { %378 = vmatpush.bf16.msra.mxu1 %v626_v7  ;;  %v613_v24 = vld [vmem:[%s817_s1 + $0x8] sm:$0xff]  ;;  %v23_v25 = vld [vmem:[%s818_s0] sm:$0xff]  ;;  %v651_v33 = vld [vmem:[%s817_s1 + $0x138] sm:$0xff] }
   0xa   :  { %366 = vmatpush.bf16.msra.mxu0 %v617_v8  ;;  %v629_v26 = vld [vmem:[%s817_s1 + $0x88] sm:$0xff]  ;;  %v109_v30 = vunpack.c.l.b16 %v23_v25  ;;  %v612_v31 = vld [vmem:[%s817_s1] sm:$0xff]  ;;  %v110_v38 = vunpack.c.h.b16 %v23_v25  ;;  %v650_v41 = vld [vmem:[%s817_s1 + $0x130] sm:$0xff] }
   0xb   :  { %392 = vmatpush.bf16.msra.mxu2 %v633_v9  ;;  %v637_v27 = vld [vmem:[%s817_s1 + $0xc8] sm:$0xff]  ;;  %v628_v34 = vld [vmem:[%s817_s1 + $0x80] sm:$0xff]  ;;  %v647_v46 = vld [vmem:[%s817_s1 + $0x118] sm:$0xff] }
   0xc   :  { %405 = vmatpush.bf16.msra.mxu3 %v641_v10  ;;  %v24_v28 = vld [vmem:[%s818_s0 + $0x8] sm:$0xff]  ;;  %v636_v36 = vld [vmem:[%s817_s1 + $0xc0] sm:$0xff]  ;;  %v114_v39 = vpack.c.b16 %v109_v30, %v109_v30  ;;  %v115_v43 = vpack.c.b16 %v110_v38, %v110_v38  ;;  %v646_v47 = vld [vmem:[%s817_s1 + $0x110] sm:$0xff] }
   0xd   :  { %379 = vmatpush.bf16.msra.mxu1 %v625_v11  ;;  %v621_v29 = vld [vmem:[%s817_s1 + $0x48] sm:$0xff]  ;;  %v111_v32 = vunpack.c.l.b16 %v24_v28  ;;  %v112_v35 = vunpack.c.h.b16 %v24_v28  ;;  %v620_v37 = vld [vmem:[%s817_s1 + $0x40] sm:$0xff]  ;;  %v25_v49 = vld [vmem:[%s818_s0 + $0x10] sm:$0xf] }
   0xe   :  { %367 = vmatpush.bf16.msra.mxu0 %v616_v12  ;;  %v649_v44 = vld [vmem:[%s817_s1 + $0x128] sm:$0xff]  ;;  %v648_v45 = vld [vmem:[%s817_s1 + $0x120] sm:$0xff]  ;;  %v113_v50 = vunpack.c.l.b16 %v25_v49 }
   0xf   :  { %393 = vmatpush.bf16.msra.mxu2 %v632_v13  ;;  %v116_v40 = vpack.c.b16 %v111_v32, %v111_v32  ;;  %v117_v42 = vpack.c.b16 %v112_v35, %v112_v35  ;;  %v645_v48 = vld [vmem:[%s817_s1 + $0x108] sm:$0xff]  ;;  %v644_v51 = vld [vmem:[%s817_s1 + $0x100] sm:$0xff] }
  0x10   :  { %406 = vmatpush.bf16.msra.mxu3 %v640_v14  ;;  %v118_v52 = vpack.c.b16 %v113_v50, %v113_v50  ;;  %v652_v0 = vld [vmem:[%s819_s2] ss:$0 sm:$0xff] }
  0x11   :  { %380 = vmatpush.bf16.msra.mxu1 %v624_v15  ;;  %v653_v3 = vld [vmem:[%s820_s3] ss:$0 sm:$0xff] }
  0x12   :  { %368 = vmatpush.bf16.msra.mxu0 %v615_v16 }
  0x13   :  { %394 = vmatpush.bf16.msra.mxu2 %v631_v17 }
  0x14   :  { %407 = vmatpush.bf16.msra.mxu3 %v639_v18 }
  0x15   :  { %381 = vmatpush.bf16.msra.mxu1 %v623_v19 }
  0x16   :  { %369 = vmatpush.bf16.msra.mxu0 %v614_v20 }
  0x17   :  { %395 = vmatpush.bf16.msra.mxu2 %v630_v21 }
  0x18   :  { %408 = vmatpush.bf16.msra.mxu3 %v638_v22 }
  0x19   :  { %382 = vmatpush.bf16.msra.mxu1 %v622_v23 }
  0x1a   :  { %370 = vmatpush.bf16.msra.mxu0 %v613_v24 }
  0x1b   :  { %396 = vmatpush.bf16.msra.mxu2 %v629_v26 }
  0x1c   :  { %409 = vmatpush.bf16.msra.mxu3 %v637_v27 }
  0x1d   :  { %383 = vmatpush.bf16.msra.mxu1 %v621_v29 }
  0x1e   :  { %371 = vmatpush.bf16.msra.mxu0 %v612_v31 }
  0x1f   :  { %397 = vmatpush.bf16.msra.mxu2 %v628_v34 }
  0x20   :  { %410 = vmatpush.bf16.msra.mxu3 %v636_v36 }
  0x21   :  { %384 = vmatpush.bf16.msra.mxu1 %v620_v37  ;;  %372 = vmatmul.bf16.vlgmr.msra.gmra.mxu0 %v114_v39 }
  0x22   :  { %416 = vmatpush.bf16.msrb.mxu0 %v651_v33  ;;  %398 = vmatmul.bf16.vlgmr.msra.gmra.mxu2 %v116_v40 }
  0x23   :  { %411 = vmatmul.bf16.vlgmr.msra.gmra.mxu3 %v117_v42 }
  0x24   :  { %385 = vmatmul.bf16.vlgmr.msra.gmra.mxu1 %v115_v43 }
  0x26   :  { %417 = vmatpush.bf16.msrb.mxu0 %v650_v41 }
  0x2a   :  { %418 = vmatpush.bf16.msrb.mxu0 %v649_v44 }
  0x2e   :  { %419 = vmatpush.bf16.msrb.mxu0 %v648_v45 }
  0x32   :  { %420 = vmatpush.bf16.msrb.mxu0 %v647_v46 }
  0x36   :  { %421 = vmatpush.bf16.msrb.mxu0 %v646_v47 }
  0x3a   :  { %422 = vmatpush.bf16.msrb.mxu0 %v645_v48 }
  0x3e   :  { %423 = vmatpush.bf16.msrb.mxu0 %v644_v51 }
  0x41   :  { %424 = vmatmul.bf16.vlgmr.msrb.gmra.mxu0 %v118_v52 }
  0x9e   :  { %v373_v53 = vpop.f32.mrf.mxu0 }
  0xa1   :  { %v386_v54 = vpop.f32.mrf.mxu1 }
  0xa2   :  { %v387_v61 = vadd.f32 %v386_v54, %v373_v53 }
  0xa5   :  { %v399_v55 = vpop.f32.mrf.mxu2 }
  0xa6   :  { %v375_v56 = vpop.f32.mrf.mxu0  ;;  %v412_v57 = vpop.f32.mrf.mxu3  ;;  %v400_v62 = vadd.f32 %v399_v55, %v387_v61 }
  0xa8   :  { %v413_v63 = vadd.f32 %v412_v57, %v400_v62 }
  0xa9   :  { %v388_v58 = vpop.f32.mrf.mxu1 }
  0xad   :  { %v401_v59 = vpop.f32.mrf.mxu2 }
  0xae   :  { %v414_v60 = vpop.f32.mrf.mxu3 }
  0xbe   :  { %v425_v1 = vpop.f32.mrf.mxu0 }
  0xbf   :  { %v426_v2 = vadd.f32 %v425_v1, %v413_v63 }
  0xc1   :  { %v439_v4 = vmul.f32 %v652_v0, %v426_v2 }
  0xc3   :  { %v444_v5 = vadd.f32 %v653_v3, %v439_v4 }
  0xc5   :  { %v445_v6 = vmax.f32 %v444_v5, 0.0 }
  0xc6   :  { %v427_v7 = vpop.f32.mrf.mxu0 }
  0xc7   :  { %v446_v8 = vpack.c.bf16 %v445_v6, %v445_v6 }
  0xc9   :  { %447 = vst [vmem:[%s821_s4] sm:$0xf] %v446_v8 }

// kernel: _lambda_.22
= control target key start
LH: loop header
LB: loop body
LE: loop exit
PB: predicated region body
PF: predicated region fallthrough
CT: control target
= control target key end

     0   :  { %s226_s1 = inlined_call_operand.vmem [shape: bf16[128,128], index: 1, kind: input, shape index: {}]   ;;  %s227_s2 = inlined_call_operand.vmem [shape: f32[1,128], index: 2, kind: input, shape index: {}]   ;;  %s228_s3 = inlined_call_operand.vmem [shape: f32[1,128], index: 3, kind: input, shape index: {}]   ;;  %s229_s0 = inlined_call_operand.vmem [shape: bf16[8,128], index: 0, kind: input, shape index: {}]   ;;  %s230_s4 = inlined_call_operand.vmem [shape: bf16[8,128], index: 4, kind: output, shape index: {}]  }
   0x1   :  { %v162_v0 = vld [vmem:[%s226_s1 + $0x38] sm:$0xff]  ;;  %v161_v1 = vld [vmem:[%s226_s1 + $0x30] sm:$0xff]  ;;  %v160_v2 = vld [vmem:[%s226_s1 + $0x28] sm:$0xff] }
   0x2   :  { %88 = vmatpush.bf16.msra.mxu0 %v162_v0  ;;  %v159_v3 = vld [vmem:[%s226_s1 + $0x20] sm:$0xff]  ;;  %v158_v4 = vld [vmem:[%s226_s1 + $0x18] sm:$0xff]  ;;  %v157_v5 = vld [vmem:[%s226_s1 + $0x10] sm:$0xff] }
   0x3   :  { %v156_v6 = vld [vmem:[%s226_s1 + $0x8] sm:$0xff]  ;;  %v155_v7 = vld [vmem:[%s226_s1] sm:$0xff] }
   0x4   :  { %v23_v8 = vld [vmem:[%s229_s0] sm:$0xf] }
   0x5   :  { %v163_v9 = vld [vmem:[%s227_s2] ss:$0 sm:$0xff] }
   0x6   :  { %89 = vmatpush.bf16.msra.mxu0 %v161_v1  ;;  %v164_v10 = vld [vmem:[%s228_s3] ss:$0 sm:$0xff] }
   0xa   :  { %90 = vmatpush.bf16.msra.mxu0 %v160_v2 }
   0xe   :  { %91 = vmatpush.bf16.msra.mxu0 %v159_v3 }
  0x12   :  { %92 = vmatpush.bf16.msra.mxu0 %v158_v4 }
  0x16   :  { %93 = vmatpush.bf16.msra.mxu0 %v157_v5 }
  0x1a   :  { %94 = vmatpush.bf16.msra.mxu0 %v156_v6 }
  0x1e   :  { %95 = vmatpush.bf16.msra.mxu0 %v155_v7 }
  0x21   :  { %96 = vmatmul.bf16.vlgmr.msra.gmra.mxu0 %v23_v8 }
  0x9e   :  { %v97_v11 = vpop.f32.mrf.mxu0 }
  0x9f   :  { %v111_v12 = vmul.f32 %v163_v9, %v97_v11 }
  0xa1   :  { %v116_v13 = vadd.f32 %v164_v10, %v111_v12 }
  0xa3   :  { %v117_v14 = vpack.c.bf16 %v116_v13, %v116_v13 }
  0xa5   :  { %118 = vst [vmem:[%s230_s4] sm:$0xf] %v117_v14 }
  0xa6   :  { %v99_v15 = vpop.f32.mrf.mxu0 }

// kernel: _lambda_.24
= control target key start
LH: loop header
LB: loop body
LE: loop exit
PB: predicated region body
PF: predicated region fallthrough
CT: control target
= control target key end

     0   :  { %vm18_vm0 = vcmask 1041409   ;;  %s45_s0 = inlined_call_operand.vmem [shape: bf16[2,1,128], index: 0, kind: input, shape index: {}]   ;;  %s46_s1 = inlined_call_operand.vmem [shape: f32[2,128], index: 1, kind: output, shape index: {}]  }
   0x1   :  { %v8_v0 = vld [vmem:[%s45_s0] sm:$0x1]  ;;  %v9_v1 = vld [vmem:[%s45_s0 + $0x1] sm:$0x1] }
   0x2   :  { %v10_v2 = vunpack.c.l.bf16 %v8_v0  ;;  %v11_v3 = vunpack.c.l.bf16 %v9_v1 }
   0x4   :  { %v16_v4 = vperm.slane %v10_v2, 0  ;;  %v17_v5 = vperm.slane %v11_v3, 0 }
   0x6   :  { %v19_v6 = vsel %vm18_vm0, %v17_v5, %v16_v4 }
   0x7   :  { %21 = vst [vmem:[%s46_s1] sm:$0x3] %v19_v6 }

// kernel: _lambda_.23
= control target key start
LH: loop header
LB: loop body
LE: loop exit
PB: predicated region body
PF: predicated region fallthrough
CT: control target
= control target key end

     0   :  { %s991_s18 = smov 0   ;;  %s993_s19 = smov 0   ;;  %s1080_s0 = inlined_call_operand.vmem [shape: bf16[8,1536], index: 0, kind: input, shape index: {}]   ;;  %s1081_s1 = inlined_call_operand.vmem [shape: bf16[1536,128], index: 1, kind: input, shape index: {}]   ;;  %s1082_s2 = inlined_call_operand.vmem [shape: f32[1,128], index: 2, kind: input, shape index: {}]   ;;  %s1083_s3 = inlined_call_operand.vmem [shape: f32[1,128], index: 3, kind: input, shape index: {}]   ;;  %s1084_s4 = inlined_call_operand.vmem [shape: bf16[8,128], index: 4, kind: input, shape index: {}, may-alias: {4,5}]   ;;  %s1085_s5 = inlined_call_operand.vmem [shape: bf16[8,128], index: 5, kind: output, shape index: {}, may-alias: {4,5}]  }
   0x1   :  { %s995_s20 = smov 0  }
   0x2 LB: > { %s24_s21 = sadd.s32 1, %s954_s19  ;;  %p739_p0 = scmp.ge.s32.totalorder %s958_s20, 1  ;;  %s958_s20 = sphi %s995_s20, %s15_s20   ;;  %s954_s19 = sphi %s993_s19, %s1087_s19   ;;  %s950_s18 = sphi %s991_s18, %s1086_s18  }
   0x3   : > { %p25_p1 = scmp.ge.s32.totalorder %s24_s21, 3  ;;  %p226_p2 = scmp.lt.s32.totalorder %s958_s20, 4 }
   0x5   : > { %s1089_s21 = smov (%p25_p1, %s24_s21), 0  ;;  %p227_p3 = pnand %p739_p0, %p226_p2 }
   0x6   : > { %s740_s22 = sshll.u32 (!%p227_p3), %s950_s18, 2  ;;  %s742_s23 = sshll.u32 (!%p227_p3), %s950_s18, 6 }
   0x7   : > { %230 = sbr.rel (%p227_p3) target bundleno = 213 (0xd5), region = 40  ;;  %p269_p4 = scmp.lt.s32.totalorder (!%p227_p3), %s740_s22, 11 }
   0x8   : > { %p277_p5 = scmp.lt.s32.totalorder (!%p227_p3), %s742_s23, 191  ;;  %p744_p6 = scmp.ne.s32.totalorder (!%p227_p3), %s950_s18, 0 }
   0xc   : > { %s1091_s22 = smov (!%p269_p4, %s740_s22), 11  ;;  %s1093_s23 = smov (!%p277_p5, %s742_s23), 191 }
   0xd   : > { %s741_s24 = sshll.u32 %s1091_s22, 2  ;;  %s743_s28 = sshll.u32 %s1093_s23, 2 }
   0xe   : > { %s1016_s27 = scalar_lea.vmem %s1080_s0, %s741_s24  ;;  %s1021_s6 = scalar_lea.vmem %s1081_s1, %s743_s28 }
   0xf   : > { %293 = sbr.rel (%p744_p6) target bundleno = 22 (0x16), region = 44 }
  0x14   : > { %v960_v0 = vmov 0.0  }
  0x15   : > { %294 = vst [vmem:[#allocation2] sm:$0xff] %v960_v0 }
  0x16 PF: > { %v884_v1 = vld [vmem:[%s1021_s6 + $0x38] sm:$0xff]  ;;  %v883_v5 = vld [vmem:[%s1021_s6 + $0x30] sm:$0xff]  ;;  %v882_v9 = vld [vmem:[%s1021_s6 + $0x28] sm:$0xff]  ;;  %p873_p7 = scmp.ne.s32.totalorder %s950_s18, 2 }
  0x17   : > { %v892_v2 = vld [vmem:[%s1021_s6 + $0x78] sm:$0xff]  ;;  %568 = vmatpush.bf16.msra.mxu0 %v884_v1  ;;  %v891_v6 = vld [vmem:[%s1021_s6 + $0x70] sm:$0xff]  ;;  %v890_v10 = vld [vmem:[%s1021_s6 + $0x68] sm:$0xff] }
  0x18   : > { %v900_v3 = vld [vmem:[%s1021_s6 + $0xb8] sm:$0xff]  ;;  %581 = vmatpush.bf16.msra.mxu1 %v892_v2  ;;  %v899_v7 = vld [vmem:[%s1021_s6 + $0xb0] sm:$0xff]  ;;  %v898_v11 = vld [vmem:[%s1021_s6 + $0xa8] sm:$0xff] }
  0x19   : > { %v908_v4 = vld [vmem:[%s1021_s6 + $0xf8] sm:$0xff]  ;;  %594 = vmatpush.bf16.msra.mxu2 %v900_v3  ;;  %v907_v8 = vld [vmem:[%s1021_s6 + $0xf0] sm:$0xff]  ;;  %v906_v12 = vld [vmem:[%s1021_s6 + $0xe8] sm:$0xff] }
  0x1a   : > { %607 = vmatpush.bf16.msra.mxu3 %v908_v4  ;;  %v881_v13 = vld [vmem:[%s1021_s6 + $0x20] sm:$0xff]  ;;  %v880_v17 = vld [vmem:[%s1021_s6 + $0x18] sm:$0xff]  ;;  %v879_v21 = vld [vmem:[%s1021_s6 + $0x10] sm:$0xff] }
  0x1b   : > { %569 = vmatpush.bf16.msra.mxu0 %v883_v5  ;;  %v889_v14 = vld [vmem:[%s1021_s6 + $0x60] sm:$0xff]  ;;  %v888_v18 = vld [vmem:[%s1021_s6 + $0x58] sm:$0xff]  ;;  %v887_v22 = vld [vmem:[%s1021_s6 + $0x50] sm:$0xff] }
  0x1c   : > { %582 = vmatpush.bf16.msra.mxu1 %v891_v6  ;;  %v897_v15 = vld [vmem:[%s1021_s6 + $0xa0] sm:$0xff]  ;;  %v896_v19 = vld [vmem:[%s1021_s6 + $0x98] sm:$0xff]  ;;  %v895_v23 = vld [vmem:[%s1021_s6 + $0x90] sm:$0xff] }
  0x1d   : > { %595 = vmatpush.bf16.msra.mxu2 %v899_v7  ;;  %v905_v16 = vld [vmem:[%s1021_s6 + $0xe0] sm:$0xff]  ;;  %v904_v20 = vld [vmem:[%s1021_s6 + $0xd8] sm:$0xff]  ;;  %v903_v24 = vld [vmem:[%s1021_s6 + $0xd0] sm:$0xff] }
  0x1e   : > { %608 = vmatpush.bf16.msra.mxu3 %v907_v8  ;;  %v878_v25 = vld [vmem:[%s1021_s6 + $0x8] sm:$0xff]  ;;  %v296_v27 = vld [vmem:[%s1016_s27] sm:$0xff] }
  0x1f   : > { %570 = vmatpush.bf16.msra.mxu0 %v882_v9  ;;  %v886_v26 = vld [vmem:[%s1021_s6 + $0x48] sm:$0xff]  ;;  %v364_v31 = vunpack.c.l.b16 %v296_v27  ;;  %v365_v32 = vunpack.c.h.b16 %v296_v27  ;;  %v877_v33 = vld [vmem:[%s1021_s6] sm:$0xff] }
  0x20   : > { %583 = vmatpush.bf16.msra.mxu1 %v890_v10  ;;  %v894_v28 = vld [vmem:[%s1021_s6 + $0x88] sm:$0xff]  ;;  %v885_v34 = vld [vmem:[%s1021_s6 + $0x40] sm:$0xff] }
  0x21   : > { %596 = vmatpush.bf16.msra.mxu2 %v898_v11  ;;  %v902_v29 = vld [vmem:[%s1021_s6 + $0xc8] sm:$0xff]  ;;  %v893_v37 = vld [vmem:[%s1021_s6 + $0x80] sm:$0xff]  ;;  %v368_v39 = vpack.c.b16 %v364_v31, %v364_v31  ;;  %v369_v40 = vpack.c.b16 %v365_v32, %v365_v32 }
  0x22   : > { %609 = vmatpush.bf16.msra.mxu3 %v906_v12  ;;  %v297_v30 = vld [vmem:[%s1016_s27 + $0x8] sm:$0xff]  ;;  %v901_v38 = vld [vmem:[%s1021_s6 + $0xc0] sm:$0xff] }
  0x23   : > { %571 = vmatpush.bf16.msra.mxu0 %v881_v13  ;;  %v366_v35 = vunpack.c.l.b16 %v297_v30  ;;  %v367_v36 = vunpack.c.h.b16 %v297_v30  ;;  %v295_v51 = vld [vmem:[#allocation2] sm:$0xff] }
  0x24   : > { %584 = vmatpush.bf16.msra.mxu1 %v889_v14 }
  0x25   : > { %597 = vmatpush.bf16.msra.mxu2 %v897_v15  ;;  %v370_v41 = vpack.c.b16 %v366_v35, %v366_v35  ;;  %v371_v42 = vpack.c.b16 %v367_v36, %v367_v36 }
  0x26   : > { %610 = vmatpush.bf16.msra.mxu3 %v905_v16 }
  0x27   : > { %572 = vmatpush.bf16.msra.mxu0 %v880_v17 }
  0x28   : > { %585 = vmatpush.bf16.msra.mxu1 %v888_v18 }
  0x29   : > { %598 = vmatpush.bf16.msra.mxu2 %v896_v19 }
  0x2a   : > { %611 = vmatpush.bf16.msra.mxu3 %v904_v20 }
  0x2b   : > { %573 = vmatpush.bf16.msra.mxu0 %v879_v21 }
  0x2c   : > { %586 = vmatpush.bf16.msra.mxu1 %v887_v22 }
  0x2d   : > { %599 = vmatpush.bf16.msra.mxu2 %v895_v23 }
  0x2e   : > { %612 = vmatpush.bf16.msra.mxu3 %v903_v24 }
  0x2f   : > { %574 = vmatpush.bf16.msra.mxu0 %v878_v25 }
  0x30   : > { %587 = vmatpush.bf16.msra.mxu1 %v886_v26 }
  0x31   : > { %600 = vmatpush.bf16.msra.mxu2 %v894_v28 }
  0x32   : > { %613 = vmatpush.bf16.msra.mxu3 %v902_v29 }
  0x33   : > { %575 = vmatpush.bf16.msra.mxu0 %v877_v33 }
  0x34   : > { %588 = vmatpush.bf16.msra.mxu1 %v885_v34 }
  0x35   : > { %601 = vmatpush.bf16.msra.mxu2 %v893_v37 }
  0x36   : > { %614 = vmatpush.bf16.msra.mxu3 %v901_v38  ;;  %576 = vmatmul.bf16.vlgmr.msra.gmra.mxu0 %v368_v39 }
  0x37   : > { %589 = vmatmul.bf16.vlgmr.msra.gmra.mxu1 %v369_v40 }
  0x38   : > { %602 = vmatmul.bf16.vlgmr.msra.gmra.mxu2 %v370_v41 }
  0x39   : > { %615 = vmatmul.bf16.vlgmr.msra.gmra.mxu3 %v371_v42 }
  0xb3   : > { %v577_v43 = vpop.f32.mrf.mxu0 }
  0xb4   : > { %v590_v44 = vpop.f32.mrf.mxu1 }
  0xb5   : > { %v591_v45 = vadd.f32 %v590_v44, %v577_v43 }
  0xbb   : > { %v603_v46 = vpop.f32.mrf.mxu2  ;;  %v579_v49 = vpop.f32.mrf.mxu0 }
  0xbc   : > { %v616_v47 = vpop.f32.mrf.mxu3  ;;  %v604_v48 = vadd.f32 %v603_v46, %v591_v45  ;;  %v592_v50 = vpop.f32.mrf.mxu1 }
  0xbe   : > { %v617_v52 = vadd.f32 %v616_v47, %v604_v48 }
  0xc0   : > { %v620_v53 = vadd.f32 %v617_v52, %v295_v51  ;;  %625 = sbr.rel (%p873_p7) target bundleno = 213 (0xd5), region = 48 }
  0xc2   : > { %621 = vst [vmem:[#allocation2] sm:$0xff] %v620_v53 }
  0xc3   : > { %v605_v54 = vpop.f32.mrf.mxu2 }
  0xc4   : > { %v618_v55 = vpop.f32.mrf.mxu3 }
  0xc5   : > { %v627_v57 = vld [vmem:[%s1084_s4] sm:$0xf] }
  0xc6   : > { %v628_v58 = vunpack.c.l.bf16 %v627_v57  ;;  %v934_v59 = vld [vmem:[%s1082_s2] ss:$0 sm:$0xff] }
  0xc7   : > { %v935_v61 = vld [vmem:[%s1083_s3] ss:$0 sm:$0xff] }
  0xc9   : > { %v626_v56 = vld [vmem:[#allocation2] sm:$0xff] }
  0xca   : > { %v629_v60 = vadd.f32 %v628_v58, %v626_v56 }
  0xcc   : > { %v634_v62 = vmul.f32 %v934_v59, %v629_v60 }
  0xce   : > { %v639_v63 = vadd.f32 %v935_v61, %v634_v62 }
  0xd0   : > { %v640_v0 = vmax.f32 %v639_v63, 0.0 }
  0xd2   : > { %v641_v1 = vpack.c.bf16 %v640_v0, %v640_v0 }
  0xd4   : > { %642 = vst [vmem:[%s1085_s5] sm:$0xf] %v641_v1 }
  0xd5 PF: > { %s15_s20 = sadd.s32 1, %s958_s20   ;;  %s1086_s18 = smov %s954_s19 }
  0xd6   : > { %p12_p8 = scmp.ge.s32.totalorder %s15_s20, 5   ;;  %s1087_s19 = smov %s1089_s21 }
  0xd8   :  { %14 = sbr.rel (!%p12_p8) target bundleno = 2 (0x2), region = 84 }

// kernel: _lambda_.25
= control target key start
LH: loop header
LB: loop body
LE: loop exit
PB: predicated region body
PF: predicated region fallthrough
CT: control target
= control target key end

     0   :  { %vm21_vm0 = vcmask 195584   ;;  %v169_v2 = vmov 0.0   ;;  %vm120_vm1 = vcmask 191488   ;;  %s233_s1 = inlined_call_operand.vmem [shape: bf16[128,24], index: 1, kind: input, shape index: {}]   ;;  %s234_s2 = inlined_call_operand.vmem [shape: f32[1,24], index: 2, kind: input, shape index: {}]   ;;  %s235_s3 = inlined_call_operand.vmem [shape: f32[1,24], index: 3, kind: input, shape index: {}]   ;;  %s236_s0 = inlined_call_operand.vmem [shape: bf16[8,128], index: 0, kind: input, shape index: {}]   ;;  %s237_s4 = inlined_call_operand.vmem [shape: bf16[8,24], index: 4, kind: output, shape index: {}]  }
   0x1   :  { %v165_v0 = vld [vmem:[%s233_s1 + $0x38] sm:$0xff]  ;;  %v164_v1 = vld [vmem:[%s233_s1 + $0x30] sm:$0xff]  ;;  %22 = vst.msk [vmem:[#allocation2] sm:$0xff] %vm21_vm0, %v169_v2  ;;  %v163_v3 = vld [vmem:[%s233_s1 + $0x28] sm:$0xff] }
   0x2   :  { %89 = vmatpush.bf16.msra.mxu0 %v165_v0  ;;  %v162_v4 = vld [vmem:[%s233_s1 + $0x20] sm:$0xff]  ;;  %v161_v5 = vld [vmem:[%s233_s1 + $0x18] sm:$0xff]  ;;  %v160_v6 = vld [vmem:[%s233_s1 + $0x10] sm:$0xff] }
   0x3   :  { %v159_v7 = vld [vmem:[%s233_s1 + $0x8] sm:$0xff]  ;;  %v158_v8 = vld [vmem:[%s233_s1] sm:$0xff] }
   0x4   :  { %v24_v9 = vld [vmem:[%s236_s0] sm:$0xf] }
   0x5   :  { %v167_v13 = vld [vmem:[%s234_s2] ss:$0 sm:$0xff] }
   0x6   :  { %90 = vmatpush.bf16.msra.mxu0 %v164_v1  ;;  %v168_v15 = vld [vmem:[%s235_s3] ss:$0 sm:$0xff] }
   0x8   :  { %v23_v10 = vld [vmem:[#allocation2] sm:$0xff] }
   0xa   :  { %91 = vmatpush.bf16.msra.mxu0 %v163_v3 }
   0xe   :  { %92 = vmatpush.bf16.msra.mxu0 %v162_v4 }
  0x12   :  { %93 = vmatpush.bf16.msra.mxu0 %v161_v5 }
  0x16   :  { %94 = vmatpush.bf16.msra.mxu0 %v160_v6 }
  0x1a   :  { %95 = vmatpush.bf16.msra.mxu0 %v159_v7 }
  0x1e   :  { %96 = vmatpush.bf16.msra.mxu0 %v158_v8 }
  0x21   :  { %97 = vmatmul.bf16.vlgmr.msra.gmra.mxu0 %v24_v9 }
  0x9e   :  { %v98_v11 = vpop.f32.mrf.mxu0 }
  0x9f   :  { %v102_v12 = vadd.f32 %v98_v11, %v23_v10 }
  0xa1   :  { %104 = vst.msk [vmem:[#allocation2] sm:$0xff] %vm21_vm0, %v102_v12 }
  0xa6   :  { %v100_v14 = vpop.f32.mrf.mxu0 }
  0xa8   :  { %v108_v16 = vld [vmem:[#allocation2] sm:$0xff] }
  0xa9   :  { %v113_v17 = vmul.f32 %v167_v13, %v108_v16 }
  0xab   :  { %v118_v18 = vadd.f32 %v168_v15, %v113_v17 }
  0xad   :  { %v119_v19 = vpack.c.bf16 %v118_v18, %v118_v18 }
  0xaf   :  { %121 = vst.msk [vmem:[%s237_s4] sm:$0xf] %vm120_vm1, %v119_v19 }

</bundles_post_ra>
